<compile_context>
chip_gen: v7x
topology: tpu7x:2x2x1
jax: 0.10.0
libtpu: 0.0.40
codegen_flags: <defaults>
</compile_context>

<pallas_src>
import functools

import jax
import jax.numpy as jnp
from jax.experimental import pallas as pl
from jax.experimental.pallas import tpu as pltpu


LEAKY_SLOPE = 0.2
BN_EPS = 1e-5


def _round_up(x, m):
    return ((x + m - 1) // m) * m


def _default_vmem_limit():
    # v5e/v6e: 128 MiB physical VMEM -> ~96 MiB; v7x: 64 MiB per TC -> ~48 MiB.
    try:
        cap = pltpu.get_tpu_info().vmem_capacity_bytes
        return int(min(96 * 1024 * 1024, (cap * 3) // 4))
    except Exception:
        return 48 * 1024 * 1024        # conservative fallback, safe everywhere


_VMEM_LIMIT = _default_vmem_limit()


def _compiler_params():
    return pltpu.CompilerParams(
        dimension_semantics=("parallel",),   # independent images -> megacore shards
        vmem_limit_bytes=_VMEM_LIMIT,
    )


def _lhs_spec(r_in, kc, n):
    # Streamed per-image space-to-depth block; triple-buffer only when the grid
    # is deep enough for the extra buffer to hide DMA jitter.
    if n >= 3:
        return pl.BlockSpec((1, r_in, kc), lambda i: (i, 0, 0),
                            pipeline_mode=pl.Buffered(3))
    return pl.BlockSpec((1, r_in, kc), lambda i: (i, 0, 0))


# ---------------------------------------------------------------------------
# Pallas kernels: one image per grid step, 4-tap shifted-matmul conv
# ---------------------------------------------------------------------------
def _conv4tap_act_kernel(x_ref, w_ref, b_ref, o_ref, *, wp, act):
    # x_ref: (1, R_in, 4*Cin) bf16 | w_ref: (4, 4*Cin, Cout) bf16 (resident)
    # b_ref: (1, Cout) f32         | o_ref: (1, R_out, Cout), R_out = Ho*Wp
    r_out = o_ref.shape[1]
    acc = jnp.dot(x_ref[0, pl.ds(0, r_out), :], w_ref[0],
                  preferred_element_type=jnp.float32)
    for t in range(1, 4):
        dih, diw = divmod(t, 2)
        xs = x_ref[0, pl.ds(dih * wp + diw, r_out), :]     # zero-cost shifted view
        acc = acc + jnp.dot(xs, w_ref[t], preferred_element_type=jnp.float32)
    z = acc + b_ref[...]
    if act == "leaky":
        z = jnp.where(z >= 0, z, LEAKY_SLOPE * z)
    elif act == "sigmoid":
        # stable sigmoid: exp of a non-positive arg + approx reciprocal (both EUP)
        e = jnp.exp(-jnp.abs(z))
        r = pl.reciprocal(1.0 + e, approx=True)
        z = jnp.clip(jnp.where(z >= 0, r, 1.0 - r), 0.0, 1.0)
    o_ref[0] = z.astype(o_ref.dtype)


def _conv4tap_stats_kernel(x_ref, w_ref, b_ref, mask_ref, z_ref, sum_ref, ssq_ref, *, wp):
    # BN layers: conv + bias, bf16 z to HBM, masked per-image channel stats (f32).
    # The BN affine + LeakyReLU is applied later, fused into the next layer's
    # space-to-depth copy, once the batch statistics are known.
    r_out = z_ref.shape[1]
    acc = jnp.dot(x_ref[0, pl.ds(0, r_out), :], w_ref[0],
                  preferred_element_type=jnp.float32)
    for t in range(1, 4):
        dih, diw = divmod(t, 2)
        xs = x_ref[0, pl.ds(dih * wp + diw, r_out), :]
        acc = acc + jnp.dot(xs, w_ref[t], preferred_element_type=jnp.float32)
    z = acc + b_ref[...]
    z_ref[0] = z.astype(z_ref.dtype)                       # bf16 intermediate
    zm = z * mask_ref[...]                                 # junk (ow==Wo) rows -> 0
    sum_ref[0] = jnp.sum(zm, axis=0, keepdims=True)
    ssq_ref[0] = jnp.sum(zm * z, axis=0, keepdims=True)    # masked z^2


# ---------------------------------------------------------------------------
# JAX glue: space-to-depth (single ~1x copy), weight prep, layer geometry
# ---------------------------------------------------------------------------
def _layer_geometry(h, w):
    ho, wo = h // 2, w // 2
    wp = wo + 1                                 # +1 junk column so taps share rows
    r_out = ho * wp
    r_in = _round_up((ho + 1) * wp + 1, 8)      # covers the (dih,diw)=(1,1) window
    return ho, wo, wp, r_out, r_in


def _space_to_depth_rows(x_nhwc, r_in):
    """(N,H,W,C) -> pad H,W by 1, 2x2 space-to-depth, flatten to (N, r_in, 4C).

    4C channel order is (di, dj, c); rows are (i, j) with j fast over Wp columns.
    Any preceding elementwise BN-affine / LeakyReLU / cast fuses into this copy.
    """
    n, h, w, c = x_nhwc.shape
    hp, wp = h // 2 + 1, w // 2 + 1
    xp = jnp.pad(x_nhwc, ((0, 0), (1, 1), (1, 1), (0, 0)))
    y = xp.reshape(n, hp, 2, wp, 2, c)
    y = jnp.transpose(y, (0, 1, 3, 2, 4, 5)).reshape(n, hp * wp, 4 * c)
    return jnp.pad(y, ((0, 0), (0, r_in - hp * wp), (0, 0)))


def _prep_taps(w, cout_pad=None):
    """(Cout,Cin,4,4) -> (4, 4*Cin, Cout[_pad]); tap t=dih*2+diw, K=(di,dj,cin)."""
    cout, cin = w.shape[0], w.shape[1]
    wt = jnp.transpose(w, (2, 3, 1, 0))              # (kh, kw, cin, cout)
    wt = wt.reshape(2, 2, 2, 2, cin, cout)           # (dih, di, diw, dj, cin, cout)
    wt = jnp.transpose(wt, (0, 2, 1, 3, 4, 5))       # (dih, diw, di, dj, cin, cout)
    wt = wt.reshape(4, 4 * cin, cout)
    if cout_pad is not None and cout_pad > cout:
        wt = jnp.pad(wt, ((0, 0), (0, 0), (0, cout_pad - cout)))
    return wt


def _rows_to_nhwc(rows, geom, scale=None, shift=None, leaky=False):
    """(N, Ho*Wp, C) kernel output -> (N, Ho, Wo, C); optionally apply the folded
    BN affine + LeakyReLU (f32 math).  Fuses into the consumer's s2d copy."""
    ho, wo, wp = geom
    n, _, c = rows.shape
    h = rows.reshape(n, ho, wp, c)[:, :, :wo, :]     # drop the junk column
    if scale is not None:
        h = h.astype(jnp.float32) * scale + shift
    if leaky:
        h = jnp.where(h >= 0, h, LEAKY_SLOPE * h)
    return h


# ---------------------------------------------------------------------------
# Layers
# ---------------------------------------------------------------------------
def _conv_act_layer(x_nhwc, w, b, *, act, cout_pad=None, out_dtype=jnp.bfloat16):
    n, h, wdt, cin = x_nhwc.shape
    ho, wo, wp, r_out, r_in = _layer_geometry(h, wdt)
    cout = w.shape[0]
    cpad = cout if cout_pad is None else cout_pad
    kc = 4 * cin

    y = _space_to_depth_rows(x_nhwc.astype(jnp.bfloat16), r_in)
    wt = _prep_taps(w, cpad).astype(jnp.bfloat16)
    bp = jnp.pad(b, (0, cpad - cout)).reshape(1, cpad).astype(jnp.float32)

    out = pl.pallas_call(
        functools.partial(_conv4tap_act_kernel, wp=wp, act=act),
        out_shape=jax.ShapeDtypeStruct((n, r_out, cpad), out_dtype),
        grid=(n,),
        in_specs=[
            _lhs_spec(r_in, kc, n),
            pl.BlockSpec((4, kc, cpad), lambda i: (0, 0, 0)),   # resident weights
            pl.BlockSpec((1, cpad), lambda i: (0, 0)),          # resident bias
        ],
        out_specs=pl.BlockSpec((1, r_out, cpad), lambda i: (i, 0, 0)),
        compiler_params=_compiler_params(),
    )(y, wt, bp)
    return out, (ho, wo, wp)


def _conv_bn_stats_layer(x_nhwc, w, b, gamma, beta):
    n, h, wdt, cin = x_nhwc.shape
    ho, wo, wp, r_out, r_in = _layer_geometry(h, wdt)
    cout = w.shape[0]
    kc = 4 * cin

    y = _space_to_depth_rows(x_nhwc.astype(jnp.bfloat16), r_in)
    wt = _prep_taps(w).astype(jnp.bfloat16)
    bp = b.reshape(1, cout).astype(jnp.float32)
    mask = (jnp.arange(r_out) % wp < wo).astype(jnp.float32).reshape(r_out, 1)

    z, sums, ssqs = pl.pallas_call(
        functools.partial(_conv4tap_stats_kernel, wp=wp),
        out_shape=(
            jax.ShapeDtypeStruct((n, r_out, cout), jnp.bfloat16),   # bf16 intermediate
            jax.ShapeDtypeStruct((n, 1, cout), jnp.float32),
            jax.ShapeDtypeStruct((n, 1, cout), jnp.float32),
        ),
        grid=(n,),
        in_specs=[
            _lhs_spec(r_in, kc, n),
            pl.BlockSpec((4, kc, cout), lambda i: (0, 0, 0)),
            pl.BlockSpec((1, cout), lambda i: (0, 0)),
            pl.BlockSpec((r_out, 1), lambda i: (0, 0)),             # valid-row mask
        ],
        out_specs=(
            pl.BlockSpec((1, r_out, cout), lambda i: (i, 0, 0)),
            pl.BlockSpec((1, 1, cout), lambda i: (i, 0, 0)),
            pl.BlockSpec((1, 1, cout), lambda i: (i, 0, 0)),
        ),
        compiler_params=_compiler_params(),
    )(y, wt, bp, mask)

    # Training-mode batch statistics (biased variance, eps=1e-5), folded into a
    # per-channel affine that the consumer applies inside its s2d copy.
    m_total = n * ho * wo
    mean = jnp.sum(sums, axis=(0, 1)) / m_total
    var = jnp.maximum(jnp.sum(ssqs, axis=(0, 1)) / m_total - mean * mean, 0.0)
    scale = gamma * jax.lax.rsqrt(var + BN_EPS)
    shift = beta - mean * scale
    return z, scale, shift, (ho, wo, wp)


# ---------------------------------------------------------------------------
# Parameters (deterministic, shapes match the PyTorch module)
# ---------------------------------------------------------------------------
def init_params(key):
    def conv_params(key, cout, cin, k=4):
        kw, kb = jax.random.split(key)
        fan_in = cin * k * k
        bound = 1.0 / jnp.sqrt(fan_in)
        w = jax.random.uniform(kw, (cout, cin, k, k), jnp.float32, -bound, bound)
        b = jax.random.uniform(kb, (cout,), jnp.float32, -bound, bound)
        return w, b

    k1, k2, k3, k4 = jax.random.split(key, 4)
    return {
        "conv1": conv_params(k1, 64, 3),
        "conv2": conv_params(k2, 128, 64),
        "bn2": (jnp.ones((128,), jnp.float32), jnp.zeros((128,), jnp.float32)),
        "conv3": conv_params(k3, 256, 128),
        "bn3": (jnp.ones((256,), jnp.float32), jnp.zeros((256,), jnp.float32)),
        "conv4": conv_params(k4, 1, 256),
    }


def simple_discriminator_forward(params, x_nchw):
    """x: (N, 3, H, W) f32 NCHW -> (N, 1, H/16, W/16) NCHW (sigmoid scores)."""
    x = jnp.transpose(x_nchw, (0, 2, 3, 1))                    # NHWC internally

    w1, b1 = params["conv1"]
    h1_rows, g1 = _conv_act_layer(x, w1, b1, act="leaky")      # LeakyReLU in-kernel
    h1 = _rows_to_nhwc(h1_rows, g1)

    w2, b2 = params["conv2"]
    gamma2, beta2 = params["bn2"]
    z2, s2, sh2, g2 = _conv_bn_stats_layer(h1, w2, b2, gamma2, beta2)
    h2 = _rows_to_nhwc(z2, g2, s2, sh2, leaky=True)            # BN+leaky folded here

    w3, b3 = params["conv3"]
    gamma3, beta3 = params["bn3"]
    z3, s3, sh3, g3 = _conv_bn_stats_layer(h2, w3, b3, gamma3, beta3)
    h3 = _rows_to_nhwc(z3, g3, s3, sh3, leaky=True)

    w4, b4 = params["conv4"]
    o_rows, g4 = _conv_act_layer(h3, w4, b4, act="sigmoid",
                                 cout_pad=128, out_dtype=jnp.float32)
    out = _rows_to_nhwc(o_rows, g4)[..., :1]                   # (N, Ho, Wo, 1)
    return jnp.transpose(out, (0, 3, 1, 2))                    # back to NCHW


if __name__ == "__main__":
    key = jax.random.PRNGKey(0)
    kx, kp = jax.random.split(key)

    # Small DCGAN-style input: batch=2, channels=3 (module requires 3), 16x16.
    x = jax.random.normal(kx, (2, 3, 16, 16), dtype=jnp.float32)
    params = init_params(kp)

    fwd = jax.jit(simple_discriminator_forward)
    out = jax.block_until_ready(fwd(params, x))

    assert out.shape == (2, 1, 1, 1), out.shape
    assert bool(jnp.all((out >= 0.0) & (out <= 1.0)))          # sigmoid range
    print("KERNEL_OK")
</pallas_src>

<mosaic_0001>
module attributes {stable_mosaic.version = 11 : i64} {
  func.func @_conv4tap_act_kernel(%arg0: i32, %arg1: memref<1x88x12xbf16, #tpu.memory_space<vmem>>, %arg2: memref<4x12x64xbf16, #tpu.memory_space<vmem>>, %arg3: memref<1x64xf32, #tpu.memory_space<vmem>>, %arg4: memref<1x72x64xbf16, #tpu.memory_space<vmem>>) attributes {dimension_semantics = [#tpu.dimension_semantics<parallel>], iteration_bounds = array<i64: 2>, scalar_prefetch = 0 : i64, scratch_operands = 0 : i64, tpu.core_type = #tpu.core_type<tc>, window_params = [{transform_indices = @transform_0, window_bounds = array<i64: 1, 88, 12>}, {pipeline_mode = #tpu.pipeline_mode<synchronous>, transform_indices = @transform_1, window_bounds = array<i64: 4, 12, 64>}, {pipeline_mode = #tpu.pipeline_mode<synchronous>, transform_indices = @transform_2, window_bounds = array<i64: 1, 64>}, {transform_indices = @transform_3, window_bounds = array<i64: 1, 72, 64>}]} {
    %c0 = arith.constant 0 : index
    %c0_0 = arith.constant 0 : index
    %c0_1 = arith.constant 0 : index
    %0 = vector.load %arg1[%c0, %c0_0, %c0_1] : memref<1x88x12xbf16, #tpu.memory_space<vmem>>, vector<1x72x12xbf16>
    %1 = vector.shape_cast %0 : vector<1x72x12xbf16> to vector<72x12xbf16>
    %c0_2 = arith.constant 0 : index
    %c0_3 = arith.constant 0 : index
    %c0_4 = arith.constant 0 : index
    %2 = vector.load %arg2[%c0_2, %c0_3, %c0_4] : memref<4x12x64xbf16, #tpu.memory_space<vmem>>, vector<1x12x64xbf16>
    %3 = vector.shape_cast %2 : vector<1x12x64xbf16> to vector<12x64xbf16>
    %cst = arith.constant dense<0.000000e+00> : vector<72x64xf32>
    %4 = tpu.matmul %1, %3, %cst {dimension_numbers = #tpu.dot_dimension_numbers<[1], [0], [0], [1], [0, 0, 1, 1], [], []>} : vector<72x12xbf16>, vector<12x64xbf16>, vector<72x64xf32> -> vector<72x64xf32>
    %c0_5 = arith.constant 0 : index
    %c1 = arith.constant 1 : index
    %c0_6 = arith.constant 0 : index
    %5 = vector.load %arg1[%c0_5, %c1, %c0_6] : memref<1x88x12xbf16, #tpu.memory_space<vmem>>, vector<1x72x12xbf16>
    %6 = vector.shape_cast %5 : vector<1x72x12xbf16> to vector<72x12xbf16>
    %c1_7 = arith.constant 1 : index
    %c0_8 = arith.constant 0 : index
    %c0_9 = arith.constant 0 : index
    %7 = vector.load %arg2[%c1_7, %c0_8, %c0_9] : memref<4x12x64xbf16, #tpu.memory_space<vmem>>, vector<1x12x64xbf16>
    %8 = vector.shape_cast %7 : vector<1x12x64xbf16> to vector<12x64xbf16>
    %cst_10 = arith.constant dense<0.000000e+00> : vector<72x64xf32>
    %9 = tpu.matmul %6, %8, %cst_10 {dimension_numbers = #tpu.dot_dimension_numbers<[1], [0], [0], [1], [0, 0, 1, 1], [], []>} : vector<72x12xbf16>, vector<12x64xbf16>, vector<72x64xf32> -> vector<72x64xf32>
    %10 = arith.addf %4, %9 : vector<72x64xf32>
    %c0_11 = arith.constant 0 : index
    %c9 = arith.constant 9 : index
    %c0_12 = arith.constant 0 : index
    %11 = vector.load %arg1[%c0_11, %c9, %c0_12] : memref<1x88x12xbf16, #tpu.memory_space<vmem>>, vector<1x72x12xbf16>
    %12 = vector.shape_cast %11 : vector<1x72x12xbf16> to vector<72x12xbf16>
    %c2 = arith.constant 2 : index
    %c0_13 = arith.constant 0 : index
    %c0_14 = arith.constant 0 : index
    %13 = vector.load %arg2[%c2, %c0_13, %c0_14] : memref<4x12x64xbf16, #tpu.memory_space<vmem>>, vector<1x12x64xbf16>
    %14 = vector.shape_cast %13 : vector<1x12x64xbf16> to vector<12x64xbf16>
    %cst_15 = arith.constant dense<0.000000e+00> : vector<72x64xf32>
    %15 = tpu.matmul %12, %14, %cst_15 {dimension_numbers = #tpu.dot_dimension_numbers<[1], [0], [0], [1], [0, 0, 1, 1], [], []>} : vector<72x12xbf16>, vector<12x64xbf16>, vector<72x64xf32> -> vector<72x64xf32>
    %16 = arith.addf %10, %15 : vector<72x64xf32>
    %c0_16 = arith.constant 0 : index
    %c10 = arith.constant 10 : index
    %c0_17 = arith.constant 0 : index
    %17 = vector.load %arg1[%c0_16, %c10, %c0_17] : memref<1x88x12xbf16, #tpu.memory_space<vmem>>, vector<1x72x12xbf16>
    %18 = vector.shape_cast %17 : vector<1x72x12xbf16> to vector<72x12xbf16>
    %c3 = arith.constant 3 : index
    %c0_18 = arith.constant 0 : index
    %c0_19 = arith.constant 0 : index
    %19 = vector.load %arg2[%c3, %c0_18, %c0_19] : memref<4x12x64xbf16, #tpu.memory_space<vmem>>, vector<1x12x64xbf16>
    %20 = vector.shape_cast %19 : vector<1x12x64xbf16> to vector<12x64xbf16>
    %cst_20 = arith.constant dense<0.000000e+00> : vector<72x64xf32>
    %21 = tpu.matmul %18, %20, %cst_20 {dimension_numbers = #tpu.dot_dimension_numbers<[1], [0], [0], [1], [0, 0, 1, 1], [], []>} : vector<72x12xbf16>, vector<12x64xbf16>, vector<72x64xf32> -> vector<72x64xf32>
    %22 = arith.addf %16, %21 : vector<72x64xf32>
    %c0_21 = arith.constant 0 : index
    %c0_22 = arith.constant 0 : index
    %23 = vector.load %arg3[%c0_21, %c0_22] : memref<1x64xf32, #tpu.memory_space<vmem>>, vector<1x64xf32>
    %24 = vector.broadcast %23 : vector<1x64xf32> to vector<72x64xf32>
    %25 = arith.addf %22, %24 : vector<72x64xf32>
    %cst_23 = arith.constant 0.000000e+00 : f32
    %26 = vector.broadcast %cst_23 : f32 to vector<72x64xf32>
    %27 = arith.cmpf oge, %25, %26 : vector<72x64xf32>
    %cst_24 = arith.constant 2.000000e-01 : f32
    %28 = vector.broadcast %cst_24 : f32 to vector<72x64xf32>
    %29 = arith.mulf %28, %25 : vector<72x64xf32>
    %30 = arith.select %27, %25, %29 : vector<72x64xi1>, vector<72x64xf32>
    %31 = arith.truncf %30 : vector<72x64xf32> to vector<72x64xbf16>
    %c0_25 = arith.constant 0 : index
    %c0_26 = arith.constant 0 : index
    %c0_27 = arith.constant 0 : index
    %32 = vector.load %arg4[%c0_25, %c0_26, %c0_27] : memref<1x72x64xbf16, #tpu.memory_space<vmem>>, vector<1x72x64xbf16>
    %33 = vector.shape_cast %32 : vector<1x72x64xbf16> to vector<72x64xbf16>
    %34 = vector.shape_cast %31 : vector<72x64xbf16> to vector<1x72x64xbf16>
    tpu.vector_store %arg4[%c0_25, %c0_26, %c0_27], %34 {strides = array<i32>} : memref<1x72x64xbf16, #tpu.memory_space<vmem>>, vector<1x72x64xbf16>,
    return
  }
  func.func @transform_0(%arg0: i32) -> (i32, i32, i32) {
    %c0_i32 = arith.constant 0 : i32
    %c0_i32_0 = arith.constant 0 : i32
    %c0_i32_1 = arith.constant 0 : i32
    return %arg0, %c0_i32, %c0_i32_0 : i32, i32, i32
  }
  func.func @transform_1(%arg0: i32) -> (i32, i32, i32) {
    %c0_i32 = arith.constant 0 : i32
    %c0_i32_0 = arith.constant 0 : i32
    %c0_i32_1 = arith.constant 0 : i32
    %c0_i32_2 = arith.constant 0 : i32
    return %c0_i32, %c0_i32_0, %c0_i32_1 : i32, i32, i32
  }
  func.func @transform_2(%arg0: i32) -> (i32, i32) {
    %c0_i32 = arith.constant 0 : i32
    %c0_i32_0 = arith.constant 0 : i32
    %c0_i32_1 = arith.constant 0 : i32
    return %c0_i32, %c0_i32_0 : i32, i32
  }
  func.func @transform_3(%arg0: i32) -> (i32, i32, i32) {
    %c0_i32 = arith.constant 0 : i32
    %c0_i32_0 = arith.constant 0 : i32
    %c0_i32_1 = arith.constant 0 : i32
    return %arg0, %c0_i32, %c0_i32_0 : i32, i32, i32
  }
}

module attributes {stable_mosaic.version = 11 : i64} {
  func.func @_conv4tap_stats_kernel(%arg0: i32, %arg1: memref<1x32x256xbf16, #tpu.memory_space<vmem>>, %arg2: memref<4x256x128xbf16, #tpu.memory_space<vmem>>, %arg3: memref<1x128xf32, #tpu.memory_space<vmem>>, %arg4: memref<20x1xf32, #tpu.memory_space<vmem>>, %arg5: memref<1x20x128xbf16, #tpu.memory_space<vmem>>, %arg6: memref<1x1x128xf32, #tpu.memory_space<vmem>>, %arg7: memref<1x1x128xf32, #tpu.memory_space<vmem>>) attributes {dimension_semantics = [#tpu.dimension_semantics<parallel>], iteration_bounds = array<i64: 2>, scalar_prefetch = 0 : i64, scratch_operands = 0 : i64, tpu.core_type = #tpu.core_type<tc>, window_params = [{transform_indices = @transform_0, window_bounds = array<i64: 1, 32, 256>}, {pipeline_mode = #tpu.pipeline_mode<synchronous>, transform_indices = @transform_1, window_bounds = array<i64: 4, 256, 128>}, {pipeline_mode = #tpu.pipeline_mode<synchronous>, transform_indices = @transform_2, window_bounds = array<i64: 1, 128>}, {pipeline_mode = #tpu.pipeline_mode<synchronous>, transform_indices = @transform_3, window_bounds = array<i64: 20, 1>}, {transform_indices = @transform_4, window_bounds = array<i64: 1, 20, 128>}, {transform_indices = @transform_5, window_bounds = array<i64: 1, 1, 128>}, {transform_indices = @transform_6, window_bounds = array<i64: 1, 1, 128>}]} {
    %c0 = arith.constant 0 : index
    %c0_0 = arith.constant 0 : index
    %c0_1 = arith.constant 0 : index
    %0 = vector.load %arg1[%c0, %c0_0, %c0_1] : memref<1x32x256xbf16, #tpu.memory_space<vmem>>, vector<1x20x256xbf16>
    %1 = vector.shape_cast %0 : vector<1x20x256xbf16> to vector<20x256xbf16>
    %c0_2 = arith.constant 0 : index
    %c0_3 = arith.constant 0 : index
    %c0_4 = arith.constant 0 : index
    %2 = vector.load %arg2[%c0_2, %c0_3, %c0_4] : memref<4x256x128xbf16, #tpu.memory_space<vmem>>, vector<1x256x128xbf16>
    %3 = vector.shape_cast %2 : vector<1x256x128xbf16> to vector<256x128xbf16>
    %cst = arith.constant dense<0.000000e+00> : vector<20x128xf32>
    %4 = tpu.matmul %1, %3, %cst {dimension_numbers = #tpu.dot_dimension_numbers<[1], [0], [0], [1], [0, 0, 1, 1], [], []>} : vector<20x256xbf16>, vector<256x128xbf16>, vector<20x128xf32> -> vector<20x128xf32>
    %c0_5 = arith.constant 0 : index
    %c1 = arith.constant 1 : index
    %c0_6 = arith.constant 0 : index
    %5 = vector.load %arg1[%c0_5, %c1, %c0_6] : memref<1x32x256xbf16, #tpu.memory_space<vmem>>, vector<1x20x256xbf16>
    %6 = vector.shape_cast %5 : vector<1x20x256xbf16> to vector<20x256xbf16>
    %c1_7 = arith.constant 1 : index
    %c0_8 = arith.constant 0 : index
    %c0_9 = arith.constant 0 : index
    %7 = vector.load %arg2[%c1_7, %c0_8, %c0_9] : memref<4x256x128xbf16, #tpu.memory_space<vmem>>, vector<1x256x128xbf16>
    %8 = vector.shape_cast %7 : vector<1x256x128xbf16> to vector<256x128xbf16>
    %cst_10 = arith.constant dense<0.000000e+00> : vector<20x128xf32>
    %9 = tpu.matmul %6, %8, %cst_10 {dimension_numbers = #tpu.dot_dimension_numbers<[1], [0], [0], [1], [0, 0, 1, 1], [], []>} : vector<20x256xbf16>, vector<256x128xbf16>, vector<20x128xf32> -> vector<20x128xf32>
    %10 = arith.addf %4, %9 : vector<20x128xf32>
    %c0_11 = arith.constant 0 : index
    %c5 = arith.constant 5 : index
    %c0_12 = arith.constant 0 : index
    %11 = vector.load %arg1[%c0_11, %c5, %c0_12] : memref<1x32x256xbf16, #tpu.memory_space<vmem>>, vector<1x20x256xbf16>
    %12 = vector.shape_cast %11 : vector<1x20x256xbf16> to vector<20x256xbf16>
    %c2 = arith.constant 2 : index
    %c0_13 = arith.constant 0 : index
    %c0_14 = arith.constant 0 : index
    %13 = vector.load %arg2[%c2, %c0_13, %c0_14] : memref<4x256x128xbf16, #tpu.memory_space<vmem>>, vector<1x256x128xbf16>
    %14 = vector.shape_cast %13 : vector<1x256x128xbf16> to vector<256x128xbf16>
    %cst_15 = arith.constant dense<0.000000e+00> : vector<20x128xf32>
    %15 = tpu.matmul %12, %14, %cst_15 {dimension_numbers = #tpu.dot_dimension_numbers<[1], [0], [0], [1], [0, 0, 1, 1], [], []>} : vector<20x256xbf16>, vector<256x128xbf16>, vector<20x128xf32> -> vector<20x128xf32>
    %16 = arith.addf %10, %15 : vector<20x128xf32>
    %c0_16 = arith.constant 0 : index
    %c6 = arith.constant 6 : index
    %c0_17 = arith.constant 0 : index
    %17 = vector.load %arg1[%c0_16, %c6, %c0_17] : memref<1x32x256xbf16, #tpu.memory_space<vmem>>, vector<1x20x256xbf16>
    %18 = vector.shape_cast %17 : vector<1x20x256xbf16> to vector<20x256xbf16>
    %c3 = arith.constant 3 : index
    %c0_18 = arith.constant 0 : index
    %c0_19 = arith.constant 0 : index
    %19 = vector.load %arg2[%c3, %c0_18, %c0_19] : memref<4x256x128xbf16, #tpu.memory_space<vmem>>, vector<1x256x128xbf16>
    %20 = vector.shape_cast %19 : vector<1x256x128xbf16> to vector<256x128xbf16>
    %cst_20 = arith.constant dense<0.000000e+00> : vector<20x128xf32>
    %21 = tpu.matmul %18, %20, %cst_20 {dimension_numbers = #tpu.dot_dimension_numbers<[1], [0], [0], [1], [0, 0, 1, 1], [], []>} : vector<20x256xbf16>, vector<256x128xbf16>, vector<20x128xf32> -> vector<20x128xf32>
    %22 = arith.addf %16, %21 : vector<20x128xf32>
    %c0_21 = arith.constant 0 : index
    %c0_22 = arith.constant 0 : index
    %23 = vector.load %arg3[%c0_21, %c0_22] : memref<1x128xf32, #tpu.memory_space<vmem>>, vector<1x128xf32>
    %24 = vector.broadcast %23 : vector<1x128xf32> to vector<20x128xf32>
    %25 = arith.addf %22, %24 : vector<20x128xf32>
    %26 = arith.truncf %25 : vector<20x128xf32> to vector<20x128xbf16>
    %c0_23 = arith.constant 0 : index
    %c0_24 = arith.constant 0 : index
    %c0_25 = arith.constant 0 : index
    %27 = vector.load %arg5[%c0_23, %c0_24, %c0_25] : memref<1x20x128xbf16, #tpu.memory_space<vmem>>, vector<1x20x128xbf16>
    %28 = vector.shape_cast %27 : vector<1x20x128xbf16> to vector<20x128xbf16>
    %29 = vector.shape_cast %26 : vector<20x128xbf16> to vector<1x20x128xbf16>
    tpu.vector_store %arg5[%c0_23, %c0_24, %c0_25], %29 {strides = array<i32>} : memref<1x20x128xbf16, #tpu.memory_space<vmem>>, vector<1x20x128xbf16>,
    %c0_26 = arith.constant 0 : index
    %c0_27 = arith.constant 0 : index
    %30 = vector.load %arg4[%c0_26, %c0_27] : memref<20x1xf32, #tpu.memory_space<vmem>>, vector<20x1xf32>
    %31 = vector.broadcast %30 : vector<20x1xf32> to vector<20x128xf32>
    %32 = arith.mulf %25, %31 : vector<20x128xf32>
    %cst_28 = arith.constant dense<0.000000e+00> : vector<128xf32>
    %33 = vector.multi_reduction <add>, %32, %cst_28 [0] : vector<20x128xf32> to vector<128xf32>
    %34 = vector.shape_cast %33 : vector<128xf32> to vector<1x128xf32>
    %c0_29 = arith.constant 0 : index
    %c0_30 = arith.constant 0 : index
    %c0_31 = arith.constant 0 : index
    %35 = vector.load %arg6[%c0_29, %c0_30, %c0_31] : memref<1x1x128xf32, #tpu.memory_space<vmem>>, vector<1x1x128xf32>
    %36 = vector.shape_cast %35 : vector<1x1x128xf32> to vector<1x128xf32>
    %37 = vector.shape_cast %34 : vector<1x128xf32> to vector<1x1x128xf32>
    tpu.vector_store %arg6[%c0_29, %c0_30, %c0_31], %37 {strides = array<i32>} : memref<1x1x128xf32, #tpu.memory_space<vmem>>, vector<1x1x128xf32>,
    %38 = arith.mulf %32, %25 : vector<20x128xf32>
    %cst_32 = arith.constant dense<0.000000e+00> : vector<128xf32>
    %39 = vector.multi_reduction <add>, %38, %cst_32 [0] : vector<20x128xf32> to vector<128xf32>
    %40 = vector.shape_cast %39 : vector<128xf32> to vector<1x128xf32>
    %c0_33 = arith.constant 0 : index
    %c0_34 = arith.constant 0 : index
    %c0_35 = arith.constant 0 : index
    %41 = vector.load %arg7[%c0_33, %c0_34, %c0_35] : memref<1x1x128xf32, #tpu.memory_space<vmem>>, vector<1x1x128xf32>
    %42 = vector.shape_cast %41 : vector<1x1x128xf32> to vector<1x128xf32>
    %43 = vector.shape_cast %40 : vector<1x128xf32> to vector<1x1x128xf32>
    tpu.vector_store %arg7[%c0_33, %c0_34, %c0_35], %43 {strides = array<i32>} : memref<1x1x128xf32, #tpu.memory_space<vmem>>, vector<1x1x128xf32>,
    return
  }
  func.func @transform_0(%arg0: i32) -> (i32, i32, i32) {
    %c0_i32 = arith.constant 0 : i32
    %c0_i32_0 = arith.constant 0 : i32
    %c0_i32_1 = arith.constant 0 : i32
    return %arg0, %c0_i32, %c0_i32_0 : i32, i32, i32
  }
  func.func @transform_1(%arg0: i32) -> (i32, i32, i32) {
    %c0_i32 = arith.constant 0 : i32
    %c0_i32_0 = arith.constant 0 : i32
    %c0_i32_1 = arith.constant 0 : i32
    %c0_i32_2 = arith.constant 0 : i32
    return %c0_i32, %c0_i32_0, %c0_i32_1 : i32, i32, i32
  }
  func.func @transform_2(%arg0: i32) -> (i32, i32) {
    %c0_i32 = arith.constant 0 : i32
    %c0_i32_0 = arith.constant 0 : i32
    %c0_i32_1 = arith.constant 0 : i32
    return %c0_i32, %c0_i32_0 : i32, i32
  }
  func.func @transform_3(%arg0: i32) -> (i32, i32) {
    %c0_i32 = arith.constant 0 : i32
    %c0_i32_0 = arith.constant 0 : i32
    %c0_i32_1 = arith.constant 0 : i32
    return %c0_i32, %c0_i32_0 : i32, i32
  }
  func.func @transform_4(%arg0: i32) -> (i32, i32, i32) {
    %c0_i32 = arith.constant 0 : i32
    %c0_i32_0 = arith.constant 0 : i32
    %c0_i32_1 = arith.constant 0 : i32
    return %arg0, %c0_i32, %c0_i32_0 : i32, i32, i32
  }
  func.func @transform_5(%arg0: i32) -> (i32, i32, i32) {
    %c0_i32 = arith.constant 0 : i32
    %c0_i32_0 = arith.constant 0 : i32
    %c0_i32_1 = arith.constant 0 : i32
    return %arg0, %c0_i32, %c0_i32_0 : i32, i32, i32
  }
  func.func @transform_6(%arg0: i32) -> (i32, i32, i32) {
    %c0_i32 = arith.constant 0 : i32
    %c0_i32_0 = arith.constant 0 : i32
    %c0_i32_1 = arith.constant 0 : i32
    return %arg0, %c0_i32, %c0_i32_0 : i32, i32, i32
  }
}

module attributes {stable_mosaic.version = 11 : i64} {
  func.func @_conv4tap_stats_kernel(%arg0: i32, %arg1: memref<1x16x512xbf16, #tpu.memory_space<vmem>>, %arg2: memref<4x512x256xbf16, #tpu.memory_space<vmem>>, %arg3: memref<1x256xf32, #tpu.memory_space<vmem>>, %arg4: memref<6x1xf32, #tpu.memory_space<vmem>>, %arg5: memref<1x6x256xbf16, #tpu.memory_space<vmem>>, %arg6: memref<1x1x256xf32, #tpu.memory_space<vmem>>, %arg7: memref<1x1x256xf32, #tpu.memory_space<vmem>>) attributes {dimension_semantics = [#tpu.dimension_semantics<parallel>], iteration_bounds = array<i64: 2>, scalar_prefetch = 0 : i64, scratch_operands = 0 : i64, tpu.core_type = #tpu.core_type<tc>, window_params = [{transform_indices = @transform_0, window_bounds = array<i64: 1, 16, 512>}, {pipeline_mode = #tpu.pipeline_mode<synchronous>, transform_indices = @transform_1, window_bounds = array<i64: 4, 512, 256>}, {pipeline_mode = #tpu.pipeline_mode<synchronous>, transform_indices = @transform_2, window_bounds = array<i64: 1, 256>}, {pipeline_mode = #tpu.pipeline_mode<synchronous>, transform_indices = @transform_3, window_bounds = array<i64: 6, 1>}, {transform_indices = @transform_4, window_bounds = array<i64: 1, 6, 256>}, {transform_indices = @transform_5, window_bounds = array<i64: 1, 1, 256>}, {transform_indices = @transform_6, window_bounds = array<i64: 1, 1, 256>}]} {
    %c0 = arith.constant 0 : index
    %c0_0 = arith.constant 0 : index
    %c0_1 = arith.constant 0 : index
    %0 = vector.load %arg1[%c0, %c0_0, %c0_1] : memref<1x16x512xbf16, #tpu.memory_space<vmem>>, vector<1x6x512xbf16>
    %1 = vector.shape_cast %0 : vector<1x6x512xbf16> to vector<6x512xbf16>
    %c0_2 = arith.constant 0 : index
    %c0_3 = arith.constant 0 : index
    %c0_4 = arith.constant 0 : index
    %2 = vector.load %arg2[%c0_2, %c0_3, %c0_4] : memref<4x512x256xbf16, #tpu.memory_space<vmem>>, vector<1x512x256xbf16>
    %3 = vector.shape_cast %2 : vector<1x512x256xbf16> to vector<512x256xbf16>
    %cst = arith.constant dense<0.000000e+00> : vector<6x256xf32>
    %4 = tpu.matmul %1, %3, %cst {dimension_numbers = #tpu.dot_dimension_numbers<[1], [0], [0], [1], [0, 0, 1, 1], [], []>} : vector<6x512xbf16>, vector<512x256xbf16>, vector<6x256xf32> -> vector<6x256xf32>
    %c0_5 = arith.constant 0 : index
    %c1 = arith.constant 1 : index
    %c0_6 = arith.constant 0 : index
    %5 = vector.load %arg1[%c0_5, %c1, %c0_6] : memref<1x16x512xbf16, #tpu.memory_space<vmem>>, vector<1x6x512xbf16>
    %6 = vector.shape_cast %5 : vector<1x6x512xbf16> to vector<6x512xbf16>
    %c1_7 = arith.constant 1 : index
    %c0_8 = arith.constant 0 : index
    %c0_9 = arith.constant 0 : index
    %7 = vector.load %arg2[%c1_7, %c0_8, %c0_9] : memref<4x512x256xbf16, #tpu.memory_space<vmem>>, vector<1x512x256xbf16>
    %8 = vector.shape_cast %7 : vector<1x512x256xbf16> to vector<512x256xbf16>
    %cst_10 = arith.constant dense<0.000000e+00> : vector<6x256xf32>
    %9 = tpu.matmul %6, %8, %cst_10 {dimension_numbers = #tpu.dot_dimension_numbers<[1], [0], [0], [1], [0, 0, 1, 1], [], []>} : vector<6x512xbf16>, vector<512x256xbf16>, vector<6x256xf32> -> vector<6x256xf32>
    %10 = arith.addf %4, %9 : vector<6x256xf32>
    %c0_11 = arith.constant 0 : index
    %c3 = arith.constant 3 : index
    %c0_12 = arith.constant 0 : index
    %11 = vector.load %arg1[%c0_11, %c3, %c0_12] : memref<1x16x512xbf16, #tpu.memory_space<vmem>>, vector<1x6x512xbf16>
    %12 = vector.shape_cast %11 : vector<1x6x512xbf16> to vector<6x512xbf16>
    %c2 = arith.constant 2 : index
    %c0_13 = arith.constant 0 : index
    %c0_14 = arith.constant 0 : index
    %13 = vector.load %arg2[%c2, %c0_13, %c0_14] : memref<4x512x256xbf16, #tpu.memory_space<vmem>>, vector<1x512x256xbf16>
    %14 = vector.shape_cast %13 : vector<1x512x256xbf16> to vector<512x256xbf16>
    %cst_15 = arith.constant dense<0.000000e+00> : vector<6x256xf32>
    %15 = tpu.matmul %12, %14, %cst_15 {dimension_numbers = #tpu.dot_dimension_numbers<[1], [0], [0], [1], [0, 0, 1, 1], [], []>} : vector<6x512xbf16>, vector<512x256xbf16>, vector<6x256xf32> -> vector<6x256xf32>
    %16 = arith.addf %10, %15 : vector<6x256xf32>
    %c0_16 = arith.constant 0 : index
    %c4 = arith.constant 4 : index
    %c0_17 = arith.constant 0 : index
    %17 = vector.load %arg1[%c0_16, %c4, %c0_17] : memref<1x16x512xbf16, #tpu.memory_space<vmem>>, vector<1x6x512xbf16>
    %18 = vector.shape_cast %17 : vector<1x6x512xbf16> to vector<6x512xbf16>
    %c3_18 = arith.constant 3 : index
    %c0_19 = arith.constant 0 : index
    %c0_20 = arith.constant 0 : index
    %19 = vector.load %arg2[%c3_18, %c0_19, %c0_20] : memref<4x512x256xbf16, #tpu.memory_space<vmem>>, vector<1x512x256xbf16>
    %20 = vector.shape_cast %19 : vector<1x512x256xbf16> to vector<512x256xbf16>
    %cst_21 = arith.constant dense<0.000000e+00> : vector<6x256xf32>
    %21 = tpu.matmul %18, %20, %cst_21 {dimension_numbers = #tpu.dot_dimension_numbers<[1], [0], [0], [1], [0, 0, 1, 1], [], []>} : vector<6x512xbf16>, vector<512x256xbf16>, vector<6x256xf32> -> vector<6x256xf32>
    %22 = arith.addf %16, %21 : vector<6x256xf32>
    %c0_22 = arith.constant 0 : index
    %c0_23 = arith.constant 0 : index
    %23 = vector.load %arg3[%c0_22, %c0_23] : memref<1x256xf32, #tpu.memory_space<vmem>>, vector<1x256xf32>
    %24 = vector.broadcast %23 : vector<1x256xf32> to vector<6x256xf32>
    %25 = arith.addf %22, %24 : vector<6x256xf32>
    %26 = arith.truncf %25 : vector<6x256xf32> to vector<6x256xbf16>
    %c0_24 = arith.constant 0 : index
    %c0_25 = arith.constant 0 : index
    %c0_26 = arith.constant 0 : index
    %27 = vector.load %arg5[%c0_24, %c0_25, %c0_26] : memref<1x6x256xbf16, #tpu.memory_space<vmem>>, vector<1x6x256xbf16>
    %28 = vector.shape_cast %27 : vector<1x6x256xbf16> to vector<6x256xbf16>
    %29 = vector.shape_cast %26 : vector<6x256xbf16> to vector<1x6x256xbf16>
    tpu.vector_store %arg5[%c0_24, %c0_25, %c0_26], %29 {strides = array<i32>} : memref<1x6x256xbf16, #tpu.memory_space<vmem>>, vector<1x6x256xbf16>,
    %c0_27 = arith.constant 0 : index
    %c0_28 = arith.constant 0 : index
    %30 = vector.load %arg4[%c0_27, %c0_28] : memref<6x1xf32, #tpu.memory_space<vmem>>, vector<6x1xf32>
    %31 = vector.broadcast %30 : vector<6x1xf32> to vector<6x256xf32>
    %32 = arith.mulf %25, %31 : vector<6x256xf32>
    %cst_29 = arith.constant dense<0.000000e+00> : vector<256xf32>
    %33 = vector.multi_reduction <add>, %32, %cst_29 [0] : vector<6x256xf32> to vector<256xf32>
    %34 = vector.shape_cast %33 : vector<256xf32> to vector<1x256xf32>
    %c0_30 = arith.constant 0 : index
    %c0_31 = arith.constant 0 : index
    %c0_32 = arith.constant 0 : index
    %35 = vector.load %arg6[%c0_30, %c0_31, %c0_32] : memref<1x1x256xf32, #tpu.memory_space<vmem>>, vector<1x1x256xf32>
    %36 = vector.shape_cast %35 : vector<1x1x256xf32> to vector<1x256xf32>
    %37 = vector.shape_cast %34 : vector<1x256xf32> to vector<1x1x256xf32>
    tpu.vector_store %arg6[%c0_30, %c0_31, %c0_32], %37 {strides = array<i32>} : memref<1x1x256xf32, #tpu.memory_space<vmem>>, vector<1x1x256xf32>,
    %38 = arith.mulf %32, %25 : vector<6x256xf32>
    %cst_33 = arith.constant dense<0.000000e+00> : vector<256xf32>
    %39 = vector.multi_reduction <add>, %38, %cst_33 [0] : vector<6x256xf32> to vector<256xf32>
    %40 = vector.shape_cast %39 : vector<256xf32> to vector<1x256xf32>
    %c0_34 = arith.constant 0 : index
    %c0_35 = arith.constant 0 : index
    %c0_36 = arith.constant 0 : index
    %41 = vector.load %arg7[%c0_34, %c0_35, %c0_36] : memref<1x1x256xf32, #tpu.memory_space<vmem>>, vector<1x1x256xf32>
    %42 = vector.shape_cast %41 : vector<1x1x256xf32> to vector<1x256xf32>
    %43 = vector.shape_cast %40 : vector<1x256xf32> to vector<1x1x256xf32>
    tpu.vector_store %arg7[%c0_34, %c0_35, %c0_36], %43 {strides = array<i32>} : memref<1x1x256xf32, #tpu.memory_space<vmem>>, vector<1x1x256xf32>,
    return
  }
  func.func @transform_0(%arg0: i32) -> (i32, i32, i32) {
    %c0_i32 = arith.constant 0 : i32
    %c0_i32_0 = arith.constant 0 : i32
    %c0_i32_1 = arith.constant 0 : i32
    return %arg0, %c0_i32, %c0_i32_0 : i32, i32, i32
  }
  func.func @transform_1(%arg0: i32) -> (i32, i32, i32) {
    %c0_i32 = arith.constant 0 : i32
    %c0_i32_0 = arith.constant 0 : i32
    %c0_i32_1 = arith.constant 0 : i32
    %c0_i32_2 = arith.constant 0 : i32
    return %c0_i32, %c0_i32_0, %c0_i32_1 : i32, i32, i32
  }
  func.func @transform_2(%arg0: i32) -> (i32, i32) {
    %c0_i32 = arith.constant 0 : i32
    %c0_i32_0 = arith.constant 0 : i32
    %c0_i32_1 = arith.constant 0 : i32
    return %c0_i32, %c0_i32_0 : i32, i32
  }
  func.func @transform_3(%arg0: i32) -> (i32, i32) {
    %c0_i32 = arith.constant 0 : i32
    %c0_i32_0 = arith.constant 0 : i32
    %c0_i32_1 = arith.constant 0 : i32
    return %c0_i32, %c0_i32_0 : i32, i32
  }
  func.func @transform_4(%arg0: i32) -> (i32, i32, i32) {
    %c0_i32 = arith.constant 0 : i32
    %c0_i32_0 = arith.constant 0 : i32
    %c0_i32_1 = arith.constant 0 : i32
    return %arg0, %c0_i32, %c0_i32_0 : i32, i32, i32
  }
  func.func @transform_5(%arg0: i32) -> (i32, i32, i32) {
    %c0_i32 = arith.constant 0 : i32
    %c0_i32_0 = arith.constant 0 : i32
    %c0_i32_1 = arith.constant 0 : i32
    return %arg0, %c0_i32, %c0_i32_0 : i32, i32, i32
  }
  func.func @transform_6(%arg0: i32) -> (i32, i32, i32) {
    %c0_i32 = arith.constant 0 : i32
    %c0_i32_0 = arith.constant 0 : i32
    %c0_i32_1 = arith.constant 0 : i32
    return %arg0, %c0_i32, %c0_i32_0 : i32, i32, i32
  }
}

module attributes {stable_mosaic.version = 11 : i64} {
  func.func @_conv4tap_act_kernel(%arg0: i32, %arg1: memref<1x8x1024xbf16, #tpu.memory_space<vmem>>, %arg2: memref<4x1024x128xbf16, #tpu.memory_space<vmem>>, %arg3: memref<1x128xf32, #tpu.memory_space<vmem>>, %arg4: memref<1x2x128xf32, #tpu.memory_space<vmem>>) attributes {dimension_semantics = [#tpu.dimension_semantics<parallel>], iteration_bounds = array<i64: 2>, scalar_prefetch = 0 : i64, scratch_operands = 0 : i64, tpu.core_type = #tpu.core_type<tc>, window_params = [{transform_indices = @transform_0, window_bounds = array<i64: 1, 8, 1024>}, {pipeline_mode = #tpu.pipeline_mode<synchronous>, transform_indices = @transform_1, window_bounds = array<i64: 4, 1024, 128>}, {pipeline_mode = #tpu.pipeline_mode<synchronous>, transform_indices = @transform_2, window_bounds = array<i64: 1, 128>}, {transform_indices = @transform_3, window_bounds = array<i64: 1, 2, 128>}]} {
    %c0 = arith.constant 0 : index
    %c0_0 = arith.constant 0 : index
    %c0_1 = arith.constant 0 : index
    %0 = vector.load %arg1[%c0, %c0_0, %c0_1] : memref<1x8x1024xbf16, #tpu.memory_space<vmem>>, vector<1x2x1024xbf16>
    %1 = vector.shape_cast %0 : vector<1x2x1024xbf16> to vector<2x1024xbf16>
    %c0_2 = arith.constant 0 : index
    %c0_3 = arith.constant 0 : index
    %c0_4 = arith.constant 0 : index
    %2 = vector.load %arg2[%c0_2, %c0_3, %c0_4] : memref<4x1024x128xbf16, #tpu.memory_space<vmem>>, vector<1x1024x128xbf16>
    %3 = vector.shape_cast %2 : vector<1x1024x128xbf16> to vector<1024x128xbf16>
    %cst = arith.constant dense<0.000000e+00> : vector<2x128xf32>
    %4 = tpu.matmul %1, %3, %cst {dimension_numbers = #tpu.dot_dimension_numbers<[1], [0], [0], [1], [0, 0, 1, 1], [], []>} : vector<2x1024xbf16>, vector<1024x128xbf16>, vector<2x128xf32> -> vector<2x128xf32>
    %c0_5 = arith.constant 0 : index
    %c1 = arith.constant 1 : index
    %c0_6 = arith.constant 0 : index
    %5 = vector.load %arg1[%c0_5, %c1, %c0_6] : memref<1x8x1024xbf16, #tpu.memory_space<vmem>>, vector<1x2x1024xbf16>
    %6 = vector.shape_cast %5 : vector<1x2x1024xbf16> to vector<2x1024xbf16>
    %c1_7 = arith.constant 1 : index
    %c0_8 = arith.constant 0 : index
    %c0_9 = arith.constant 0 : index
    %7 = vector.load %arg2[%c1_7, %c0_8, %c0_9] : memref<4x1024x128xbf16, #tpu.memory_space<vmem>>, vector<1x1024x128xbf16>
    %8 = vector.shape_cast %7 : vector<1x1024x128xbf16> to vector<1024x128xbf16>
    %cst_10 = arith.constant dense<0.000000e+00> : vector<2x128xf32>
    %9 = tpu.matmul %6, %8, %cst_10 {dimension_numbers = #tpu.dot_dimension_numbers<[1], [0], [0], [1], [0, 0, 1, 1], [], []>} : vector<2x1024xbf16>, vector<1024x128xbf16>, vector<2x128xf32> -> vector<2x128xf32>
    %10 = arith.addf %4, %9 : vector<2x128xf32>
    %c0_11 = arith.constant 0 : index
    %c2 = arith.constant 2 : index
    %c0_12 = arith.constant 0 : index
    %11 = vector.load %arg1[%c0_11, %c2, %c0_12] : memref<1x8x1024xbf16, #tpu.memory_space<vmem>>, vector<1x2x1024xbf16>
    %12 = vector.shape_cast %11 : vector<1x2x1024xbf16> to vector<2x1024xbf16>
    %c2_13 = arith.constant 2 : index
    %c0_14 = arith.constant 0 : index
    %c0_15 = arith.constant 0 : index
    %13 = vector.load %arg2[%c2_13, %c0_14, %c0_15] : memref<4x1024x128xbf16, #tpu.memory_space<vmem>>, vector<1x1024x128xbf16>
    %14 = vector.shape_cast %13 : vector<1x1024x128xbf16> to vector<1024x128xbf16>
    %cst_16 = arith.constant dense<0.000000e+00> : vector<2x128xf32>
    %15 = tpu.matmul %12, %14, %cst_16 {dimension_numbers = #tpu.dot_dimension_numbers<[1], [0], [0], [1], [0, 0, 1, 1], [], []>} : vector<2x1024xbf16>, vector<1024x128xbf16>, vector<2x128xf32> -> vector<2x128xf32>
    %16 = arith.addf %10, %15 : vector<2x128xf32>
    %c0_17 = arith.constant 0 : index
    %c3 = arith.constant 3 : index
    %c0_18 = arith.constant 0 : index
    %17 = vector.load %arg1[%c0_17, %c3, %c0_18] : memref<1x8x1024xbf16, #tpu.memory_space<vmem>>, vector<1x2x1024xbf16>
    %18 = vector.shape_cast %17 : vector<1x2x1024xbf16> to vector<2x1024xbf16>
    %c3_19 = arith.constant 3 : index
    %c0_20 = arith.constant 0 : index
    %c0_21 = arith.constant 0 : index
    %19 = vector.load %arg2[%c3_19, %c0_20, %c0_21] : memref<4x1024x128xbf16, #tpu.memory_space<vmem>>, vector<1x1024x128xbf16>
    %20 = vector.shape_cast %19 : vector<1x1024x128xbf16> to vector<1024x128xbf16>
    %cst_22 = arith.constant dense<0.000000e+00> : vector<2x128xf32>
    %21 = tpu.matmul %18, %20, %cst_22 {dimension_numbers = #tpu.dot_dimension_numbers<[1], [0], [0], [1], [0, 0, 1, 1], [], []>} : vector<2x1024xbf16>, vector<1024x128xbf16>, vector<2x128xf32> -> vector<2x128xf32>
    %22 = arith.addf %16, %21 : vector<2x128xf32>
    %c0_23 = arith.constant 0 : index
    %c0_24 = arith.constant 0 : index
    %23 = vector.load %arg3[%c0_23, %c0_24] : memref<1x128xf32, #tpu.memory_space<vmem>>, vector<1x128xf32>
    %24 = vector.broadcast %23 : vector<1x128xf32> to vector<2x128xf32>
    %25 = arith.addf %22, %24 : vector<2x128xf32>
    %26 = math.absf %25 : vector<2x128xf32>
    %cst_25 = arith.constant 0.000000e+00 : f32
    %27 = vector.broadcast %cst_25 : f32 to vector<2x128xf32>
    %28 = arith.subf %27, %26 : vector<2x128xf32>
    %29 = math.exp %28 : vector<2x128xf32>
    %cst_26 = arith.constant 1.000000e+00 : f32
    %30 = vector.broadcast %cst_26 : f32 to vector<2x128xf32>
    %31 = arith.addf %30, %29 : vector<2x128xf32>
    %32 = tpu.reciprocal %31 {approx = true} : vector<2x128xf32> -> vector<2x128xf32>
    %cst_27 = arith.constant 0.000000e+00 : f32
    %33 = vector.broadcast %cst_27 : f32 to vector<2x128xf32>
    %34 = arith.cmpf oge, %25, %33 : vector<2x128xf32>
    %cst_28 = arith.constant 1.000000e+00 : f32
    %35 = vector.broadcast %cst_28 : f32 to vector<2x128xf32>
    %36 = arith.subf %35, %32 : vector<2x128xf32>
    %37 = arith.select %34, %32, %36 : vector<2x128xi1>, vector<2x128xf32>
    %cst_29 = arith.constant 0.000000e+00 : f32
    %cst_30 = arith.constant 1.000000e+00 : f32
    %38 = vector.broadcast %cst_29 : f32 to vector<2x128xf32>
    %39 = arith.maximumf %38, %37 : vector<2x128xf32>
    %40 = vector.broadcast %cst_30 : f32 to vector<2x128xf32>
    %41 = arith.minimumf %40, %39 : vector<2x128xf32>
    %c0_31 = arith.constant 0 : index
    %c0_32 = arith.constant 0 : index
    %c0_33 = arith.constant 0 : index
    %42 = vector.load %arg4[%c0_31, %c0_32, %c0_33] : memref<1x2x128xf32, #tpu.memory_space<vmem>>, vector<1x2x128xf32>
    %43 = vector.shape_cast %42 : vector<1x2x128xf32> to vector<2x128xf32>
    %44 = vector.shape_cast %41 : vector<2x128xf32> to vector<1x2x128xf32>
    tpu.vector_store %arg4[%c0_31, %c0_32, %c0_33], %44 {strides = array<i32>} : memref<1x2x128xf32, #tpu.memory_space<vmem>>, vector<1x2x128xf32>,
    return
  }
  func.func @transform_0(%arg0: i32) -> (i32, i32, i32) {
    %c0_i32 = arith.constant 0 : i32
    %c0_i32_0 = arith.constant 0 : i32
    %c0_i32_1 = arith.constant 0 : i32
    return %arg0, %c0_i32, %c0_i32_0 : i32, i32, i32
  }
  func.func @transform_1(%arg0: i32) -> (i32, i32, i32) {
    %c0_i32 = arith.constant 0 : i32
    %c0_i32_0 = arith.constant 0 : i32
    %c0_i32_1 = arith.constant 0 : i32
    %c0_i32_2 = arith.constant 0 : i32
    return %c0_i32, %c0_i32_0, %c0_i32_1 : i32, i32, i32
  }
  func.func @transform_2(%arg0: i32) -> (i32, i32) {
    %c0_i32 = arith.constant 0 : i32
    %c0_i32_0 = arith.constant 0 : i32
    %c0_i32_1 = arith.constant 0 : i32
    return %c0_i32, %c0_i32_0 : i32, i32
  }
  func.func @transform_3(%arg0: i32) -> (i32, i32, i32) {
    %c0_i32 = arith.constant 0 : i32
    %c0_i32_0 = arith.constant 0 : i32
    %c0_i32_1 = arith.constant 0 : i32
    return %arg0, %c0_i32, %c0_i32_0 : i32, i32, i32
  }
}

</mosaic_0001>

<bundles_post_ra>
// kernel: simple_discriminator_forward.4
= control target key start
LH: loop header
LB: loop body
LE: loop exit
PB: predicated region body
PF: predicated region fallthrough
CT: control target
= control target key end

     0   :  { %8 = vsyncpa [#allocation3], 0  ;;  %s1199_s12 = smov 0   ;;  %s1436_s0 = inlined_call_operand.vmem [shape: bf16[2,88,12], index: 0, kind: input, shape index: {}]   ;;  %s1437_s1 = inlined_call_operand.vmem [shape: bf16[4,12,64], index: 1, kind: input, shape index: {}]   ;;  %s1438_s2 = inlined_call_operand.hbm [shape: f32[1,64], index: 2, kind: input, shape index: {}]   ;;  %s1439_s3 = inlined_call_operand.vmem [shape: bf16[2,72,64], index: 3, kind: output, shape index: {}]  }
   0x1 LB: > { %s1205_s13 = sadd.s32 4294967295, %s1174_s12   ;;  %p915_p0 = scmp.ge.s32.totalorder %s1174_s12, 1  ;;  %s1174_s12 = sphi %s1199_s12, %s14_s12  }
   0x2   : > { %p113_p1 = scmp.lt.s32.totalorder %s1174_s12, 3  ;;  %p1440_p3 = scmp.eq.s32.totalorder %s1205_s13, 0 }
   0x3   : > { %s1176_s15 = smov [#allocation2]   ;;  %s1136_s20 = scalar_lea.hbm %s1438_s2, 16 }
   0x4   : > { %p1209_p2 = pnand %p915_p0, %p113_p1  ;;  %s129_s16 = sshll.u32 %s1176_s15, 4  ;;  %s130_s16 = int_to_ptr.vmem [resolvable:$true] %s129_s16 }
   0x5   : > { %p1137_p6 = scmp.ne.s32.totalorder %s1438_s2, %s1136_s20  ;;  %p1143_p10 = scmp.lt.u32.totalorder %s1136_s20, %s1438_s2 }
   0x6   : > { %s1442_s14 = scalar_select %p1209_p2, 1, 0 }
   0x7   : > { %p1103_p4 = pneg %p1209_p2 }
   0x9   : > { %p1218_p5 = pnand %p1440_p3, %p1103_p4 }
   0xb   : > { %p1138_p7 = pneg %p1218_p5 }
   0xd   : > { %p1139_p8 = pnand %p1138_p7, %p1137_p6 }
   0xf   : > { %p1140_p9 = pneg %p1139_p8 }
  0x11   : > { %p1145_p11 = pnand %p1143_p10, %p1140_p9 }
  0x13   : > { %1148 = shalt.err (!%p1145_p11)
}
  0x14   : > { %s1149_s25 = scalar_lea.vmem %s130_s16, 16  ;;  %s1156_s26 = scalar_lea.vmem %s130_s16, 32 }
  0x15   : > { %p1150_p12 = scmp.ne.s32.totalorder %s130_s16, %s1149_s25  ;;  %p1157_p1 = scmp.lt.s32.totalorder %s130_s16, %s130_s16 }
  0x16   : > { %p1158_p4 = scmp.lt.s32.totalorder %s1156_s26, %s1149_s25 }
  0x17   : > { %p1152_p13 = pnand %p1150_p12, %p1138_p7 }
  0x18   : > { %p1159_p3 = por %p1158_p4, %p1157_p1 }
  0x19   : > { %p1153_p0 = pneg %p1152_p13 }
  0x1b   : > { %p1160_p2 = pnand %p1159_p3, %p1153_p0 }
  0x1d   : > { %1163 = shalt.err (!%p1160_p2)
}
  0x1e   : > { %1106 = dma.hbm_to_vmem [thread:$0]  (!%p1218_p5), %s1438_s2, 16, %s130_s16, [#allocation3]  }
  0x1f   : > { %p1444_p6 = scmp.ne.s32.totalorder %s1442_s14, 0 }
  0x20   : > { %p1445_p8 = scmp.eq.s32.totalorder (!%p1444_p6), %s1205_s13, 0 }
  0x21   : > { %150 = sbr.rel (%p1444_p6) target bundleno = 351 (0x15f), region = 32 }
  0x28   : > { %1169 = dma.done.wait (%p1445_p8), [#allocation3], 16   ;;  %p1446_p7 = pmov %p1445_p8 }
  0x29   : > { %p174_p9 = scmp.lt.s32.totalorder %s1205_s13, 1  ;;  %v1177_v0 = vmov 0.0   ;;  %vm1178_vm0 = vmmov 0   ;;  %vm286_vm1 = vcmask 1045504   ;;  %vm270_vm2 = vcmask 97280  }
  0x2a   : > { %1171 = vsyncadd (%p1446_p7), [#allocation3], 4294967280  ;;  %1009 = vmatprep.subr.bf16.mxu0 %v1177_v0  ;;  %1031 = vmatprep.subr.bf16.mxu1 %v1177_v0  ;;  %vm225_vm3 = vsmask.f32 7424  ;;  %v1120_v1 = vld [vmem:[%s1437_s1 + $0x8] sm:$0x3f]  }
  0x2b   : > { %1033 = vmatprep.mubr.msk.bf16.mxu1 %vm1178_vm0, %v1177_v0  ;;  %1011 = vmatprep.mubr.msk.bf16.mxu0 %vm1178_vm0, %v1177_v0  ;;  %s1448_s13 = smov (!%p174_p9, %s1205_s13), 1  ;;  %v1121_v2 = vld [vmem:[%s1437_s1] sm:$0x3f]   ;;  %v288_v3 = vsel %vm286_vm1, %v1120_v1, 0  ;;  %v1124_v10 = vld [vmem:[%s1437_s1 + $0x10] sm:$0x3f]  }
  0x2c   : > { %s1097_s29 = smul.u32 44, %s1448_s13  ;;  %1010 = vmatpush3.bf16.msra.mxu0 %v288_v3  ;;  %v380_v5 = vsel %vm286_vm1, %v1121_v2, 0  ;;  %v1125_v13 = vld [vmem:[%s1437_s1 + $0x18] sm:$0x3f]   ;;  %v552_v19 = vsel %vm286_vm1, %v1124_v10, 0  ;;  %vm642_vm4 = vcmask 1046528  }
  0x2d   : > { %1032 = vmatpush3.bf16.msra.mxu1 %v380_v5  ;;  %1053 = vmatprep.subr.bf16.mxu0 %v1177_v0  ;;  %v673_v17 = vsel %vm286_vm1, %v1125_v13, 0  ;;  %s1098_s16 = smul.u32 36, %s1448_s13  ;;  %vm836_vm6 = vcmask 519168  }
  0x2e   : > { %s1258_s5 = scalar_lea.vmem %s1436_s0, %s1097_s29  ;;  %1075 = vmatprep.subr.bf16.mxu1 %v1177_v0 }
  0x2f   : > { %v1122_v4 = vld [vmem:[%s1258_s5] sm:$0xff]   ;;  %v1123_v6 = vld [vmem:[%s1258_s5 + $0x8] sm:$0xff]   ;;  %v1126_v11 = vld [vmem:[%s1258_s5 + $0x10] sm:$0xff]   ;;  %s1400_s19 = scalar_lea.vmem %s1439_s3, %s1098_s16 }
  0x30   : > { %v227_v7 = vshrl.u32 %v1122_v4, 16  ;;  %v229_v8 = vshll.u32 %v1122_v4, 16  ;;  %v234_v9 = vshll.u32 %v1123_v6, 16  ;;  %1034 = vmatmul.mubr.msk.bf16.vlgmr.msra.gmra.mrb[0].mxu1 %vm270_vm2, %v1122_v4  ;;  %v238_v15 = vshrl.u32 %v1123_v6, 16  ;;  %v1127_v23 = vld [vmem:[%s1258_s5 + $0x18] sm:$0xff]   ;;  %v1131_v53 = vld [vmem:[%s1258_s5 + $0xc] sm:$0xff]  }
  0x31   : > { %1037 = vmatprep.mubr.msk.bf16.mxu1 %vm1178_vm0, %v1177_v0  ;;  %v242_v18 = vshll.u32 %v1126_v11, 16  ;;  %1076 = vmatpush3.bf16.msra.mxu1 %v673_v17  ;;  %v1291_v24 = vld [vmem:[%s1258_s5 + $0x1c] sm:$0xff]   ;;  %v246_v26 = vshrl.u32 %v1126_v11, 16  ;;  %v250_v27 = vshll.u32 %v1127_v23, 16  ;;  %v196_v29 = vld [vmem:[%s1258_s5 + $0x24] sm:$0x1] }
  0x32   : > { %v231_v12 = vrot.slane %v229_v8, 1  ;;  %v236_v14 = vrot.slane %v234_v9, 1  ;;  %v193_v28 = vld [vmem:[%s1258_s5 + $0x20] sm:$0xf]  ;;  %v1299_v30 = vld [vmem:[%s1258_s5 + $0x24] sm:$0x1f]  }
  0x33   : > { %v244_v22 = vrot.slane %v242_v18, 1  ;;  %v516_v31 = vshll.u32 %v1291_v24, 16  ;;  %v520_v32 = vshrl.u32 %v1291_v24, 16  ;;  %v252_v34 = vrot.slane %v250_v27, 1  ;;  %v454_v46 = vld [vmem:[%s1258_s5 + $0x4] sm:$0xf] }
  0x34   : > { %v232_v16 = vor.u32 %v231_v12, %v227_v7  ;;  %v240_v21 = vor.u32 %v238_v15, %v236_v14  ;;  %v928_v35 = vcombine.low %v193_v28, %v196_v29  ;;  %v524_v36 = vshll.u32 %v1299_v30, 16  ;;  %v455_v47 = vld [vmem:[%s1258_s5 + $0x8] sm:$0xf]  ;;  %v635_v50 = vld [vmem:[%s1258_s5 + $0x4] sm:$0xe]  ;;  %v1133_v2 = vld [vmem:[%s1258_s5 + $0x14] sm:$0xff]  }
  0x35   : > { %v248_v33 = vor.u32 %v246_v26, %v244_v22  ;;  %v1307_v37 = vrot.slane %v516_v31, 1  ;;  %v254_v41 = vshrl.u32 %v1127_v23, 16  ;;  %v944_v49 = vcombine.low %v454_v46, %v455_v47 }
  0x36   : > { %v237_v20 = vsel %vm225_vm3, %v232_v16, %v236_v14  ;;  %v245_v25 = vsel %vm225_vm3, %v240_v21, %v244_v22  ;;  %v1309_v38 = vrot.slane %v524_v36, 1  ;;  %v258_v42 = vshll.u32 %v928_v35, 16 }
  0x37   : > { %1012 = vmatmul.mubr.msk.bf16.vlgmr.msra.gmra.mrb[0].mxu0 %vm270_vm2, %v237_v20  ;;  %v522_v39 = vor.u32 %v520_v32, %v1307_v37  ;;  %v253_v40 = vsel %vm225_vm3, %v248_v33, %v252_v34  ;;  %v256_v44 = vor.u32 %v254_v41, %v252_v34  ;;  %v935_v51 = vcombine.low %v193_v28, %v193_v28 }
  0x38   : > { %1054 = vmatpush3.bf16.msra.mxu0 %v552_v19  ;;  %1015 = vmatprep.mubr.msk.bf16.mxu0 %vm1178_vm0, %v1177_v0  ;;  %v260_v45 = vrot.slane %v258_v42, 1  ;;  %v262_v52 = vshrl.u32 %v928_v35, 16  ;;  %v957_v54 = vcombine.low %v635_v50, %v455_v47  ;;  %v495_v55 = vshll.u32 %v944_v49, 16 }
  0x39   : > { %1038 = vmatmul.mubr.msk.bf16.gmra.mrb[4].mxu1 %vm270_vm2, %v1123_v6  ;;  %v1318_v43 = vsel %vm225_vm3, %v522_v39, %v1309_v38  ;;  %v644_v57 = vrot.slane %v1131_v53, 1  ;;  %v493_v59 = vshrl.u32 %v944_v49, 16  ;;  %v500_v61 = vshll.u32 %v1131_v53, 16 }
  0x3a   : > { %1041 = vmatprep.mubr.msk.bf16.mxu1 %vm1178_vm0, %v1177_v0  ;;  %v261_v48 = vsel %vm225_vm3, %v256_v44, %v260_v45  ;;  %v264_v56 = vor.u32 %v262_v52, %v260_v45  ;;  %v643_v58 = vrot.slane %v957_v54, 1  ;;  %v497_v60 = vrot.slane %v495_v55, 1 }
  0x3b   : > { %v502_v1 = vrot.slane %v500_v61, 1  ;;  %v646_v4 = vrot.slane %v1133_v2, 1  ;;  %v504_v5 = vshrl.u32 %v1131_v53, 16  ;;  %v508_v6 = vshll.u32 %v1133_v2, 16 }
  0x3c   : > { %v645_v62 = vsel %vm642_vm4, %v643_v58, %v644_v57  ;;  %v498_v63 = vor.u32 %v497_v60, %v493_v59  ;;  %v512_v12 = vshrl.u32 %v1133_v2, 16  ;;  %v650_v16 = vrot.slane %v1299_v30, 1 }
  0x3d   : > { %v647_v7 = vsel %vm642_vm4, %v644_v57, %v646_v4  ;;  %v506_v8 = vor.u32 %v504_v5, %v502_v1  ;;  %v510_v9 = vrot.slane %v508_v6, 1  ;;  %v528_v18 = vshrl.u32 %v1299_v30, 16 }
  0x3e   : > { %v503_v3 = vsel %vm225_vm3, %v498_v63, %v502_v1 }
  0x3f   : > { %1016 = vmatmul.mubr.msk.bf16.gmra.mrb[4].mxu0 %vm270_vm2, %v245_v25  ;;  %v511_v10 = vsel %vm225_vm3, %v506_v8, %v510_v9  ;;  %v514_v14 = vor.u32 %v512_v12, %v510_v9  ;;  %v530_v19 = vor.u32 %v528_v18, %v1309_v38  ;;  %v1392_v12 = vld [vmem:[#allocation2] ss:$0 sm:$0xff] }
  0x40   : > { %1019 = vmatprep.mubr.msk.bf16.mxu0 %vm1178_vm0, %v1177_v0 }
  0x41   : > { %1042 = vmatmul.mubr.msk.bf16.gmra.mrb[8].mxu1 %vm270_vm2, %v1126_v11  ;;  %v648_v11 = vrot.slane %v1291_v24, 1  ;;  %v519_v15 = vsel %vm225_vm3, %v514_v14, %v1307_v37 }
  0x42   : > { %1045 = vmatprep.mubr.msk.bf16.mxu1 %vm1178_vm0, %v1177_v0 }
  0x43   : > { %v649_v13 = vsel %vm642_vm4, %v646_v4, %v648_v11  ;;  %v651_v17 = vsel %vm642_vm4, %v648_v11, %v650_v16 }
  0x47   : > { %1020 = vmatmul.mubr.msk.bf16.gmra.mrb[8].mxu0 %vm270_vm2, %v253_v40 }
  0x48   : > { %1023 = vmatprep.mubr.msk.bf16.mxu0 %vm1178_vm0, %v1177_v0 }
  0x49   : > { %1046 = vmatmul.mubr.msk.bf16.gmra.mrb[12].mxu1 %vm270_vm2, %v1127_v23 }
  0x4a   : > { %1049 = vmatprep.mubr.msk.bf16.mxu1 %vm1178_vm0, %v1177_v0 }
  0x4f   : > { %1024 = vmatmul.mubr.msk.bf16.gmra.mrb[12].mxu0 %vm270_vm2, %v261_v48 }
  0x50   : > { %1027 = vmatprep.mubr.msk.bf16.mxu0 %vm1178_vm0, %v1177_v0 }
  0x51   : > { %1050 = vmatmul.mubr.msk.bf16.gmra.mrb[16].mxu1 %vm270_vm2, %v935_v51 }
  0x52   : > { %1077 = vmatprep.mubr.msk.bf16.mxu1 %vm1178_vm0, %v1177_v0 }
  0x57   : > { %1028 = vmatmul.mubr.msk.bf16.gmra.mrb[16].mxu0 %vm270_vm2, %v264_v56 }
  0x58   : > { %1055 = vmatprep.mubr.msk.bf16.mxu0 %vm1178_vm0, %v1177_v0 }
  0x59   : > { %1078 = vmatmul.mubr.msk.bf16.vlgmr.msra.gmra.mrb[20].mxu1 %vm270_vm2, %v645_v62 }
  0x5a   : > { %1081 = vmatprep.mubr.msk.bf16.mxu1 %vm1178_vm0, %v1177_v0 }
  0x5f   : > { %1056 = vmatmul.mubr.msk.bf16.vlgmr.msra.gmra.mrb[20].mxu0 %vm270_vm2, %v503_v3 }
  0x60   : > { %1059 = vmatprep.mubr.msk.bf16.mxu0 %vm1178_vm0, %v1177_v0 }
  0x61   : > { %1082 = vmatmul.mubr.msk.bf16.gmra.mrb[24].mxu1 %vm270_vm2, %v647_v7 }
  0x62   : > { %1085 = vmatprep.mubr.msk.bf16.mxu1 %vm1178_vm0, %v1177_v0 }
  0x67   : > { %1060 = vmatmul.mubr.msk.bf16.gmra.mrb[24].mxu0 %vm270_vm2, %v511_v10 }
  0x68   : > { %1063 = vmatprep.mubr.msk.bf16.mxu0 %vm1178_vm0, %v1177_v0 }
  0x69   : > { %1086 = vmatmul.mubr.msk.bf16.gmra.mrb[28].mxu1 %vm270_vm2, %v649_v13 }
  0x6a   : > { %1089 = vmatprep.mubr.msk.bf16.mxu1 %vm1178_vm0, %v1177_v0 }
  0x6f   : > { %1064 = vmatmul.mubr.msk.bf16.gmra.mrb[28].mxu0 %vm270_vm2, %v519_v15 }
  0x70   : > { %1067 = vmatprep.mubr.msk.bf16.mxu0 %vm1178_vm0, %v1177_v0 }
  0x71   : > { %1090 = vmatmul.mubr.msk.bf16.gmra.mrb[32].mxu1 %vm270_vm2, %v651_v17 }
  0x72   : > { %1093 = vmatprep.mubr.msk.bf16.mxu1 %vm1178_vm0, %v1177_v0 }
  0x77   : > { %1068 = vmatmul.mubr.msk.bf16.gmra.mrb[32].mxu0 %vm270_vm2, %v1318_v43 }
  0x78   : > { %1071 = vmatprep.mubr.msk.bf16.mxu0 %vm1178_vm0, %v1177_v0 }
  0x79   : > { %1094 = vmatmul.mubr.msk.bf16.gmra.mrb[36].mxu1 %vm270_vm2, %v650_v16 }
  0x7f   : > { %1072 = vmatmul.mubr.msk.bf16.gmra.mrb[36].mxu0 %vm270_vm2, %v530_v19 }
 0x103   : > { %v416_v20 = vpop.f32.mrb[0].mxu1 }
 0x104   : > { %v1035_v21 = vpop.f32.mrb[1].mxu1 }
 0x105   : > { %v419_v22 = vpop.f32.mrb[2].mxu1 }
 0x106   : > { %v1036_v23 = vpop.f32.mrb[3].mxu1 }
 0x10a   : > { %v324_v24 = vpop.f32.mrb[0].mxu0 }
 0x10b   : > { %v417_v25 = vadd.f32 %v416_v20, %v324_v24  ;;  %v1013_v26 = vpop.f32.mrb[1].mxu0 }
 0x10c   : > { %v327_v27 = vpop.f32.mrb[2].mxu0  ;;  %v424_v30 = vpop.f32.mrb[4].mxu1 }
 0x10d   : > { %v420_v28 = vadd.f32 %v419_v22, %v327_v27  ;;  %v1014_v29 = vpop.f32.mrb[3].mxu0  ;;  %v1039_v31 = vpop.f32.mrb[5].mxu1 }
 0x10e   : > { %v427_v32 = vpop.f32.mrb[6].mxu1 }
 0x10f   : > { %v1040_v0 = vpop.f32.mrb[7].mxu1 }
 0x112   : > { %v332_v33 = vpop.f32.mrb[4].mxu0 }
 0x113   : > { %v425_v34 = vadd.f32 %v424_v30, %v332_v33  ;;  %v1017_v35 = vpop.f32.mrb[5].mxu0 }
 0x114   : > { %v335_v36 = vpop.f32.mrb[6].mxu0  ;;  %v432_v39 = vpop.f32.mrb[8].mxu1 }
 0x115   : > { %v1380_v37 = vadd.f32 %v427_v32, %v335_v36  ;;  %v1018_v38 = vpop.f32.mrb[7].mxu0  ;;  %v1043_v40 = vpop.f32.mrb[9].mxu1 }
 0x116   : > { %v435_v41 = vpop.f32.mrb[10].mxu1 }
 0x117   : > { %v1044_v42 = vpop.f32.mrb[11].mxu1 }
 0x11a   : > { %v340_v43 = vpop.f32.mrb[8].mxu0 }
 0x11b   : > { %v1382_v44 = vadd.f32 %v432_v39, %v340_v43  ;;  %v1021_v45 = vpop.f32.mrb[9].mxu0 }
 0x11c   : > { %v343_v46 = vpop.f32.mrb[10].mxu0  ;;  %v440_v49 = vpop.f32.mrb[12].mxu1 }
 0x11d   : > { %v1384_v47 = vadd.f32 %v435_v41, %v343_v46  ;;  %v1022_v48 = vpop.f32.mrb[11].mxu0  ;;  %v1047_v50 = vpop.f32.mrb[13].mxu1 }
 0x11e   : > { %v443_v51 = vpop.f32.mrb[14].mxu1 }
 0x11f   : > { %v1048_v52 = vpop.f32.mrb[15].mxu1 }
 0x122   : > { %v348_v53 = vpop.f32.mrb[12].mxu0 }
 0x123   : > { %v1386_v54 = vadd.f32 %v440_v49, %v348_v53  ;;  %v1025_v55 = vpop.f32.mrb[13].mxu0 }
 0x124   : > { %v351_v56 = vpop.f32.mrb[14].mxu0  ;;  %v448_v59 = vpop.f32.mrb[16].mxu1 }
 0x125   : > { %v1388_v57 = vadd.f32 %v443_v51, %v351_v56  ;;  %v1026_v58 = vpop.f32.mrb[15].mxu0  ;;  %v1051_v60 = vpop.f32.mrb[17].mxu1 }
 0x126   : > { %v451_v61 = vpop.f32.mrb[18].mxu1 }
 0x127   : > { %v1052_v62 = vpop.f32.mrb[19].mxu1 }
 0x12a   : > { %v356_v63 = vpop.f32.mrb[16].mxu0 }
 0x12b   : > { %v1390_v1 = vadd.f32 %v448_v59, %v356_v63  ;;  %v1029_v2 = vpop.f32.mrb[17].mxu0 }
 0x12c   : > { %v359_v3 = vpop.f32.mrb[18].mxu0  ;;  %v709_v5 = vpop.f32.mrb[20].mxu1 }
 0x12d   : > { %v1030_v4 = vpop.f32.mrb[19].mxu0  ;;  %v1079_v6 = vpop.f32.mrb[21].mxu1 }
 0x12e   : > { %v712_v7 = vpop.f32.mrb[22].mxu1 }
 0x12f   : > { %v1080_v8 = vpop.f32.mrb[23].mxu1 }
 0x132   : > { %v588_v9 = vpop.f32.mrb[20].mxu0 }
 0x133   : > { %v626_v10 = vadd.f32 %v588_v9, %v417_v25  ;;  %v1057_v11 = vpop.f32.mrb[21].mxu0 }
 0x134   : > { %v591_v13 = vpop.f32.mrb[22].mxu0  ;;  %v717_v17 = vpop.f32.mrb[24].mxu1 }
 0x135   : > { %v747_v14 = vadd.f32 %v709_v5, %v626_v10  ;;  %v627_v15 = vadd.f32 %v591_v13, %v420_v28  ;;  %v1058_v16 = vpop.f32.mrb[23].mxu0  ;;  %v1083_v20 = vpop.f32.mrb[25].mxu1 }
 0x136   : > { %v720_v21 = vpop.f32.mrb[26].mxu1 }
 0x137   : > { %v763_v18 = vadd.f32 %v1392_v12, %v747_v14  ;;  %v748_v19 = vadd.f32 %v712_v7, %v627_v15  ;;  %v1084_v24 = vpop.f32.mrb[27].mxu1 }
 0x139   : > { %vm772_vm5 = vcmp.ge.f32.partialorder %v763_v18, 0.0  ;;  %v781_v22 = vmul.f32 0.2, %v763_v18  ;;  %v764_v23 = vadd.f32 %v1392_v12, %v748_v19 }
 0x13a   : > { %v596_v25 = vpop.f32.mrb[24].mxu0 }
 0x13b   : > { %v790_v26 = vsel %vm772_vm5, %v763_v18, %v781_v22  ;;  %vm773_vm7 = vcmp.ge.f32.partialorder %v764_v23, 0.0  ;;  %v782_v27 = vmul.f32 0.2, %v764_v23  ;;  %v628_v28 = vadd.f32 %v596_v25, %v425_v34  ;;  %v1061_v29 = vpop.f32.mrb[25].mxu0 }
 0x13c   : > { %v976_v30 = vpack.c.bf16 %v790_v26, %v790_v26  ;;  %v599_v31 = vpop.f32.mrb[26].mxu0  ;;  %v725_v38 = vpop.f32.mrb[28].mxu1 }
 0x13d   : > { %v791_v32 = vsel %vm773_vm7, %v764_v23, %v782_v27  ;;  %v749_v0 = vadd.f32 %v717_v17, %v628_v28  ;;  %v629_v33 = vadd.f32 %v599_v31, %v1380_v37  ;;  %v1062_v35 = vpop.f32.mrb[27].mxu0  ;;  %v1087_v41 = vpop.f32.mrb[29].mxu1 }
 0x13e   : > { %837 = vst.msk [vmem:[%s1400_s19] sm:$0xf] %vm836_vm6, %v976_v30  ;;  %v977_v36 = vpack.c.bf16 %v791_v32, %v791_v32  ;;  %v728_v42 = vpop.f32.mrb[30].mxu1 }
 0x13f   : > { %v765_v39 = vadd.f32 %v1392_v12, %v749_v0  ;;  %v750_v40 = vadd.f32 %v720_v21, %v629_v33  ;;  %v1088_v45 = vpop.f32.mrb[31].mxu1 }
 0x140   : > { %838 = vst.msk [vmem:[%s1400_s19 + $0x4] sm:$0xf] %vm836_vm6, %v977_v36 }
 0x141   : > { %vm774_vm8 = vcmp.ge.f32.partialorder %v765_v39, 0.0  ;;  %v783_v34 = vmul.f32 0.2, %v765_v39  ;;  %v766_v43 = vadd.f32 %v1392_v12, %v750_v40 }
 0x142   : > { %v604_v46 = vpop.f32.mrb[28].mxu0 }
 0x143   : > { %v792_v37 = vsel %vm774_vm8, %v765_v39, %v783_v34  ;;  %vm775_vm9 = vcmp.ge.f32.partialorder %v766_v43, 0.0  ;;  %v784_v48 = vmul.f32 0.2, %v766_v43  ;;  %v630_v49 = vadd.f32 %v604_v46, %v1382_v44  ;;  %v1065_v50 = vpop.f32.mrb[29].mxu0 }
 0x144   : > { %v978_v51 = vpack.c.bf16 %v792_v37, %v792_v37  ;;  %v607_v52 = vpop.f32.mrb[30].mxu0  ;;  %v733_v60 = vpop.f32.mrb[32].mxu1 }
 0x145   : > { %v793_v53 = vsel %vm775_vm9, %v766_v43, %v784_v48  ;;  %v751_v55 = vadd.f32 %v725_v38, %v630_v49  ;;  %v631_v56 = vadd.f32 %v607_v52, %v1384_v47  ;;  %v1066_v58 = vpop.f32.mrb[31].mxu0  ;;  %v1091_v63 = vpop.f32.mrb[33].mxu1 }
 0x146   : > { %839 = vst.msk [vmem:[%s1400_s19 + $0x8] sm:$0xf] %vm836_vm6, %v978_v51  ;;  %v979_v59 = vpack.c.bf16 %v793_v53, %v793_v53  ;;  %v736_v2 = vpop.f32.mrb[34].mxu1 }
 0x147   : > { %v767_v61 = vadd.f32 %v1392_v12, %v751_v55  ;;  %v752_v62 = vadd.f32 %v728_v42, %v631_v56  ;;  %v1092_v4 = vpop.f32.mrb[35].mxu1 }
 0x148   : > { %840 = vst.msk [vmem:[%s1400_s19 + $0xc] sm:$0xf] %vm836_vm6, %v979_v59 }
 0x149   : > { %vm776_vm10 = vcmp.ge.f32.partialorder %v767_v61, 0.0  ;;  %v785_v44 = vmul.f32 0.2, %v767_v61  ;;  %v768_v3 = vadd.f32 %v1392_v12, %v752_v62 }
 0x14a   : > { %v612_v5 = vpop.f32.mrb[32].mxu0 }
 0x14b   : > { %v794_v47 = vsel %vm776_vm10, %v767_v61, %v785_v44  ;;  %vm777_vm11 = vcmp.ge.f32.partialorder %v768_v3, 0.0  ;;  %v786_v6 = vmul.f32 0.2, %v768_v3  ;;  %v632_v7 = vadd.f32 %v612_v5, %v1386_v54  ;;  %v1069_v8 = vpop.f32.mrb[33].mxu0 }
 0x14c   : > { %v980_v9 = vpack.c.bf16 %v794_v47, %v794_v47  ;;  %v615_v10 = vpop.f32.mrb[34].mxu0  ;;  %v741_v17 = vpop.f32.mrb[36].mxu1 }
 0x14d   : > { %v795_v11 = vsel %vm777_vm11, %v768_v3, %v786_v6  ;;  %v753_v13 = vadd.f32 %v733_v60, %v632_v7  ;;  %v633_v14 = vadd.f32 %v615_v10, %v1388_v57  ;;  %v1070_v15 = vpop.f32.mrb[35].mxu0  ;;  %v1095_v20 = vpop.f32.mrb[37].mxu1 }
 0x14e   : > { %841 = vst.msk [vmem:[%s1400_s19 + $0x10] sm:$0xf] %vm836_vm6, %v980_v9  ;;  %v981_v16 = vpack.c.bf16 %v795_v11, %v795_v11  ;;  %v744_v21 = vpop.f32.mrb[38].mxu1 }
 0x14f   : > { %v769_v18 = vadd.f32 %v1392_v12, %v753_v13  ;;  %v754_v19 = vadd.f32 %v736_v2, %v633_v14  ;;  %v1096_v23 = vpop.f32.mrb[39].mxu1 }
 0x150   : > { %842 = vst.msk [vmem:[%s1400_s19 + $0x14] sm:$0xf] %vm836_vm6, %v981_v16 }
 0x151   : > { %vm778_vm12 = vcmp.ge.f32.partialorder %v769_v18, 0.0  ;;  %v787_v54 = vmul.f32 0.2, %v769_v18  ;;  %v770_v22 = vadd.f32 %v1392_v12, %v754_v19 }
 0x152   : > { %v620_v57 = vpop.f32.mrb[36].mxu0 }
 0x153   : > { %v796_v24 = vsel %vm778_vm12, %v769_v18, %v787_v54  ;;  %vm779_vm13 = vcmp.ge.f32.partialorder %v770_v22, 0.0  ;;  %v788_v25 = vmul.f32 0.2, %v770_v22  ;;  %v634_v26 = vadd.f32 %v620_v57, %v1390_v1  ;;  %v1073_v27 = vpop.f32.mrb[37].mxu0 }
 0x154   : > { %v982_v28 = vpack.c.bf16 %v796_v24, %v796_v24  ;;  %v623_v29 = vpop.f32.mrb[38].mxu0 }
 0x155   : > { %v797_v30 = vsel %vm779_vm13, %v770_v22, %v788_v25  ;;  %v755_v31 = vadd.f32 %v741_v17, %v634_v26  ;;  %v1074_v32 = vpop.f32.mrb[39].mxu0 }
 0x156   : > { %843 = vst.msk [vmem:[%s1400_s19 + $0x18] sm:$0xf] %vm836_vm6, %v982_v28  ;;  %v983_v0 = vpack.c.bf16 %v797_v30, %v797_v30 }
 0x157   : > { %v771_v33 = vadd.f32 %v1392_v12, %v755_v31 }
 0x158   : > { %844 = vst.msk [vmem:[%s1400_s19 + $0x1c] sm:$0xf] %vm836_vm6, %v983_v0 }
 0x159   : > { %vm780_vm14 = vcmp.ge.f32.partialorder %v771_v33, 0.0  ;;  %v789_v35 = vmul.f32 0.2, %v771_v33 }
 0x15b   : > { %v798_v36 = vsel %vm780_vm14, %v771_v33, %v789_v35 }
 0x15c   : > { %v984_v38 = vpack.c.bf16 %v798_v36, %v798_v36 }
 0x15e   : > { %845 = vst.msk [vmem:[%s1400_s19 + $0x20] sm:$0xf] %vm836_vm6, %v984_v38 }
 0x15f PF: > { %s14_s12 = sadd.s32 1, %s1174_s12  }
 0x160   : > { %p11_p2 = scmp.ge.s32.totalorder %s14_s12, 4  }
 0x162   :  { %13 = sbr.rel (!%p11_p2) target bundleno = 1 (0x1), region = 70 }
 0x169   :  { %867 = vsyncpa [#allocation3], 1 }
 0x16a   :  { %869 = vsyncpa [#allocation3 + $0x1], 1 }

// kernel: simple_discriminator_forward.5
= control target key start
LH: loop header
LB: loop body
LE: loop exit
PB: predicated region body
PF: predicated region fallthrough
CT: control target
= control target key end

     0   :  { %s1736_s21 = smov 0   ;;  %s1997_s0 = inlined_call_operand.vmem [shape: bf16[2,32,256], index: 0, kind: input, shape index: {}]   ;;  %s1998_s1 = inlined_call_operand.vmem [shape: bf16[4,256,128], index: 1, kind: input, shape index: {}]   ;;  %s1999_s2 = inlined_call_operand.vmem [shape: f32[1,128], index: 2, kind: input, shape index: {}]   ;;  %s2000_s3 = inlined_call_operand.vmem [shape: f32[20,1], index: 3, kind: input, shape index: {}]   ;;  %s2001_s4 = inlined_call_operand.vmem [shape: bf16[2,20,128], index: 4, kind: output, shape index: {0}]   ;;  %s2002_s5 = inlined_call_operand.vmem [shape: f32[2,1,128], index: 5, kind: output, shape index: {1}]   ;;  %s2003_s6 = inlined_call_operand.vmem [shape: f32[2,1,128], index: 6, kind: output, shape index: {2}]  }
   0x1 LB: > { %s1296_s22 = sadd.s32 4294967295, %s1698_s21   ;;  %p1300_p0 = scmp.ge.s32.totalorder %s1698_s21, 1  ;;  %s1698_s21 = sphi %s1736_s21, %s17_s21  }
   0x2   : > { %p217_p1 = scmp.lt.s32.totalorder %s1698_s21, 3 }
   0x4   : > { %p218_p2 = pnand %p1300_p0, %p217_p1 }
   0x5   : > { %v1615_v0 = vld [vmem:[%s1998_s1 + $0xc0] sm:$0xff] (!%p218_p2)   ;;  %v1619_v4 = vld [vmem:[%s1998_s1 + $0xc8] sm:$0xff] (!%p218_p2)   ;;  %v1700_v5 = vmov (!%p218_p2), 0   ;;  %v1623_v9 = vld [vmem:[%s1998_s1 + $0xd0] sm:$0xff] (!%p218_p2)   ;;  %p253_p3 = scmp.lt.s32.totalorder (!%p218_p2), %s1296_s22, 1  ;;  %vm962_vm1 = vcmask (!%p218_p2), 1044480  }
   0x6   : > { %221 = sbr.rel (%p218_p2) target bundleno = 320 (0x140), region = 36  ;;  %v1616_v1 = vld [vmem:[%s1998_s1 + $0x40] sm:$0xff] (!%p218_p2)   ;;  %1491 = vmatprep.subr.bf16.mxu0 (!%p218_p2), %v1615_v0  ;;  %1613 = vset.pattern.permute.xlu0 (!%p218_p2), %v1700_v5  ;;  %v1620_v6 = vld [vmem:[%s1998_s1 + $0x48] sm:$0xff] (!%p218_p2)   ;;  %v1624_v10 = vld [vmem:[%s1998_s1 + $0x50] sm:$0xff] (!%p218_p2)   ;;  %vm352_vm0 = vsmask.f32 (!%p218_p2), 7424 }
   0x7   : > { %v1617_v2 = vld [vmem:[%s1998_s1 + $0x80] sm:$0xff] (!%p218_p2)   ;;  %1519 = vmatprep.subr.bf16.mxu1 (!%p218_p2), %v1616_v1  ;;  %1614 = vset.pattern.permute.xlu1 (!%p218_p2), %v1700_v5  ;;  %v1621_v7 = vld [vmem:[%s1998_s1 + $0x88] sm:$0xff] (!%p218_p2)   ;;  %v1625_v11 = vld [vmem:[%s1998_s1 + $0x90] sm:$0xff] (!%p218_p2)   ;;  %vm737_vm2 = vsmask.f32 (!%p218_p2), 5376  ;;  %vm1168_vm3 = vcmask (!%p218_p2), 1043456  }
   0x8   : > { %v1618_v3 = vld [vmem:[%s1998_s1] sm:$0xff] (!%p218_p2)   ;;  %1492 = vmatpush3.bf16.msra.mxu0 (!%p218_p2), %v1617_v2  ;;  %v1622_v8 = vld [vmem:[%s1998_s1 + $0x8] sm:$0xff] (!%p218_p2)   ;;  %v1626_v12 = vld [vmem:[%s1998_s1 + $0x10] sm:$0xff] (!%p218_p2)  }
   0x9   : > { %1520 = vmatpush3.bf16.msra.mxu1 (!%p218_p2), %v1618_v3  ;;  %1493 = vmatprep.subr.bf16.mxu0 (!%p218_p2), %v1619_v4  ;;  %v1627_v13 = vld [vmem:[%s1998_s1 + $0xd8] sm:$0xff] (!%p218_p2)   ;;  %v1631_v17 = vld [vmem:[%s1998_s1 + $0xe0] sm:$0xff] (!%p218_p2)   ;;  %v1635_v21 = vld [vmem:[%s1998_s1 + $0xe8] sm:$0xff] (!%p218_p2)  }
   0xa   : > { %1521 = vmatprep.subr.bf16.mxu1 (!%p218_p2), %v1620_v6  ;;  %v1628_v14 = vld [vmem:[%s1998_s1 + $0x58] sm:$0xff] (!%p218_p2)   ;;  %v1632_v18 = vld [vmem:[%s1998_s1 + $0x60] sm:$0xff] (!%p218_p2)   ;;  %v1636_v22 = vld [vmem:[%s1998_s1 + $0x68] sm:$0xff] (!%p218_p2)  }
   0xb   : > { %v1629_v15 = vld [vmem:[%s1998_s1 + $0x98] sm:$0xff] (!%p218_p2)   ;;  %v1633_v19 = vld [vmem:[%s1998_s1 + $0xa0] sm:$0xff] (!%p218_p2)   ;;  %v1637_v23 = vld [vmem:[%s1998_s1 + $0xa8] sm:$0xff] (!%p218_p2)  }
   0xc   : > { %1494 = vmatpush3.bf16.msra.mxu0 (!%p218_p2), %v1621_v7  ;;  %v1630_v16 = vld [vmem:[%s1998_s1 + $0x18] sm:$0xff] (!%p218_p2)   ;;  %v1634_v20 = vld [vmem:[%s1998_s1 + $0x20] sm:$0xff] (!%p218_p2)   ;;  %v1638_v24 = vld [vmem:[%s1998_s1 + $0x28] sm:$0xff] (!%p218_p2)  }
   0xd   : > { %1522 = vmatpush3.bf16.msra.mxu1 %v1622_v8  ;;  %1495 = vmatprep.subr.bf16.mxu0 %v1623_v9  ;;  %s2005_s22 = smov (!%p253_p3, %s1296_s22), 1  ;;  %v1639_v25 = vld [vmem:[%s1998_s1 + $0xf0] sm:$0xff]   ;;  %v1643_v29 = vld [vmem:[%s1998_s1 + $0xf8] sm:$0xff]   ;;  %v1651_v40 = vld [vmem:[%s1998_s1 + $0x140] sm:$0xff]  }
   0xe   : > { %1523 = vmatprep.subr.bf16.mxu1 %v1624_v10  ;;  %v1640_v26 = vld [vmem:[%s1998_s1 + $0x70] sm:$0xff]   ;;  %s1482_s9 = sshll.u32 %s2005_s22, 5  ;;  %v1644_v30 = vld [vmem:[%s1998_s1 + $0x78] sm:$0xff]   ;;  %v1652_v41 = vld [vmem:[%s1998_s1 + $0x1c0] sm:$0xff]   ;;  %s265_s15 = scalar_lea.vmem %s2002_s5, %s2005_s22 }
   0xf   : > { %v1641_v27 = vld [vmem:[%s1998_s1 + $0xb0] sm:$0xff]   ;;  %s1844_s18 = scalar_lea.vmem %s1997_s0, %s1482_s9  ;;  %v1645_v31 = vld [vmem:[%s1998_s1 + $0xb8] sm:$0xff]   ;;  %v1654_v48 = vld [vmem:[%s1998_s1 + $0x180] sm:$0xff]   ;;  %s1603_s9 = smul.u32 12, %s2005_s22 }
  0x10   : > { %1496 = vmatpush3.bf16.msra.mxu0 %v1625_v11  ;;  %v1642_v28 = vld [vmem:[%s1998_s1 + $0x30] sm:$0xff]   ;;  %v1646_v32 = vld [vmem:[%s1998_s1 + $0x38] sm:$0xff]   ;;  %v270_v33 = vld [vmem:[%s1844_s18] sm:$0xff]  ;;  %s268_s19 = scalar_lea.vmem %s2003_s6, %s2005_s22 }
  0x11   : > { %1524 = vmatpush3.bf16.msra.mxu1 %v1626_v12  ;;  %1497 = vmatprep.subr.bf16.mxu0 %v1627_v13  ;;  %v1854_v34 = vld [vmem:[%s1844_s18 + $0x8] sm:$0xff]  ;;  %v305_v35 = vld [vmem:[%s1844_s18 + $0x10] sm:$0x77]  ;;  %v1653_v54 = vld [vmem:[%s1998_s1 + $0x100] sm:$0xff]   ;;  %s262_s12 = scalar_lea.vmem %s2001_s4, %s1603_s9 }
  0x12   : > { %1525 = vmatprep.subr.bf16.mxu1 %v1628_v14  ;;  %v1337_v36 = vcombine.high %v270_v33, %v1854_v34  ;;  %v1339_v37 = vcombine.high %v305_v35, %v305_v35  ;;  %v1336_v38 = vcombine.low %v270_v33, %v1854_v34  ;;  %v1338_v39 = vcombine.low %v305_v35, %v305_v35  ;;  %v1656_v57 = vld [vmem:[%s1998_s1 + $0x1c8] sm:$0xff]   ;;  %v1660_v1 = vld [vmem:[%s1998_s1 + $0x1d0] sm:$0xff]   ;;  %v1664_v6 = vld [vmem:[%s1998_s1 + $0x1d8] sm:$0xff]  }
  0x13   : > { %v1655_v59 = vld [vmem:[%s1998_s1 + $0x148] sm:$0xff]   ;;  %v1659_v2 = vld [vmem:[%s1998_s1 + $0x150] sm:$0xff]   ;;  %v1663_v7 = vld [vmem:[%s1998_s1 + $0x158] sm:$0xff]  }
  0x14   : > { %1498 = vmatpush3.bf16.msra.mxu0 %v1629_v15  ;;  %v366_v42 = vshrl.u32 %v1337_v36, 16  ;;  %v368_v43 = vshll.u32 %v1337_v36, 16  ;;  %v373_v44 = vshll.u32 %v1339_v37, 16  ;;  %668 = vmatprep.mubr.bf16.mxu1 %v1337_v36  ;;  %v354_v45 = vshrl.u32 %v1336_v38, 16  ;;  %v1658_v62 = vld [vmem:[%s1998_s1 + $0x188] sm:$0xff]   ;;  %v1662_v3 = vld [vmem:[%s1998_s1 + $0x190] sm:$0xff]  }
  0x15   : > { %1526 = vmatpush3.bf16.msra.mxu1 %v1630_v16  ;;  %1499 = vmatprep.subr.bf16.mxu0 %v1631_v17  ;;  %v356_v46 = vshll.u32 %v1336_v38, 16  ;;  %v361_v47 = vshll.u32 %v1338_v39, 16  ;;  %v380_v55 = vshrl.u32 %v1339_v37, 16  ;;  %v1657_v63 = vld [vmem:[%s1998_s1 + $0x108] sm:$0xff]   ;;  %v377_v0 = vshrl.u32 %v1338_v39, 16  ;;  %v1661_v4 = vld [vmem:[%s1998_s1 + $0x110] sm:$0xff]  }
  0x16   : > { %1527 = vmatprep.subr.bf16.mxu1 %v1632_v18  ;;  %v370_v49 = vrot.slane %v368_v43, 1  ;;  %v375_v50 = vrot.slane %v373_v44, 1  ;;  %v1666_v8 = vld [vmem:[%s1998_s1 + $0x198] sm:$0xff]   ;;  %v1668_v10 = vld [vmem:[%s1998_s1 + $0x1e0] sm:$0xff]   ;;  %v1672_v14 = vld [vmem:[%s1998_s1 + $0x1e8] sm:$0xff]  }
  0x17   : > { %v358_v51 = vrot.slane %v356_v46, 1  ;;  %v363_v52 = vrot.slane %v361_v47, 1  ;;  %v1665_v9 = vld [vmem:[%s1998_s1 + $0x118] sm:$0xff]   ;;  %v1667_v11 = vld [vmem:[%s1998_s1 + $0x160] sm:$0xff]   ;;  %v1671_v15 = vld [vmem:[%s1998_s1 + $0x168] sm:$0xff]  }
  0x18   : > { %1500 = vmatpush3.bf16.msra.mxu0 %v1633_v19  ;;  %v371_v53 = vor.u32 %v370_v49, %v366_v42  ;;  %v382_v60 = vor.u32 %v380_v55, %v375_v50  ;;  %v1670_v12 = vld [vmem:[%s1998_s1 + $0x1a0] sm:$0xff]   ;;  %v1674_v16 = vld [vmem:[%s1998_s1 + $0x1a8] sm:$0xff]   ;;  %v272_v17 = vld [vmem:[%s1844_s18 + $0x10] sm:$0x33] }
  0x19   : > { %1528 = vmatpush3.bf16.msra.mxu1 %v1634_v20  ;;  %1501 = vmatprep.subr.bf16.mxu0 %v1635_v21  ;;  %v359_v56 = vor.u32 %v358_v51, %v354_v45  ;;  %v379_v5 = vor.u32 %v377_v0, %v363_v52  ;;  %v1669_v13 = vld [vmem:[%s1998_s1 + $0x120] sm:$0xff]   ;;  %v1673_v18 = vld [vmem:[%s1998_s1 + $0x128] sm:$0xff]   ;;  %v1357_v19 = vcombine.high %v272_v17, %v272_v17  ;;  %v1678_v21 = vld [vmem:[%s1998_s1 + $0x1f0] sm:$0xff]  }
  0x1a   : > { %1529 = vmatprep.subr.bf16.mxu1 %v1636_v22  ;;  %v376_v58 = vsel %vm352_vm0, %v371_v53, %v375_v50  ;;  %v1356_v20 = vcombine.low %v272_v17, %v272_v17  ;;  %v1677_v22 = vld [vmem:[%s1998_s1 + $0x170] sm:$0xff]   ;;  %v1146_v35 = vld [vmem:[%s2000_s3] sm:$0xff]  ;;  %v1147_v45 = vld [vmem:[%s2000_s3 + $0x8] sm:$0xff] }
  0x1b   : > { %515 = vmatprep.mubr.bf16.mxu0 %v376_v58  ;;  %v364_v61 = vsel %vm352_vm0, %v359_v56, %v363_v52  ;;  %v1689_v33 = vld [vmem:[%s1844_s18 + $0x14] ss:$8 sps:$4 sm:$0x1f]   ;;  %1151 = vperm.xlu0 %1613, %v1146_v35   ;;  %v1148_v46 = vld [vmem:[%s2000_s3 + $0x10] sm:$0xf] }
  0x1c   : > { %1502 = vmatpush3.bf16.msra.mxu0 %v1637_v23  ;;  %v1680_v23 = vld [vmem:[%s1998_s1 + $0x1b0] sm:$0xff]   ;;  %v767_v42 = vshll.u32 %v1689_v33, 16  ;;  %v967_v49 = vrot.slane %v1689_v33, 3  ;;  %1161 = vperm.xlu1 %1614, %v1148_v46  }
  0x1d   : > { %1530 = vmatpush3.bf16.msra.mxu1 %v1638_v24  ;;  %1503 = vmatprep.subr.bf16.mxu0 %v1639_v25  ;;  %v1679_v24 = vld [vmem:[%s1998_s1 + $0x130] sm:$0xff]   ;;  %v1682_v25 = vld [vmem:[%s1998_s1 + $0x1f8] sm:$0xff]  }
  0x1e   : > { %1531 = vmatprep.subr.bf16.mxu1 %v1640_v26  ;;  %v1681_v26 = vld [vmem:[%s1998_s1 + $0x178] sm:$0xff]   ;;  %v769_v52 = vrot.slane %v767_v42, 3 }
  0x1f   : > { %1156 = vperm.xlu0 %1613, %v1147_v45  }
  0x20   : > { %1504 = vmatpush3.bf16.msra.mxu0 %v1641_v27  ;;  %v1683_v27 = vld [vmem:[%s1998_s1 + $0x138] sm:$0xff]  }
  0x21   : > { %1532 = vmatpush3.bf16.msra.mxu1 %v1642_v28  ;;  %1505 = vmatprep.subr.bf16.mxu0 %v1643_v29  ;;  %v1684_v28 = vld [vmem:[%s1998_s1 + $0x1b8] sm:$0xff]   ;;  %v684_v29 = vld [vmem:[%s1844_s18] sm:$0xcc] }
  0x22   : > { %1533 = vmatprep.subr.bf16.mxu1 %v1644_v30  ;;  %v1406_v30 = vcombine.low %v684_v29, %v1854_v34 }
  0x24   : > { %1506 = vmatpush3.bf16.msra.mxu0 %v1645_v31  ;;  %v1407_v31 = vcombine.high %v684_v29, %v1854_v34  ;;  %v739_v39 = vshrl.u32 %v1406_v30, 16 }
  0x25   : > { %1534 = vmatpush3.bf16.msra.mxu1 %v1646_v32  ;;  %1547 = vmatprep.subr.bf16.mxu0 %v1651_v40  ;;  %v1687_v32 = vld [vmem:[%s1844_s18 + $0x10] ss:$8 sps:$4 sm:$0x1f]   ;;  %v742_v40 = vshll.u32 %v1406_v30, 16 }
  0x26   : > { %1575 = vmatprep.subr.bf16.mxu1 %v1652_v41  ;;  %v756_v36 = vshrl.u32 %v1407_v31, 16  ;;  %v759_v37 = vshll.u32 %v1407_v31, 16  ;;  %v764_v41 = vshrl.u32 %v1689_v33, 16  ;;  %v741_v50 = vrot.slane %v739_v39, 2 }
  0x27   : > { %516 = vmatmul.mubr.bf16.vlgmr.msra.gmra.mrb[0].mxu0 %v364_v61  ;;  %v747_v56 = vshrl.u32 %v1687_v32, 16 }
  0x28   : > { %669 = vmatmul.mubr.bf16.vlgmr.msra.gmra.mrb[0].mxu1 %v1336_v38  ;;  %1548 = vmatpush3.bf16.msra.mxu0 %v1653_v54  ;;  %v923_v38 = vld [vmem:[%s1844_s18] sm:$0x88]  ;;  %v758_v47 = vrot.slane %v756_v36, 2  ;;  %v766_v51 = vrot.slane %v764_v41, 2 }
  0x29   : > { %1576 = vmatpush3.bf16.msra.mxu1 %v1654_v48  ;;  %1549 = vmatprep.subr.bf16.mxu0 %v1655_v59  ;;  %v1458_v43 = vcombine.low %v923_v38, %v1854_v34  ;;  %v1459_v44 = vcombine.high %v923_v38, %v1854_v34  ;;  %v761_v48 = vrot.slane %v759_v37, 3  ;;  %v744_v34 = vrot.slane %v742_v40, 3 }
  0x2a   : > { %1577 = vmatprep.subr.bf16.mxu1 %v1656_v57  ;;  %523 = vmatprep.mubr.bf16.mxu0 %v382_v60  ;;  %v750_v57 = vshll.u32 %v1687_v32, 16  ;;  %v770_v58 = vor.u32 %v769_v52, %v766_v51  ;;  %v964_v60 = vrot.slane %v1687_v32, 3 }
  0x2b   : > { %676 = vmatprep.mubr.bf16.mxu1 %v1357_v19  ;;  %v963_v53 = vrot.slane %v1458_v43, 3  ;;  %v966_v54 = vrot.slane %v1459_v44, 3  ;;  %v762_v55 = vor.u32 %v761_v48, %v758_v47  ;;  %v745_v61 = vor.u32 %v744_v34, %v741_v50  ;;  %v1476_v44 = vld [vmem:[%s1999_s2] ss:$0 sm:$0xff] }
  0x2c   : > { %1550 = vmatpush3.bf16.msra.mxu0 %v1657_v63  ;;  %v752_v63 = vrot.slane %v750_v57, 3 }
  0x2d   : > { %1578 = vmatpush3.bf16.msra.mxu1 %v1658_v62  ;;  %1551 = vmatprep.subr.bf16.mxu0 %v1659_v2  ;;  %v968_v59 = vsel %vm962_vm1, %v966_v54, %v967_v49  ;;  %v749_v62 = vrot.slane %v747_v56, 2  ;;  %v771_v0 = vsel %vm737_vm2, %v762_v55, %v770_v58 }
  0x2e   : > { %1579 = vmatprep.subr.bf16.mxu1 %v1660_v1  ;;  %v965_v1 = vsel %vm962_vm1, %v963_v53, %v964_v60 }
  0x2f   : > { %524 = vmatmul.mubr.bf16.gmra.mrb[4].mxu0 %v379_v5  ;;  %v753_v2 = vor.u32 %v752_v63, %v749_v62 }
  0x30   : > { %1552 = vmatpush3.bf16.msra.mxu0 %v1661_v4  ;;  %677 = vmatmul.mubr.bf16.gmra.mrb[4].mxu1 %v1356_v20 }
  0x31   : > { %1580 = vmatpush3.bf16.msra.mxu1 %v1662_v3  ;;  %1553 = vmatprep.subr.bf16.mxu0 %v1663_v7  ;;  %v754_v3 = vsel %vm737_vm2, %v745_v61, %v753_v2 }
  0x32   : > { %1581 = vmatprep.subr.bf16.mxu1 %v1664_v6  ;;  %1101 = vmatprep.mubr.bf16.mxu1 %v968_v59 }
  0x33   : > { %904 = vmatprep.mubr.bf16.mxu0 %v771_v0 }
  0x34   : > { %1554 = vmatpush3.bf16.msra.mxu0 %v1665_v9 }
  0x35   : > { %1582 = vmatpush3.bf16.msra.mxu1 %v1666_v8  ;;  %1555 = vmatprep.subr.bf16.mxu0 %v1667_v11 }
  0x36   : > { %1583 = vmatprep.subr.bf16.mxu1 %v1668_v10 }
  0x38   : > { %1556 = vmatpush3.bf16.msra.mxu0 %v1669_v13 }
  0x39   : > { %1584 = vmatpush3.bf16.msra.mxu1 %v1670_v12  ;;  %1557 = vmatprep.subr.bf16.mxu0 %v1671_v15 }
  0x3a   : > { %1585 = vmatprep.subr.bf16.mxu1 %v1672_v14 }
  0x3c   : > { %1558 = vmatpush3.bf16.msra.mxu0 %v1673_v18 }
  0x3d   : > { %1586 = vmatpush3.bf16.msra.mxu1 %v1674_v16  ;;  %1559 = vmatprep.subr.bf16.mxu0 %v1677_v22 }
  0x3e   : > { %1587 = vmatprep.subr.bf16.mxu1 %v1678_v21 }
  0x40   : > { %1560 = vmatpush3.bf16.msra.mxu0 %v1679_v24 }
  0x41   : > { %1588 = vmatpush3.bf16.msra.mxu1 %v1680_v23  ;;  %1561 = vmatprep.subr.bf16.mxu0 %v1681_v26 }
  0x42   : > { %1589 = vmatprep.subr.bf16.mxu1 %v1682_v25 }
  0x44   : > { %1562 = vmatpush3.bf16.msra.mxu0 %v1683_v27 }
  0x45   : > { %1590 = vmatpush3.bf16.msra.mxu1 %v1684_v28 }
  0x47   : > { %905 = vmatmul.mubr.bf16.vlgmr.msra.gmra.mrb[8].mxu0 %v754_v3 }
  0x48   : > { %1102 = vmatmul.mubr.bf16.vlgmr.msra.gmra.mrb[8].mxu1 %v965_v1  ;;  %912 = vmatprep.mubr.bf16.mxu0 %v770_v58 }
  0x49   : > { %1109 = vmatprep.mubr.bf16.mxu1 %v967_v49 }
  0x4f   : > { %913 = vmatmul.mubr.bf16.gmra.mrb[12].mxu0 %v753_v2 }
  0x50   : > { %1110 = vmatmul.mubr.bf16.gmra.mrb[12].mxu1 %v964_v60 }
  0x9a   : > { %v1152_v41 = vpop.permute.xlu0 %1151 }
  0x9e   : > { %v1157_v34 = vpop.permute.xlu0 %1156 }
  0xfa   : > { %v1507_v10 = vpop.f32.mrb[0].mxu0 }
  0xfb   : > { %v1535_v4 = vpop.f32.mrb[0].mxu1  ;;  %v1508_v11 = vpop.f32.mrb[1].mxu0 }
  0xfc   : > { %v1536_v5 = vpop.f32.mrb[1].mxu1  ;;  %v1509_v12 = vadd.f32 %v1508_v11, %v1507_v10  ;;  %v1510_v13 = vpop.f32.mrb[2].mxu0 }
  0xfd   : > { %v1537_v6 = vadd.f32 %v1536_v5, %v1535_v4  ;;  %v1538_v7 = vpop.f32.mrb[2].mxu1  ;;  %v1511_v14 = vpop.f32.mrb[3].mxu0 }
  0xfe   : > { %v1539_v8 = vpop.f32.mrb[3].mxu1  ;;  %v1512_v16 = vadd.f32 %v1511_v14, %v1510_v13  ;;  %v1162_v4 = vpop.permute.xlu1 %1161 }
  0xff   : > { %v1540_v9 = vadd.f32 %v1539_v8, %v1538_v7  ;;  %v671_v15 = vadd.f32 %v1537_v6, %v1509_v12 }
 0x101   : > { %v674_v17 = vadd.f32 %v1540_v9, %v1512_v16 }
 0x102   : > { %v1513_v18 = vpop.f32.mrb[4].mxu0 }
 0x103   : > { %v1514_v19 = vpop.f32.mrb[5].mxu0  ;;  %v1541_v23 = vpop.f32.mrb[4].mxu1 }
 0x104   : > { %v1515_v20 = vadd.f32 %v1514_v19, %v1513_v18  ;;  %v1516_v21 = vpop.f32.mrb[6].mxu0  ;;  %v1542_v24 = vpop.f32.mrb[5].mxu1 }
 0x105   : > { %v1517_v22 = vpop.f32.mrb[7].mxu0  ;;  %v1543_v25 = vadd.f32 %v1542_v24, %v1541_v23  ;;  %v1544_v26 = vpop.f32.mrb[6].mxu1 }
 0x106   : > { %v1545_v27 = vpop.f32.mrb[7].mxu1 }
 0x107   : > { %v679_v28 = vadd.f32 %v1543_v25, %v1515_v20 }
 0x11a   : > { %v1563_v33 = vpop.f32.mrb[8].mxu0 }
 0x11b   : > { %v1591_v29 = vpop.f32.mrb[8].mxu1  ;;  %v1564_v36 = vpop.f32.mrb[9].mxu0 }
 0x11c   : > { %v1592_v30 = vpop.f32.mrb[9].mxu1  ;;  %v1565_v38 = vadd.f32 %v1564_v36, %v1563_v33  ;;  %v1566_v39 = vpop.f32.mrb[10].mxu0 }
 0x11d   : > { %v1593_v31 = vadd.f32 %v1592_v30, %v1591_v29  ;;  %v1594_v32 = vpop.f32.mrb[10].mxu1  ;;  %v1567_v40 = vpop.f32.mrb[11].mxu0 }
 0x11e   : > { %v1595_v35 = vpop.f32.mrb[11].mxu1  ;;  %v920_v42 = vadd.f32 %v1565_v38, %v671_v15  ;;  %v1568_v43 = vadd.f32 %v1567_v40, %v1566_v39 }
 0x11f   : > { %v1596_v37 = vadd.f32 %v1595_v35, %v1594_v32 }
 0x120   : > { %v1117_v46 = vadd.f32 %v1593_v31, %v920_v42  ;;  %v921_v47 = vadd.f32 %v1568_v43, %v674_v17 }
 0x122   : > { %v1127_v51 = vadd.f32 %v1476_v44, %v1117_v46  ;;  %v1118_v52 = vadd.f32 %v1596_v37, %v921_v47  ;;  %v1569_v53 = vpop.f32.mrb[12].mxu0 }
 0x123   : > { %v1597_v45 = vpop.f32.mrb[12].mxu1  ;;  %v1570_v55 = vpop.f32.mrb[13].mxu0 }
 0x124   : > { %v1598_v48 = vpop.f32.mrb[13].mxu1  ;;  %v1128_v56 = vadd.f32 %v1476_v44, %v1118_v52  ;;  %v1164_v57 = vmul.f32 %v1152_v41, %v1127_v51  ;;  %v1571_v58 = vadd.f32 %v1570_v55, %v1569_v53  ;;  %v1572_v59 = vpop.f32.mrb[14].mxu0 }
 0x125   : > { %v1599_v49 = vadd.f32 %v1598_v48, %v1597_v45  ;;  %v1600_v50 = vpop.f32.mrb[14].mxu1  ;;  %v1573_v60 = vpop.f32.mrb[15].mxu0 }
 0x126   : > { %v1601_v54 = vpop.f32.mrb[15].mxu1  ;;  %v1489_v61 = vpack.c.bf16 %v1128_v56, %v1127_v51  ;;  %v922_v62 = vadd.f32 %v1571_v58, %v679_v28  ;;  %v1165_v63 = vmul.f32 %v1157_v34, %v1128_v56  ;;  %v1178_v0 = vmul.f32 %v1164_v57, %v1127_v51 }
 0x128   : > { %1490 = vst [vmem:[%s262_s12] sm:$0xff] %v1489_v61   ;;  %v1119_v1 = vadd.f32 %v1599_v49, %v922_v62  ;;  %v1167_v2 = vadd.f32 %v1165_v63, %v1164_v57  ;;  %v1179_v3 = vmul.f32 %v1165_v63, %v1128_v56 }
 0x12a   : > { %v1129_v5 = vadd.f32 %v1476_v44, %v1119_v1  ;;  %v1181_v6 = vadd.f32 %v1179_v3, %v1178_v0 }
 0x12c   : > { %v1485_v7 = vpack.c.bf16 %v1129_v5, %v1129_v5  ;;  %v1166_v8 = vmul.f32 %v1162_v4, %v1129_v5 }
 0x12e   : > { %1145 = vst [vmem:[%s262_s12 + $0x8] sm:$0x3] %v1485_v7  ;;  %v1169_v9 = vsel %vm1168_vm3, %v1166_v8, 0.0  ;;  %v1180_v10 = vmul.f32 %v1166_v8, %v1129_v5 }
 0x12f   : > { %v1170_v11 = vadd.f32 %v1169_v9, %v1167_v2 }
 0x130   : > { %v1182_v12 = vsel %vm1168_vm3, %v1180_v10, 0.0 }
 0x131   : > { %v1171_v13 = vrot.slane %v1170_v11, 4  ;;  %v1183_v14 = vadd.f32 %v1182_v12, %v1181_v6 }
 0x133   : > { %v1172_v15 = vadd.f32 %v1171_v13, %v1170_v11  ;;  %v1184_v16 = vrot.slane %v1183_v14, 4 }
 0x135   : > { %v1173_v17 = vrot.slane %v1172_v15, 2  ;;  %v1185_v18 = vadd.f32 %v1184_v16, %v1183_v14 }
 0x137   : > { %v1174_v19 = vadd.f32 %v1173_v17, %v1172_v15  ;;  %v1186_v20 = vrot.slane %v1185_v18, 2 }
 0x139   : > { %v1175_v21 = vrot.slane %v1174_v19, 1  ;;  %v1187_v22 = vadd.f32 %v1186_v20, %v1185_v18 }
 0x13b   : > { %v1176_v23 = vadd.f32 %v1175_v21, %v1174_v19  ;;  %v1188_v24 = vrot.slane %v1187_v22, 1 }
 0x13d   : > { %1177 = vst [vmem:[%s265_s15] sm:$0x1] %v1176_v23  ;;  %v1189_v25 = vadd.f32 %v1188_v24, %v1187_v22 }
 0x13f   : > { %1190 = vst [vmem:[%s268_s19] sm:$0x1] %v1189_v25 }
 0x140 PF: > { %s17_s21 = sadd.s32 1, %s1698_s21  }
 0x141   : > { %p14_p4 = scmp.ge.s32.totalorder %s17_s21, 4  }
 0x143   :  { %16 = sbr.rel (!%p14_p4) target bundleno = 1 (0x1), region = 93 }

// kernel: simple_discriminator_forward.6
= control target key start
LH: loop header
LB: loop body
LE: loop exit
PB: predicated region body
PF: predicated region fallthrough
CT: control target
= control target key end

     0   :  { %s3438_s21 = smov 0   ;;  %s4298_s0 = inlined_call_operand.vmem [shape: bf16[2,16,512], index: 0, kind: input, shape index: {}]   ;;  %s4299_s1 = inlined_call_operand.vmem [shape: bf16[4,512,256], index: 1, kind: input, shape index: {}]   ;;  %s4300_s2 = inlined_call_operand.vmem [shape: f32[1,256], index: 2, kind: input, shape index: {}]   ;;  %s4301_s3 = inlined_call_operand.vmem [shape: f32[6,1], index: 3, kind: input, shape index: {}]   ;;  %s4302_s4 = inlined_call_operand.vmem [shape: bf16[2,6,256], index: 4, kind: output, shape index: {0}]   ;;  %s4303_s5 = inlined_call_operand.vmem [shape: f32[2,1,256], index: 5, kind: output, shape index: {1}]   ;;  %s4304_s6 = inlined_call_operand.vmem [shape: f32[2,1,256], index: 6, kind: output, shape index: {2}]  }
   0x1 LB: > { %s2501_s22 = sadd.s32 4294967295, %s3399_s21   ;;  %p2505_p0 = scmp.ge.s32.totalorder %s3399_s21, 1  ;;  %s3399_s21 = sphi %s3438_s21, %s17_s21  }
   0x2   : > { %p217_p1 = scmp.lt.s32.totalorder %s3399_s21, 3 }
   0x4   : > { %p218_p2 = pnand %p2505_p0, %p217_p1 }
   0x5   : > { %v2993_v0 = vld [vmem:[%s4299_s1 + $0x204] ss:$8 sps:$4 sm:$0xff] (!%p218_p2)   ;;  %v2997_v2 = vld [vmem:[%s4299_s1 + $0x200] ss:$8 sps:$4 sm:$0xff] (!%p218_p2)   ;;  %v2999_v4 = vld [vmem:[%s4299_s1 + $0x214] ss:$8 sps:$4 sm:$0xff] (!%p218_p2)  }
   0x6   : > { %221 = sbr.rel (%p218_p2) target bundleno = 506 (0x1fa), region = 36  ;;  %v2995_v1 = vld [vmem:[%s4299_s1 + $0x304] ss:$8 sps:$4 sm:$0xff] (!%p218_p2)   ;;  %768 = vmatprep.subr.bf16.mxu0 (!%p218_p2), %v2993_v0  ;;  %v2998_v3 = vld [vmem:[%s4299_s1 + $0x300] ss:$8 sps:$4 sm:$0xff] (!%p218_p2)   ;;  %p255_p3 = scmp.lt.s32.totalorder (!%p218_p2), %s2501_s22, 1 }
   0x7   : > { %809 = vmatprep.subr.bf16.mxu1 (!%p218_p2), %v2995_v1  ;;  %769 = vmatpush1.bf16.msra.mxu0 (!%p218_p2), %v2997_v2  ;;  %v3001_v5 = vld [vmem:[%s4299_s1 + $0x314] ss:$8 sps:$4 sm:$0xff] (!%p218_p2)   ;;  %v3003_v6 = vld [vmem:[%s4299_s1 + $0x210] ss:$8 sps:$4 sm:$0xff] (!%p218_p2)   ;;  %v3005_v8 = vld [vmem:[%s4299_s1 + $0x224] ss:$8 sps:$4 sm:$0xff] (!%p218_p2)  }
   0x8   : > { %810 = vmatpush1.bf16.msra.mxu1 (!%p218_p2), %v2998_v3  ;;  %770 = vmatprep.subr.bf16.mxu0 (!%p218_p2), %v2999_v4  ;;  %v3004_v7 = vld [vmem:[%s4299_s1 + $0x310] ss:$8 sps:$4 sm:$0xff] (!%p218_p2)   ;;  %v3007_v9 = vld [vmem:[%s4299_s1 + $0x324] ss:$8 sps:$4 sm:$0xff] (!%p218_p2)   ;;  %v3009_v10 = vld [vmem:[%s4299_s1 + $0x220] ss:$8 sps:$4 sm:$0xff] (!%p218_p2)  }
   0x9   : > { %811 = vmatprep.subr.bf16.mxu1 (!%p218_p2), %v3001_v5  ;;  %v3010_v11 = vld [vmem:[%s4299_s1 + $0x320] ss:$8 sps:$4 sm:$0xff] (!%p218_p2)   ;;  %v3011_v12 = vld [vmem:[%s4299_s1 + $0x234] ss:$8 sps:$4 sm:$0xff] (!%p218_p2)   ;;  %v3015_v14 = vld [vmem:[%s4299_s1 + $0x230] ss:$8 sps:$4 sm:$0xff] (!%p218_p2)  }
   0xa   : > { %v3013_v13 = vld [vmem:[%s4299_s1 + $0x334] ss:$8 sps:$4 sm:$0xff] (!%p218_p2)   ;;  %v3016_v15 = vld [vmem:[%s4299_s1 + $0x330] ss:$8 sps:$4 sm:$0xff] (!%p218_p2)   ;;  %v3017_v16 = vld [vmem:[%s4299_s1 + $0x244] ss:$8 sps:$4 sm:$0xff] (!%p218_p2)  }
   0xb   : > { %771 = vmatpush1.bf16.msra.mxu0 (!%p218_p2), %v3003_v6  ;;  %v3019_v17 = vld [vmem:[%s4299_s1 + $0x344] ss:$8 sps:$4 sm:$0xff] (!%p218_p2)   ;;  %v3021_v18 = vld [vmem:[%s4299_s1 + $0x240] ss:$8 sps:$4 sm:$0xff] (!%p218_p2)   ;;  %v3023_v20 = vld [vmem:[%s4299_s1 + $0x254] ss:$8 sps:$4 sm:$0xff] (!%p218_p2)  }
   0xc   : > { %812 = vmatpush1.bf16.msra.mxu1 (!%p218_p2), %v3004_v7  ;;  %772 = vmatprep.subr.bf16.mxu0 (!%p218_p2), %v3005_v8  ;;  %v3022_v19 = vld [vmem:[%s4299_s1 + $0x340] ss:$8 sps:$4 sm:$0xff] (!%p218_p2)   ;;  %v3025_v21 = vld [vmem:[%s4299_s1 + $0x354] ss:$8 sps:$4 sm:$0xff] (!%p218_p2)   ;;  %v3027_v22 = vld [vmem:[%s4299_s1 + $0x250] ss:$8 sps:$4 sm:$0xff] (!%p218_p2)  }
   0xd   : > { %813 = vmatprep.subr.bf16.mxu1 %v3007_v9  ;;  %v3028_v23 = vld [vmem:[%s4299_s1 + $0x350] ss:$8 sps:$4 sm:$0xff]   ;;  %v3029_v24 = vld [vmem:[%s4299_s1 + $0x264] ss:$8 sps:$4 sm:$0xff]   ;;  %v3033_v26 = vld [vmem:[%s4299_s1 + $0x260] ss:$8 sps:$4 sm:$0xff]  }
   0xe   : > { %v3031_v25 = vld [vmem:[%s4299_s1 + $0x364] ss:$8 sps:$4 sm:$0xff]   ;;  %v3034_v27 = vld [vmem:[%s4299_s1 + $0x360] ss:$8 sps:$4 sm:$0xff]   ;;  %v3035_v28 = vld [vmem:[%s4299_s1 + $0x274] ss:$8 sps:$4 sm:$0xff]  }
   0xf   : > { %773 = vmatpush1.bf16.msra.mxu0 %v3009_v10  ;;  %v3037_v29 = vld [vmem:[%s4299_s1 + $0x374] ss:$8 sps:$4 sm:$0xff]   ;;  %v3039_v30 = vld [vmem:[%s4299_s1 + $0x270] ss:$8 sps:$4 sm:$0xff]   ;;  %v3041_v32 = vld [vmem:[%s4299_s1 + $0x284] ss:$8 sps:$4 sm:$0xff]  }
  0x10   : > { %814 = vmatpush1.bf16.msra.mxu1 %v3010_v11  ;;  %774 = vmatprep.subr.bf16.mxu0 %v3011_v12  ;;  %v3040_v31 = vld [vmem:[%s4299_s1 + $0x370] ss:$8 sps:$4 sm:$0xff]   ;;  %v3043_v33 = vld [vmem:[%s4299_s1 + $0x384] ss:$8 sps:$4 sm:$0xff]   ;;  %v3045_v34 = vld [vmem:[%s4299_s1 + $0x280] ss:$8 sps:$4 sm:$0xff]  }
  0x11   : > { %815 = vmatprep.subr.bf16.mxu1 %v3013_v13  ;;  %v3046_v35 = vld [vmem:[%s4299_s1 + $0x380] ss:$8 sps:$4 sm:$0xff]   ;;  %v3047_v36 = vld [vmem:[%s4299_s1 + $0x294] ss:$8 sps:$4 sm:$0xff]   ;;  %s4306_s22 = smov (!%p255_p3, %s2501_s22), 1  ;;  %vm2311_vm0 = vcmask 1045504  }
  0x12   : > { %v3049_v37 = vld [vmem:[%s4299_s1 + $0x394] ss:$8 sps:$4 sm:$0xff]   ;;  %v3051_v38 = vld [vmem:[%s4299_s1 + $0x290] ss:$8 sps:$4 sm:$0xff]   ;;  %v3053_v40 = vld [vmem:[%s4299_s1 + $0x2a4] ss:$8 sps:$4 sm:$0xff]  }
  0x13   : > { %775 = vmatpush1.bf16.msra.mxu0 %v3015_v14  ;;  %v3052_v39 = vld [vmem:[%s4299_s1 + $0x390] ss:$8 sps:$4 sm:$0xff]   ;;  %s2979_s15 = sshll.u32 %s4306_s22, 5  ;;  %v3055_v41 = vld [vmem:[%s4299_s1 + $0x3a4] ss:$8 sps:$4 sm:$0xff]   ;;  %s2980_s29 = sshll.u32 %s4306_s22, 3 }
  0x14   : > { %816 = vmatpush1.bf16.msra.mxu1 %v3016_v15  ;;  %776 = vmatprep.subr.bf16.mxu0 %v3017_v16  ;;  %v3057_v42 = vld [vmem:[%s4299_s1 + $0x2a0] ss:$8 sps:$4 sm:$0xff]   ;;  %s3588_s26 = scalar_lea.vmem %s4298_s0, %s2979_s15  ;;  %v3059_v44 = vld [vmem:[%s4299_s1 + $0x2b4] ss:$8 sps:$4 sm:$0xff]   ;;  %v3063_v46 = vld [vmem:[%s4299_s1 + $0x2b0] ss:$8 sps:$4 sm:$0xff]   ;;  %s264_s8 = scalar_lea.vmem %s4302_s4, %s2980_s29 }
  0x15   : > { %817 = vmatprep.subr.bf16.mxu1 %v3019_v17  ;;  %v3058_v43 = vld [vmem:[%s4299_s1 + $0x3a0] ss:$8 sps:$4 sm:$0xff]   ;;  %v3061_v45 = vld [vmem:[%s4299_s1 + $0x3b4] ss:$8 sps:$4 sm:$0xff]   ;;  %v3064_v50 = vld [vmem:[%s4299_s1 + $0x3b0] ss:$8 sps:$4 sm:$0xff]  }
  0x16   : > { %v339_v47 = vld [vmem:[%s3588_s26] sm:$0xff]  ;;  %v340_v49 = vld [vmem:[%s3588_s26 + $0x8] sm:$0xff]  ;;  %v3071_v62 = vld [vmem:[%s4299_s1 + $0x2d4] ss:$8 sps:$4 sm:$0xff]  }
  0x17   : > { %777 = vmatpush1.bf16.msra.mxu0 %v3021_v18  ;;  %v2577_v48 = vcombine.high %v339_v47, %v339_v47  ;;  %v3065_v51 = vld [vmem:[%s4299_s1 + $0x2c4] ss:$8 sps:$4 sm:$0xff]   ;;  %v2579_v52 = vcombine.high %v340_v49, %v340_v49  ;;  %v3069_v59 = vld [vmem:[%s4299_s1 + $0x2c0] ss:$8 sps:$4 sm:$0xff]   ;;  %v3073_v63 = vld [vmem:[%s4299_s1 + $0x3d4] ss:$8 sps:$4 sm:$0xff]   ;;  %v2576_v2 = vcombine.low %v339_v47, %v339_v47  ;;  %v2578_v3 = vcombine.low %v340_v49, %v340_v49 }
  0x18   : > { %818 = vmatpush1.bf16.msra.mxu1 %v3022_v19  ;;  %778 = vmatprep.subr.bf16.mxu0 %v3023_v20  ;;  %v3067_v53 = vld [vmem:[%s4299_s1 + $0x3c4] ss:$8 sps:$4 sm:$0xff]   ;;  %v3070_v60 = vld [vmem:[%s4299_s1 + $0x3c0] ss:$8 sps:$4 sm:$0xff]   ;;  %v3075_v4 = vld [vmem:[%s4299_s1 + $0x2d0] ss:$8 sps:$4 sm:$0xff]  }
  0x19   : > { %819 = vmatprep.subr.bf16.mxu1 %v3025_v21  ;;  %v424_v54 = vshrl.u32 %v2577_v48, 16  ;;  %v426_v55 = vshll.u32 %v2577_v48, 16  ;;  %v438_v56 = vshrl.u32 %v2579_v52, 16  ;;  %v440_v57 = vshll.u32 %v2579_v52, 16  ;;  %v3076_v5 = vld [vmem:[%s4299_s1 + $0x3d0] ss:$8 sps:$4 sm:$0xff]  }
  0x1a   : > { %v3077_v6 = vld [vmem:[%s4299_s1 + $0x2e4] ss:$8 sps:$4 sm:$0xff]   ;;  %v419_v8 = vshll.u32 %v2576_v2, 16  ;;  %v433_v9 = vshll.u32 %v2578_v3, 16  ;;  %v3081_v10 = vld [vmem:[%s4299_s1 + $0x2e0] ss:$8 sps:$4 sm:$0xff]  }
  0x1b   : > { %779 = vmatpush1.bf16.msra.mxu0 %v3027_v22  ;;  %v428_v58 = vrot.slane %v426_v55, 1  ;;  %v442_v61 = vrot.slane %v440_v57, 1  ;;  %v3079_v7 = vld [vmem:[%s4299_s1 + $0x3e4] ss:$8 sps:$4 sm:$0xff]   ;;  %v3082_v11 = vld [vmem:[%s4299_s1 + $0x3e0] ss:$8 sps:$4 sm:$0xff]  }
  0x1c   : > { %820 = vmatpush1.bf16.msra.mxu1 %v3028_v23  ;;  %780 = vmatprep.subr.bf16.mxu0 %v3029_v24  ;;  %v3083_v12 = vld [vmem:[%s4299_s1 + $0x2f4] ss:$8 sps:$4 sm:$0xff]   ;;  %v417_v14 = vshrl.u32 %v2576_v2, 16  ;;  %v421_v15 = vrot.slane %v419_v8, 1  ;;  %v431_v16 = vshrl.u32 %v2578_v3, 16  ;;  %v435_v17 = vrot.slane %v433_v9, 1 }
  0x1d   : > { %821 = vmatprep.subr.bf16.mxu1 %v3031_v25  ;;  %v429_v0 = vor.u32 %v428_v58, %v424_v54  ;;  %v443_v1 = vor.u32 %v442_v61, %v438_v56  ;;  %v3085_v13 = vld [vmem:[%s4299_s1 + $0x3f4] ss:$8 sps:$4 sm:$0xff]   ;;  %v3087_v18 = vld [vmem:[%s4299_s1 + $0x2f0] ss:$8 sps:$4 sm:$0xff]   ;;  %v3095_v20 = vld [vmem:[%s4299_s1 + $0x4] ss:$8 sps:$4 sm:$0xff]  }
  0x1e   : > { %v3088_v19 = vld [vmem:[%s4299_s1 + $0x3f0] ss:$8 sps:$4 sm:$0xff]   ;;  %v3098_v21 = vld [vmem:[%s4299_s1 + $0x104] ss:$8 sps:$4 sm:$0xff]   ;;  %v422_v22 = vor.u32 %v421_v15, %v417_v14  ;;  %v436_v23 = vor.u32 %v435_v17, %v431_v16  ;;  %v3093_v24 = vld [vmem:[%s4299_s1] ss:$8 sps:$4 sm:$0xff]  }
  0x1f   : > { %781 = vmatpush1.bf16.msra.mxu0 %v3033_v26  ;;  %800 = vmatprep.mubr.bf16.mxu0 %v429_v0  ;;  %v3096_v25 = vld [vmem:[%s4299_s1 + $0x100] ss:$8 sps:$4 sm:$0xff]   ;;  %v3101_v26 = vld [vmem:[%s4299_s1 + $0x14] ss:$8 sps:$4 sm:$0xff]   ;;  %v3134_v47 = vld [vmem:[%s4299_s1 + $0x164] ss:$8 sps:$4 sm:$0xff]  }
  0x20   : > { %822 = vmatpush1.bf16.msra.mxu1 %v3034_v27  ;;  %782 = vmatprep.subr.bf16.mxu0 %v3035_v28  ;;  %v3104_v27 = vld [vmem:[%s4299_s1 + $0x114] ss:$8 sps:$4 sm:$0xff]   ;;  %v3099_v28 = vld [vmem:[%s4299_s1 + $0x10] ss:$8 sps:$4 sm:$0xff]   ;;  %v3129_v48 = vld [vmem:[%s4299_s1 + $0x60] ss:$8 sps:$4 sm:$0xff]  }
  0x21   : > { %823 = vmatprep.subr.bf16.mxu1 %v3037_v29  ;;  %841 = vmatprep.mubr.bf16.mxu1 %v443_v1  ;;  %v3102_v29 = vld [vmem:[%s4299_s1 + $0x110] ss:$8 sps:$4 sm:$0xff]   ;;  %v3132_v49 = vld [vmem:[%s4299_s1 + $0x160] ss:$8 sps:$4 sm:$0xff]   ;;  %v3137_v52 = vld [vmem:[%s4299_s1 + $0x74] ss:$8 sps:$4 sm:$0xff]  }
  0x22   : > { %v3140_v54 = vld [vmem:[%s4299_s1 + $0x174] ss:$8 sps:$4 sm:$0xff]   ;;  %v3135_v56 = vld [vmem:[%s4299_s1 + $0x70] ss:$8 sps:$4 sm:$0xff]   ;;  %v3143_v58 = vld [vmem:[%s4299_s1 + $0x84] ss:$8 sps:$4 sm:$0xff]  }
  0x23   : > { %783 = vmatpush1.bf16.msra.mxu0 %v3039_v30  ;;  %v3107_v30 = vld [vmem:[%s4299_s1 + $0x24] ss:$8 sps:$4 sm:$0xff]   ;;  %v3138_v57 = vld [vmem:[%s4299_s1 + $0x170] ss:$8 sps:$4 sm:$0xff]   ;;  %v3144_v61 = vld [vmem:[%s4299_s1 + $0x180] ss:$8 sps:$4 sm:$0xff]  }
  0x24   : > { %824 = vmatpush1.bf16.msra.mxu1 %v3040_v31  ;;  %784 = vmatprep.subr.bf16.mxu0 %v3041_v32  ;;  %v3110_v31 = vld [vmem:[%s4299_s1 + $0x124] ss:$8 sps:$4 sm:$0xff]   ;;  %v3105_v32 = vld [vmem:[%s4299_s1 + $0x20] ss:$8 sps:$4 sm:$0xff]   ;;  %v3147_v0 = vld [vmem:[%s4299_s1 + $0x90] ss:$8 sps:$4 sm:$0xff]  }
  0x25   : > { %825 = vmatprep.subr.bf16.mxu1 %v3043_v33  ;;  %v3108_v33 = vld [vmem:[%s4299_s1 + $0x120] ss:$8 sps:$4 sm:$0xff]   ;;  %v3150_v1 = vld [vmem:[%s4299_s1 + $0x190] ss:$8 sps:$4 sm:$0xff]   ;;  %v3155_v2 = vld [vmem:[%s4299_s1 + $0xa4] ss:$8 sps:$4 sm:$0xff]  }
  0x26   : > { %v3158_v3 = vld [vmem:[%s4299_s1 + $0x1a4] ss:$8 sps:$4 sm:$0xff]   ;;  %v3159_v8 = vld [vmem:[%s4299_s1 + $0xb0] ss:$8 sps:$4 sm:$0xff]   ;;  %v3173_v14 = vld [vmem:[%s4299_s1 + $0xd4] ss:$8 sps:$4 sm:$0xff]  }
  0x27   : > { %785 = vmatpush1.bf16.msra.mxu0 %v3045_v34  ;;  %v3113_v34 = vld [vmem:[%s4299_s1 + $0x34] ss:$8 sps:$4 sm:$0xff]   ;;  %v3162_v9 = vld [vmem:[%s4299_s1 + $0x1b0] ss:$8 sps:$4 sm:$0xff]  }
  0x28   : > { %826 = vmatpush1.bf16.msra.mxu1 %v3046_v35  ;;  %786 = vmatprep.subr.bf16.mxu0 %v3047_v36  ;;  %v3116_v35 = vld [vmem:[%s4299_s1 + $0x134] ss:$8 sps:$4 sm:$0xff]   ;;  %v3111_v36 = vld [vmem:[%s4299_s1 + $0x30] ss:$8 sps:$4 sm:$0xff]  }
  0x29   : > { %827 = vmatprep.subr.bf16.mxu1 %v3049_v37  ;;  %v3114_v37 = vld [vmem:[%s4299_s1 + $0x130] ss:$8 sps:$4 sm:$0xff]   ;;  %v3176_v15 = vld [vmem:[%s4299_s1 + $0x1d4] ss:$8 sps:$4 sm:$0xff]  }
  0x2a   : > { %v3171_v16 = vld [vmem:[%s4299_s1 + $0xd0] ss:$8 sps:$4 sm:$0xff]  }
  0x2b   : > { %787 = vmatpush1.bf16.msra.mxu0 %v3051_v38  ;;  %v3119_v38 = vld [vmem:[%s4299_s1 + $0x44] ss:$8 sps:$4 sm:$0xff]   ;;  %v3174_v17 = vld [vmem:[%s4299_s1 + $0x1d0] ss:$8 sps:$4 sm:$0xff]  }
  0x2c   : > { %828 = vmatpush1.bf16.msra.mxu1 %v3052_v39  ;;  %788 = vmatprep.subr.bf16.mxu0 %v3053_v40  ;;  %v3122_v39 = vld [vmem:[%s4299_s1 + $0x144] ss:$8 sps:$4 sm:$0xff]   ;;  %v3117_v40 = vld [vmem:[%s4299_s1 + $0x40] ss:$8 sps:$4 sm:$0xff]  }
  0x2d   : > { %829 = vmatprep.subr.bf16.mxu1 %v3055_v41  ;;  %v3120_v41 = vld [vmem:[%s4299_s1 + $0x140] ss:$8 sps:$4 sm:$0xff]  }
  0x2f   : > { %789 = vmatpush1.bf16.msra.mxu0 %v3057_v42  ;;  %v3125_v42 = vld [vmem:[%s4299_s1 + $0x54] ss:$8 sps:$4 sm:$0xff]  }
  0x30   : > { %830 = vmatpush1.bf16.msra.mxu1 %v3058_v43  ;;  %790 = vmatprep.subr.bf16.mxu0 %v3059_v44  ;;  %v3128_v43 = vld [vmem:[%s4299_s1 + $0x154] ss:$8 sps:$4 sm:$0xff]   ;;  %v3123_v44 = vld [vmem:[%s4299_s1 + $0x50] ss:$8 sps:$4 sm:$0xff]  }
  0x31   : > { %831 = vmatprep.subr.bf16.mxu1 %v3061_v45  ;;  %v3126_v45 = vld [vmem:[%s4299_s1 + $0x150] ss:$8 sps:$4 sm:$0xff]  }
  0x33   : > { %791 = vmatpush1.bf16.msra.mxu0 %v3063_v46  ;;  %v3131_v46 = vld [vmem:[%s4299_s1 + $0x64] ss:$8 sps:$4 sm:$0xff]  }
  0x34   : > { %832 = vmatpush1.bf16.msra.mxu1 %v3064_v50  ;;  %792 = vmatprep.subr.bf16.mxu0 %v3065_v51  ;;  %v3737_v50 = vld [vmem:[%s3588_s26] sm:$0x77]  ;;  %v3740_v51 = vld [vmem:[%s3588_s26 + $0x8] sm:$0x77] }
  0x35   : > { %833 = vmatprep.subr.bf16.mxu1 %v3067_v53  ;;  %v2645_v53 = vcombine.high %v3737_v50, %v3737_v50  ;;  %v2647_v55 = vcombine.high %v3740_v51, %v3740_v51 }
  0x37   : > { %793 = vmatpush1.bf16.msra.mxu0 %v3069_v59  ;;  %v3146_v59 = vld [vmem:[%s4299_s1 + $0x184] ss:$8 sps:$4 sm:$0xff]  }
  0x38   : > { %834 = vmatpush1.bf16.msra.mxu1 %v3070_v60  ;;  %794 = vmatprep.subr.bf16.mxu0 %v3071_v62  ;;  %v3141_v60 = vld [vmem:[%s4299_s1 + $0x80] ss:$8 sps:$4 sm:$0xff]   ;;  %v3149_v62 = vld [vmem:[%s4299_s1 + $0x94] ss:$8 sps:$4 sm:$0xff]  }
  0x39   : > { %835 = vmatprep.subr.bf16.mxu1 %v3073_v63  ;;  %v3152_v63 = vld [vmem:[%s4299_s1 + $0x194] ss:$8 sps:$4 sm:$0xff]  }
  0x3b   : > { %795 = vmatpush1.bf16.msra.mxu0 %v3075_v4  ;;  %v3153_v4 = vld [vmem:[%s4299_s1 + $0xa0] ss:$8 sps:$4 sm:$0xff]  }
  0x3c   : > { %836 = vmatpush1.bf16.msra.mxu1 %v3076_v5  ;;  %796 = vmatprep.subr.bf16.mxu0 %v3077_v6  ;;  %v3156_v5 = vld [vmem:[%s4299_s1 + $0x1a0] ss:$8 sps:$4 sm:$0xff]   ;;  %v3161_v6 = vld [vmem:[%s4299_s1 + $0xb4] ss:$8 sps:$4 sm:$0xff]  }
  0x3d   : > { %837 = vmatprep.subr.bf16.mxu1 %v3079_v7  ;;  %v3164_v7 = vld [vmem:[%s4299_s1 + $0x1b4] ss:$8 sps:$4 sm:$0xff]  }
  0x3f   : > { %797 = vmatpush1.bf16.msra.mxu0 %v3081_v10  ;;  %v3167_v10 = vld [vmem:[%s4299_s1 + $0xc4] ss:$8 sps:$4 sm:$0xff]  }
  0x40   : > { %838 = vmatpush1.bf16.msra.mxu1 %v3082_v11  ;;  %798 = vmatprep.subr.bf16.mxu0 %v3083_v12  ;;  %v3170_v11 = vld [vmem:[%s4299_s1 + $0x1c4] ss:$8 sps:$4 sm:$0xff]   ;;  %v3165_v12 = vld [vmem:[%s4299_s1 + $0xc0] ss:$8 sps:$4 sm:$0xff]  }
  0x41   : > { %839 = vmatprep.subr.bf16.mxu1 %v3085_v13  ;;  %v3168_v13 = vld [vmem:[%s4299_s1 + $0x1c0] ss:$8 sps:$4 sm:$0xff]  }
  0x43   : > { %799 = vmatpush1.bf16.msra.mxu0 %v3087_v18  ;;  %v3179_v18 = vld [vmem:[%s4299_s1 + $0xe4] ss:$8 sps:$4 sm:$0xff]  }
  0x44   : > { %840 = vmatpush1.bf16.msra.mxu1 %v3088_v19  ;;  %1184 = vmatprep.subr.bf16.mxu0 %v3095_v20  ;;  %v3182_v19 = vld [vmem:[%s4299_s1 + $0x1e4] ss:$8 sps:$4 sm:$0xff]   ;;  %v3177_v20 = vld [vmem:[%s4299_s1 + $0xe0] ss:$8 sps:$4 sm:$0xff]  }
  0x45   : > { %1225 = vmatprep.subr.bf16.mxu1 %v3098_v21  ;;  %v3180_v21 = vld [vmem:[%s4299_s1 + $0x1e0] ss:$8 sps:$4 sm:$0xff]  }
  0x46   : > { %801 = vmatmul.mubr.bf16.vlgmr.msra.gmra.mrb[0].mxu0 %v422_v22  ;;  %v3185_v22 = vld [vmem:[%s4299_s1 + $0xf4] ss:$8 sps:$4 sm:$0xff]  }
  0x47   : > { %842 = vmatmul.mubr.bf16.vlgmr.msra.gmra.mrb[0].mxu1 %v436_v23  ;;  %1185 = vmatpush1.bf16.msra.mxu0 %v3093_v24  ;;  %v3188_v23 = vld [vmem:[%s4299_s1 + $0x1f4] ss:$8 sps:$4 sm:$0xff]   ;;  %v3183_v24 = vld [vmem:[%s4299_s1 + $0xf0] ss:$8 sps:$4 sm:$0xff]  }
  0x48   : > { %1226 = vmatpush1.bf16.msra.mxu1 %v3096_v25  ;;  %1186 = vmatprep.subr.bf16.mxu0 %v3101_v26  ;;  %v3186_v25 = vld [vmem:[%s4299_s1 + $0x1f0] ss:$8 sps:$4 sm:$0xff]   ;;  %v3195_v26 = vld [vmem:[%s4299_s1 + $0x404] ss:$8 sps:$4 sm:$0xff]  }
  0x49   : > { %1227 = vmatprep.subr.bf16.mxu1 %v3104_v27  ;;  %1216 = vmatprep.mubr.bf16.mxu0 %v2645_v53  ;;  %v3198_v27 = vld [vmem:[%s4299_s1 + $0x504] ss:$8 sps:$4 sm:$0xff]   ;;  %v3216_v53 = vld [vmem:[%s4299_s1 + $0x534] ss:$8 sps:$4 sm:$0xff]  }
  0x4a   : > { %1257 = vmatprep.mubr.bf16.mxu1 %v2647_v55 }
  0x4b   : > { %1187 = vmatpush1.bf16.msra.mxu0 %v3099_v28  ;;  %v2644_v28 = vcombine.low %v3737_v50, %v3737_v50 }
  0x4c   : > { %1228 = vmatpush1.bf16.msra.mxu1 %v3102_v29  ;;  %1188 = vmatprep.subr.bf16.mxu0 %v3107_v30  ;;  %v2646_v29 = vcombine.low %v3740_v51, %v3740_v51  ;;  %v3193_v30 = vld [vmem:[%s4299_s1 + $0x400] ss:$8 sps:$4 sm:$0xff]  }
  0x4d   : > { %1229 = vmatprep.subr.bf16.mxu1 %v3110_v31  ;;  %v3196_v31 = vld [vmem:[%s4299_s1 + $0x500] ss:$8 sps:$4 sm:$0xff]  }
  0x4f   : > { %1189 = vmatpush1.bf16.msra.mxu0 %v3105_v32  ;;  %v3201_v32 = vld [vmem:[%s4299_s1 + $0x414] ss:$8 sps:$4 sm:$0xff]  }
  0x50   : > { %1230 = vmatpush1.bf16.msra.mxu1 %v3108_v33  ;;  %1190 = vmatprep.subr.bf16.mxu0 %v3113_v34  ;;  %v3204_v33 = vld [vmem:[%s4299_s1 + $0x514] ss:$8 sps:$4 sm:$0xff]   ;;  %v3199_v34 = vld [vmem:[%s4299_s1 + $0x410] ss:$8 sps:$4 sm:$0xff]  }
  0x51   : > { %1231 = vmatprep.subr.bf16.mxu1 %v3116_v35  ;;  %v3202_v35 = vld [vmem:[%s4299_s1 + $0x510] ss:$8 sps:$4 sm:$0xff]  }
  0x53   : > { %1191 = vmatpush1.bf16.msra.mxu0 %v3111_v36  ;;  %v3883_v36 = vld [vmem:[%s3588_s26] sm:$0xee] }
  0x54   : > { %1232 = vmatpush1.bf16.msra.mxu1 %v3114_v37  ;;  %1192 = vmatprep.subr.bf16.mxu0 %v3119_v38  ;;  %v3886_v37 = vld [vmem:[%s3588_s26 + $0x10] sm:$0x11]  ;;  %v3889_v38 = vld [vmem:[%s3588_s26 + $0x8] sm:$0xee] }
  0x55   : > { %1233 = vmatprep.subr.bf16.mxu1 %v3122_v39  ;;  %v3892_v39 = vld [vmem:[%s3588_s26 + $0x18] sm:$0x11] }
  0x57   : > { %1193 = vmatpush1.bf16.msra.mxu0 %v3117_v40  ;;  %v3207_v40 = vld [vmem:[%s4299_s1 + $0x424] ss:$8 sps:$4 sm:$0xff]  }
  0x58   : > { %1234 = vmatpush1.bf16.msra.mxu1 %v3120_v41  ;;  %1194 = vmatprep.subr.bf16.mxu0 %v3125_v42  ;;  %v2777_v41 = vcombine.high %v3883_v36, %v3886_v37  ;;  %v3210_v42 = vld [vmem:[%s4299_s1 + $0x524] ss:$8 sps:$4 sm:$0xff]  }
  0x59   : > { %1235 = vmatprep.subr.bf16.mxu1 %v3128_v43  ;;  %v2779_v43 = vcombine.high %v3889_v38, %v3892_v39 }
  0x5b   : > { %1195 = vmatpush1.bf16.msra.mxu0 %v3123_v44  ;;  %v1360_v44 = vshrl.u32 %v2777_v41, 16 }
  0x5c   : > { %1236 = vmatpush1.bf16.msra.mxu1 %v3126_v45  ;;  %1196 = vmatprep.subr.bf16.mxu0 %v3131_v46  ;;  %v1363_v45 = vshll.u32 %v2777_v41, 16  ;;  %v3205_v46 = vld [vmem:[%s4299_s1 + $0x420] ss:$8 sps:$4 sm:$0xff]   ;;  %v3274_v41 = vld [vmem:[%s4299_s1 + $0x5d0] ss:$8 sps:$4 sm:$0xff]  }
  0x5d   : > { %1237 = vmatprep.subr.bf16.mxu1 %v3134_v47  ;;  %v1376_v47 = vshrl.u32 %v2779_v43, 16  ;;  %v1362_v50 = vrot.slane %v1360_v44, 1 }
  0x5e   : > { %v1365_v51 = vrot.slane %v1363_v45, 2 }
  0x5f   : > { %1197 = vmatpush1.bf16.msra.mxu0 %v3129_v48  ;;  %v1379_v48 = vshll.u32 %v2779_v43, 16 }
  0x60   : > { %1238 = vmatpush1.bf16.msra.mxu1 %v3132_v49  ;;  %1198 = vmatprep.subr.bf16.mxu0 %v3137_v52  ;;  %v3208_v49 = vld [vmem:[%s4299_s1 + $0x520] ss:$8 sps:$4 sm:$0xff]   ;;  %v3213_v52 = vld [vmem:[%s4299_s1 + $0x434] ss:$8 sps:$4 sm:$0xff]  }
  0x61   : > { %1239 = vmatprep.subr.bf16.mxu1 %v3140_v54  ;;  %v1378_v54 = vrot.slane %v1376_v47, 1  ;;  %v1381_v55 = vrot.slane %v1379_v48, 2  ;;  %v3280_v47 = vld [vmem:[%s4299_s1 + $0x5e0] ss:$8 sps:$4 sm:$0xff]   ;;  %v3285_v48 = vld [vmem:[%s4299_s1 + $0x4f4] ss:$8 sps:$4 sm:$0xff]  }
  0x63   : > { %1199 = vmatpush1.bf16.msra.mxu0 %v3135_v56  ;;  %v1366_v56 = vor.u32 %v1365_v51, %v1362_v50 }
  0x64   : > { %1240 = vmatpush1.bf16.msra.mxu1 %v3138_v57  ;;  %1200 = vmatprep.subr.bf16.mxu0 %v3143_v58  ;;  %v3211_v57 = vld [vmem:[%s4299_s1 + $0x430] ss:$8 sps:$4 sm:$0xff]   ;;  %v1382_v58 = vor.u32 %v1381_v55, %v1378_v54  ;;  %v4065_v54 = vld [vmem:[%s3588_s26] sm:$0xcc]  ;;  %v4068_v55 = vld [vmem:[%s3588_s26 + $0x8] sm:$0xcc] }
  0x65   : > { %1241 = vmatprep.subr.bf16.mxu1 %v3146_v59  ;;  %v3214_v59 = vld [vmem:[%s4299_s1 + $0x530] ss:$8 sps:$4 sm:$0xff]   ;;  %s2510_s26 = sshll.u32 %s4306_s22, 1 }
  0x66   : > { %s268_s11 = scalar_lea.vmem %s4303_s5, %s2510_s26  ;;  %s272_s14 = scalar_lea.vmem %s4304_s6, %s2510_s26 }
  0x67   : > { %1201 = vmatpush1.bf16.msra.mxu0 %v3141_v60  ;;  %v3219_v60 = vld [vmem:[%s4299_s1 + $0x444] ss:$8 sps:$4 sm:$0xff]  }
  0x68   : > { %1242 = vmatpush1.bf16.msra.mxu1 %v3144_v61  ;;  %1202 = vmatprep.subr.bf16.mxu0 %v3149_v62  ;;  %v3222_v61 = vld [vmem:[%s4299_s1 + $0x544] ss:$8 sps:$4 sm:$0xff]   ;;  %v3217_v62 = vld [vmem:[%s4299_s1 + $0x440] ss:$8 sps:$4 sm:$0xff]  }
  0x69   : > { %1243 = vmatprep.subr.bf16.mxu1 %v3152_v63  ;;  %v3220_v63 = vld [vmem:[%s4299_s1 + $0x540] ss:$8 sps:$4 sm:$0xff]  }
  0x6b   : > { %1203 = vmatpush1.bf16.msra.mxu0 %v3147_v0  ;;  %v3225_v0 = vld [vmem:[%s4299_s1 + $0x454] ss:$8 sps:$4 sm:$0xff]  }
  0x6c   : > { %1244 = vmatpush1.bf16.msra.mxu1 %v3150_v1  ;;  %1204 = vmatprep.subr.bf16.mxu0 %v3155_v2  ;;  %v3228_v1 = vld [vmem:[%s4299_s1 + $0x554] ss:$8 sps:$4 sm:$0xff]   ;;  %v3223_v2 = vld [vmem:[%s4299_s1 + $0x450] ss:$8 sps:$4 sm:$0xff]  }
  0x6d   : > { %1245 = vmatprep.subr.bf16.mxu1 %v3158_v3  ;;  %v3226_v3 = vld [vmem:[%s4299_s1 + $0x550] ss:$8 sps:$4 sm:$0xff]  }
  0x6f   : > { %1205 = vmatpush1.bf16.msra.mxu0 %v3153_v4  ;;  %v3231_v4 = vld [vmem:[%s4299_s1 + $0x464] ss:$8 sps:$4 sm:$0xff]  }
  0x70   : > { %1246 = vmatpush1.bf16.msra.mxu1 %v3156_v5  ;;  %1206 = vmatprep.subr.bf16.mxu0 %v3161_v6  ;;  %v3234_v5 = vld [vmem:[%s4299_s1 + $0x564] ss:$8 sps:$4 sm:$0xff]   ;;  %v3229_v6 = vld [vmem:[%s4299_s1 + $0x460] ss:$8 sps:$4 sm:$0xff]  }
  0x71   : > { %1247 = vmatprep.subr.bf16.mxu1 %v3164_v7  ;;  %v3232_v7 = vld [vmem:[%s4299_s1 + $0x560] ss:$8 sps:$4 sm:$0xff]  }
  0x73   : > { %1207 = vmatpush1.bf16.msra.mxu0 %v3159_v8  ;;  %v3237_v8 = vld [vmem:[%s4299_s1 + $0x474] ss:$8 sps:$4 sm:$0xff]  }
  0x74   : > { %1248 = vmatpush1.bf16.msra.mxu1 %v3162_v9  ;;  %1208 = vmatprep.subr.bf16.mxu0 %v3167_v10  ;;  %v3240_v9 = vld [vmem:[%s4299_s1 + $0x574] ss:$8 sps:$4 sm:$0xff]   ;;  %v3235_v10 = vld [vmem:[%s4299_s1 + $0x470] ss:$8 sps:$4 sm:$0xff]  }
  0x75   : > { %1249 = vmatprep.subr.bf16.mxu1 %v3170_v11  ;;  %v3238_v11 = vld [vmem:[%s4299_s1 + $0x570] ss:$8 sps:$4 sm:$0xff]  }
  0x77   : > { %1209 = vmatpush1.bf16.msra.mxu0 %v3165_v12  ;;  %v3243_v12 = vld [vmem:[%s4299_s1 + $0x484] ss:$8 sps:$4 sm:$0xff]  }
  0x78   : > { %1250 = vmatpush1.bf16.msra.mxu1 %v3168_v13  ;;  %1210 = vmatprep.subr.bf16.mxu0 %v3173_v14  ;;  %v3246_v13 = vld [vmem:[%s4299_s1 + $0x584] ss:$8 sps:$4 sm:$0xff]   ;;  %v3241_v14 = vld [vmem:[%s4299_s1 + $0x480] ss:$8 sps:$4 sm:$0xff]  }
  0x79   : > { %1251 = vmatprep.subr.bf16.mxu1 %v3176_v15  ;;  %v3244_v15 = vld [vmem:[%s4299_s1 + $0x580] ss:$8 sps:$4 sm:$0xff]  }
  0x7b   : > { %1211 = vmatpush1.bf16.msra.mxu0 %v3171_v16  ;;  %v3249_v16 = vld [vmem:[%s4299_s1 + $0x494] ss:$8 sps:$4 sm:$0xff]  }
  0x7c   : > { %1252 = vmatpush1.bf16.msra.mxu1 %v3174_v17  ;;  %1212 = vmatprep.subr.bf16.mxu0 %v3179_v18  ;;  %v3252_v17 = vld [vmem:[%s4299_s1 + $0x594] ss:$8 sps:$4 sm:$0xff]   ;;  %v3247_v18 = vld [vmem:[%s4299_s1 + $0x490] ss:$8 sps:$4 sm:$0xff]  }
  0x7d   : > { %1253 = vmatprep.subr.bf16.mxu1 %v3182_v19  ;;  %v3250_v19 = vld [vmem:[%s4299_s1 + $0x590] ss:$8 sps:$4 sm:$0xff]  }
  0x7f   : > { %1213 = vmatpush1.bf16.msra.mxu0 %v3177_v20  ;;  %v3255_v20 = vld [vmem:[%s4299_s1 + $0x4a4] ss:$8 sps:$4 sm:$0xff]  }
  0x80   : > { %1254 = vmatpush1.bf16.msra.mxu1 %v3180_v21  ;;  %1214 = vmatprep.subr.bf16.mxu0 %v3185_v22  ;;  %v3258_v21 = vld [vmem:[%s4299_s1 + $0x5a4] ss:$8 sps:$4 sm:$0xff]   ;;  %v3253_v22 = vld [vmem:[%s4299_s1 + $0x4a0] ss:$8 sps:$4 sm:$0xff]  }
  0x81   : > { %1255 = vmatprep.subr.bf16.mxu1 %v3188_v23  ;;  %v3256_v23 = vld [vmem:[%s4299_s1 + $0x5a0] ss:$8 sps:$4 sm:$0xff]  }
  0x83   : > { %1215 = vmatpush1.bf16.msra.mxu0 %v3183_v24  ;;  %v3261_v24 = vld [vmem:[%s4299_s1 + $0x4b4] ss:$8 sps:$4 sm:$0xff]  }
  0x84   : > { %1256 = vmatpush1.bf16.msra.mxu1 %v3186_v25  ;;  %1707 = vmatprep.subr.bf16.mxu0 %v3195_v26  ;;  %v3264_v25 = vld [vmem:[%s4299_s1 + $0x5b4] ss:$8 sps:$4 sm:$0xff]   ;;  %v3259_v26 = vld [vmem:[%s4299_s1 + $0x4b0] ss:$8 sps:$4 sm:$0xff]  }
  0x85   : > { %1748 = vmatprep.subr.bf16.mxu1 %v3198_v27  ;;  %v3262_v27 = vld [vmem:[%s4299_s1 + $0x5b0] ss:$8 sps:$4 sm:$0xff]  }
  0x86   : > { %1217 = vmatmul.mubr.bf16.vlgmr.msra.gmra.mrb[4].mxu0 %v2644_v28  ;;  %v3267_v28 = vld [vmem:[%s4299_s1 + $0x4c4] ss:$8 sps:$4 sm:$0xff]  }
  0x87   : > { %1258 = vmatmul.mubr.bf16.vlgmr.msra.gmra.mrb[4].mxu1 %v2646_v29  ;;  %1708 = vmatpush1.bf16.msra.mxu0 %v3193_v30  ;;  %v3270_v29 = vld [vmem:[%s4299_s1 + $0x5c4] ss:$8 sps:$4 sm:$0xff]   ;;  %v3265_v30 = vld [vmem:[%s4299_s1 + $0x4c0] ss:$8 sps:$4 sm:$0xff]  }
  0x88   : > { %1749 = vmatpush1.bf16.msra.mxu1 %v3196_v31  ;;  %1709 = vmatprep.subr.bf16.mxu0 %v3201_v32  ;;  %v3268_v31 = vld [vmem:[%s4299_s1 + $0x5c0] ss:$8 sps:$4 sm:$0xff]   ;;  %v3273_v32 = vld [vmem:[%s4299_s1 + $0x4d4] ss:$8 sps:$4 sm:$0xff]  }
  0x89   : > { %1750 = vmatprep.subr.bf16.mxu1 %v3204_v33  ;;  %1739 = vmatprep.mubr.bf16.mxu0 %v1366_v56  ;;  %v3276_v33 = vld [vmem:[%s4299_s1 + $0x5d4] ss:$8 sps:$4 sm:$0xff]   ;;  %v3283_v56 = vld [vmem:[%s4299_s1 + $0x4f0] ss:$8 sps:$4 sm:$0xff]  }
  0x8a   : > { %1780 = vmatprep.mubr.bf16.mxu1 %v1382_v58  ;;  %v3295_v58 = vld [vmem:[%s4299_s1 + $0x604] ss:$8 sps:$4 sm:$0xff]  }
  0x8b   : > { %1710 = vmatpush1.bf16.msra.mxu0 %v3199_v34  ;;  %v2776_v34 = vcombine.low %v3883_v36, %v3886_v37  ;;  %v3282_v36 = vld [vmem:[%s4299_s1 + $0x5e4] ss:$8 sps:$4 sm:$0xff]  }
  0x8c   : > { %1751 = vmatpush1.bf16.msra.mxu1 %v3202_v35  ;;  %1711 = vmatprep.subr.bf16.mxu0 %v3207_v40  ;;  %v2778_v35 = vcombine.low %v3889_v38, %v3892_v39  ;;  %v3271_v40 = vld [vmem:[%s4299_s1 + $0x4d0] ss:$8 sps:$4 sm:$0xff]  }
  0x8d   : > { %1752 = vmatprep.subr.bf16.mxu1 %v3210_v42  ;;  %v3279_v42 = vld [vmem:[%s4299_s1 + $0x4e4] ss:$8 sps:$4 sm:$0xff]   ;;  %v1352_v38 = vshrl.u32 %v2776_v34, 16  ;;  %v1355_v43 = vshll.u32 %v2776_v34, 16 }
  0x8e   : > { %v1368_v44 = vshrl.u32 %v2778_v35, 16  ;;  %v1371_v45 = vshll.u32 %v2778_v35, 16  ;;  %v3343_v34 = vld [vmem:[%s4299_s1 + $0x684] ss:$8 sps:$4 sm:$0xff]  }
  0x8f   : > { %1712 = vmatpush1.bf16.msra.mxu0 %v3205_v46  ;;  %v3277_v46 = vld [vmem:[%s4299_s1 + $0x4e0] ss:$8 sps:$4 sm:$0xff]   ;;  %v1354_v50 = vrot.slane %v1352_v38, 1  ;;  %v1357_v51 = vrot.slane %v1355_v43, 2  ;;  %v3346_v35 = vld [vmem:[%s4299_s1 + $0x784] ss:$8 sps:$4 sm:$0xff]  }
  0x90   : > { %1753 = vmatpush1.bf16.msra.mxu1 %v3208_v49  ;;  %1713 = vmatprep.subr.bf16.mxu0 %v3213_v52  ;;  %v3288_v49 = vld [vmem:[%s4299_s1 + $0x5f4] ss:$8 sps:$4 sm:$0xff]   ;;  %v1370_v52 = vrot.slane %v1368_v44, 1  ;;  %v3347_v38 = vld [vmem:[%s4299_s1 + $0x690] ss:$8 sps:$4 sm:$0xff]  }
  0x91   : > { %1754 = vmatprep.subr.bf16.mxu1 %v3216_v53  ;;  %v1373_v53 = vrot.slane %v1371_v45, 2  ;;  %v3350_v43 = vld [vmem:[%s4299_s1 + $0x790] ss:$8 sps:$4 sm:$0xff]   ;;  %v3355_v44 = vld [vmem:[%s4299_s1 + $0x6a4] ss:$8 sps:$4 sm:$0xff]  }
  0x92   : > { %v3358_v45 = vld [vmem:[%s4299_s1 + $0x7a4] ss:$8 sps:$4 sm:$0xff]  }
  0x93   : > { %1714 = vmatpush1.bf16.msra.mxu0 %v3211_v57  ;;  %v3286_v57 = vld [vmem:[%s4299_s1 + $0x5f0] ss:$8 sps:$4 sm:$0xff]  }
  0x94   : > { %1755 = vmatpush1.bf16.msra.mxu1 %v3214_v59  ;;  %1715 = vmatprep.subr.bf16.mxu0 %v3219_v60  ;;  %v3298_v59 = vld [vmem:[%s4299_s1 + $0x704] ss:$8 sps:$4 sm:$0xff]   ;;  %v2909_v60 = vcombine.high %v4065_v54, %v3886_v37 }
  0x95   : > { %1756 = vmatprep.subr.bf16.mxu1 %v3222_v61  ;;  %v2911_v61 = vcombine.high %v4068_v55, %v3892_v39 }
  0x97   : > { %1716 = vmatpush1.bf16.msra.mxu0 %v3217_v62  ;;  %v1358_v62 = vor.u32 %v1357_v51, %v1354_v50  ;;  %v3359_v50 = vld [vmem:[%s4299_s1 + $0x6b0] ss:$8 sps:$4 sm:$0xff]  }
  0x98   : > { %1757 = vmatpush1.bf16.msra.mxu1 %v3220_v63  ;;  %1717 = vmatprep.subr.bf16.mxu0 %v3225_v0  ;;  %v1374_v63 = vor.u32 %v1373_v53, %v1370_v52  ;;  %v3293_v0 = vld [vmem:[%s4299_s1 + $0x600] ss:$8 sps:$4 sm:$0xff]   ;;  %v3362_v51 = vld [vmem:[%s4299_s1 + $0x7b0] ss:$8 sps:$4 sm:$0xff]   ;;  %v3367_v52 = vld [vmem:[%s4299_s1 + $0x6c4] ss:$8 sps:$4 sm:$0xff]  }
  0x99   : > { %1758 = vmatprep.subr.bf16.mxu1 %v3228_v1  ;;  %v3296_v1 = vld [vmem:[%s4299_s1 + $0x700] ss:$8 sps:$4 sm:$0xff]   ;;  %v3370_v53 = vld [vmem:[%s4299_s1 + $0x7c4] ss:$8 sps:$4 sm:$0xff]  }
  0x9b   : > { %1718 = vmatpush1.bf16.msra.mxu0 %v3223_v2  ;;  %v3301_v2 = vld [vmem:[%s4299_s1 + $0x614] ss:$8 sps:$4 sm:$0xff]  }
  0x9c   : > { %1759 = vmatpush1.bf16.msra.mxu1 %v3226_v3  ;;  %1719 = vmatprep.subr.bf16.mxu0 %v3231_v4  ;;  %v3304_v3 = vld [vmem:[%s4299_s1 + $0x714] ss:$8 sps:$4 sm:$0xff]   ;;  %v1869_v4 = vrot.slane %v2909_v60, 2  ;;  %v3371_v60 = vld [vmem:[%s4299_s1 + $0x6d0] ss:$8 sps:$4 sm:$0xff]  }
  0x9d   : > { %1760 = vmatprep.subr.bf16.mxu1 %v3234_v5  ;;  %v1871_v5 = vrot.slane %v2911_v61, 2  ;;  %v3374_v61 = vld [vmem:[%s4299_s1 + $0x7d0] ss:$8 sps:$4 sm:$0xff]  }
  0x9f   : > { %1720 = vmatpush1.bf16.msra.mxu0 %v3229_v6  ;;  %v3299_v6 = vld [vmem:[%s4299_s1 + $0x610] ss:$8 sps:$4 sm:$0xff]  }
  0xa0   : > { %1761 = vmatpush1.bf16.msra.mxu1 %v3232_v7  ;;  %1721 = vmatprep.subr.bf16.mxu0 %v3237_v8  ;;  %v3302_v7 = vld [vmem:[%s4299_s1 + $0x710] ss:$8 sps:$4 sm:$0xff]   ;;  %v3307_v8 = vld [vmem:[%s4299_s1 + $0x624] ss:$8 sps:$4 sm:$0xff]  }
  0xa1   : > { %1762 = vmatprep.subr.bf16.mxu1 %v3240_v9  ;;  %v3310_v9 = vld [vmem:[%s4299_s1 + $0x724] ss:$8 sps:$4 sm:$0xff]  }
  0xa3   : > { %1722 = vmatpush1.bf16.msra.mxu0 %v3235_v10  ;;  %v3305_v10 = vld [vmem:[%s4299_s1 + $0x620] ss:$8 sps:$4 sm:$0xff]  }
  0xa4   : > { %1763 = vmatpush1.bf16.msra.mxu1 %v3238_v11  ;;  %1723 = vmatprep.subr.bf16.mxu0 %v3243_v12  ;;  %v3308_v11 = vld [vmem:[%s4299_s1 + $0x720] ss:$8 sps:$4 sm:$0xff]   ;;  %v3313_v12 = vld [vmem:[%s4299_s1 + $0x634] ss:$8 sps:$4 sm:$0xff]  }
  0xa5   : > { %1764 = vmatprep.subr.bf16.mxu1 %v3246_v13  ;;  %v3316_v13 = vld [vmem:[%s4299_s1 + $0x734] ss:$8 sps:$4 sm:$0xff]  }
  0xa7   : > { %1724 = vmatpush1.bf16.msra.mxu0 %v3241_v14  ;;  %v3311_v14 = vld [vmem:[%s4299_s1 + $0x630] ss:$8 sps:$4 sm:$0xff]  }
  0xa8   : > { %1765 = vmatpush1.bf16.msra.mxu1 %v3244_v15  ;;  %1725 = vmatprep.subr.bf16.mxu0 %v3249_v16  ;;  %v3314_v15 = vld [vmem:[%s4299_s1 + $0x730] ss:$8 sps:$4 sm:$0xff]   ;;  %v3319_v16 = vld [vmem:[%s4299_s1 + $0x644] ss:$8 sps:$4 sm:$0xff]  }
  0xa9   : > { %1766 = vmatprep.subr.bf16.mxu1 %v3252_v17  ;;  %v3322_v17 = vld [vmem:[%s4299_s1 + $0x744] ss:$8 sps:$4 sm:$0xff]  }
  0xab   : > { %1726 = vmatpush1.bf16.msra.mxu0 %v3247_v18  ;;  %v3317_v18 = vld [vmem:[%s4299_s1 + $0x640] ss:$8 sps:$4 sm:$0xff]  }
  0xac   : > { %1767 = vmatpush1.bf16.msra.mxu1 %v3250_v19  ;;  %1727 = vmatprep.subr.bf16.mxu0 %v3255_v20  ;;  %v3320_v19 = vld [vmem:[%s4299_s1 + $0x740] ss:$8 sps:$4 sm:$0xff]   ;;  %v3325_v20 = vld [vmem:[%s4299_s1 + $0x654] ss:$8 sps:$4 sm:$0xff]  }
  0xad   : > { %1768 = vmatprep.subr.bf16.mxu1 %v3258_v21  ;;  %v3328_v21 = vld [vmem:[%s4299_s1 + $0x754] ss:$8 sps:$4 sm:$0xff]  }
  0xaf   : > { %1728 = vmatpush1.bf16.msra.mxu0 %v3253_v22  ;;  %v3323_v22 = vld [vmem:[%s4299_s1 + $0x650] ss:$8 sps:$4 sm:$0xff]  }
  0xb0   : > { %1769 = vmatpush1.bf16.msra.mxu1 %v3256_v23  ;;  %1729 = vmatprep.subr.bf16.mxu0 %v3261_v24  ;;  %v3326_v23 = vld [vmem:[%s4299_s1 + $0x750] ss:$8 sps:$4 sm:$0xff]   ;;  %v3331_v24 = vld [vmem:[%s4299_s1 + $0x664] ss:$8 sps:$4 sm:$0xff]  }
  0xb1   : > { %1770 = vmatprep.subr.bf16.mxu1 %v3264_v25  ;;  %v3334_v25 = vld [vmem:[%s4299_s1 + $0x764] ss:$8 sps:$4 sm:$0xff]  }
  0xb3   : > { %1730 = vmatpush1.bf16.msra.mxu0 %v3259_v26  ;;  %v3329_v26 = vld [vmem:[%s4299_s1 + $0x660] ss:$8 sps:$4 sm:$0xff]  }
  0xb4   : > { %1771 = vmatpush1.bf16.msra.mxu1 %v3262_v27  ;;  %1731 = vmatprep.subr.bf16.mxu0 %v3267_v28  ;;  %v3332_v27 = vld [vmem:[%s4299_s1 + $0x760] ss:$8 sps:$4 sm:$0xff]   ;;  %v3337_v28 = vld [vmem:[%s4299_s1 + $0x674] ss:$8 sps:$4 sm:$0xff]  }
  0xb5   : > { %1772 = vmatprep.subr.bf16.mxu1 %v3270_v29  ;;  %v3340_v29 = vld [vmem:[%s4299_s1 + $0x774] ss:$8 sps:$4 sm:$0xff]  }
  0xb7   : > { %1732 = vmatpush1.bf16.msra.mxu0 %v3265_v30  ;;  %v3401_v30 = vmov 0  }
  0xb8   : > { %1773 = vmatpush1.bf16.msra.mxu1 %v3268_v31  ;;  %1733 = vmatprep.subr.bf16.mxu0 %v3273_v32  ;;  %v2303_v31 = vld [vmem:[%s4301_s3] sm:$0x3f]  ;;  %v3335_v32 = vld [vmem:[%s4299_s1 + $0x670] ss:$8 sps:$4 sm:$0xff]  }
  0xb9   : > { %1774 = vmatprep.subr.bf16.mxu1 %v3276_v33  ;;  %2992 = vset.pattern.permute.xlu0 %v3401_v30  ;;  %v3338_v33 = vld [vmem:[%s4299_s1 + $0x770] ss:$8 sps:$4 sm:$0xff]  }
  0xba   : > { %2306 = vperm.xlu0 %2992, %v2303_v31  }
  0xbb   : > { %1734 = vmatpush1.bf16.msra.mxu0 %v3271_v40  ;;  %v3341_v40 = vld [vmem:[%s4299_s1 + $0x680] ss:$8 sps:$4 sm:$0xff]  }
  0xbc   : > { %1775 = vmatpush1.bf16.msra.mxu1 %v3274_v41  ;;  %1735 = vmatprep.subr.bf16.mxu0 %v3279_v42  ;;  %v3344_v41 = vld [vmem:[%s4299_s1 + $0x780] ss:$8 sps:$4 sm:$0xff]   ;;  %v3349_v42 = vld [vmem:[%s4299_s1 + $0x694] ss:$8 sps:$4 sm:$0xff]  }
  0xbd   : > { %1776 = vmatprep.subr.bf16.mxu1 %v3282_v36  ;;  %v3352_v36 = vld [vmem:[%s4299_s1 + $0x794] ss:$8 sps:$4 sm:$0xff]  }
  0xbf   : > { %1736 = vmatpush1.bf16.msra.mxu0 %v3277_v46  ;;  %v3353_v46 = vld [vmem:[%s4299_s1 + $0x6a0] ss:$8 sps:$4 sm:$0xff]  }
  0xc0   : > { %1777 = vmatpush1.bf16.msra.mxu1 %v3280_v47  ;;  %1737 = vmatprep.subr.bf16.mxu0 %v3285_v48  ;;  %v3356_v47 = vld [vmem:[%s4299_s1 + $0x7a0] ss:$8 sps:$4 sm:$0xff]   ;;  %v3361_v48 = vld [vmem:[%s4299_s1 + $0x6b4] ss:$8 sps:$4 sm:$0xff]  }
  0xc1   : > { %1778 = vmatprep.subr.bf16.mxu1 %v3288_v49  ;;  %v3364_v49 = vld [vmem:[%s4299_s1 + $0x7b4] ss:$8 sps:$4 sm:$0xff]  }
  0xc3   : > { %1738 = vmatpush1.bf16.msra.mxu0 %v3283_v56  ;;  %v3365_v56 = vld [vmem:[%s4299_s1 + $0x6c0] ss:$8 sps:$4 sm:$0xff]  }
  0xc4   : > { %1779 = vmatpush1.bf16.msra.mxu1 %v3286_v57  ;;  %2196 = vmatprep.subr.bf16.mxu0 %v3295_v58  ;;  %v3368_v57 = vld [vmem:[%s4299_s1 + $0x7c0] ss:$8 sps:$4 sm:$0xff]   ;;  %v3373_v58 = vld [vmem:[%s4299_s1 + $0x6d4] ss:$8 sps:$4 sm:$0xff]  }
  0xc5   : > { %2237 = vmatprep.subr.bf16.mxu1 %v3298_v59  ;;  %v3376_v59 = vld [vmem:[%s4299_s1 + $0x7d4] ss:$8 sps:$4 sm:$0xff]  }
  0xc6   : > { %1740 = vmatmul.mubr.bf16.vlgmr.msra.gmra.mrb[8].mxu0 %v1358_v62  ;;  %v3379_v62 = vld [vmem:[%s4299_s1 + $0x6e4] ss:$8 sps:$4 sm:$0xff]  }
  0xc7   : > { %1781 = vmatmul.mubr.bf16.vlgmr.msra.gmra.mrb[8].mxu1 %v1374_v63  ;;  %2197 = vmatpush1.bf16.msra.mxu0 %v3293_v0  ;;  %v3382_v63 = vld [vmem:[%s4299_s1 + $0x7e4] ss:$8 sps:$4 sm:$0xff]   ;;  %v3377_v0 = vld [vmem:[%s4299_s1 + $0x6e0] ss:$8 sps:$4 sm:$0xff]  }
  0xc8   : > { %2238 = vmatpush1.bf16.msra.mxu1 %v3296_v1  ;;  %2198 = vmatprep.subr.bf16.mxu0 %v3301_v2  ;;  %v3380_v1 = vld [vmem:[%s4299_s1 + $0x7e0] ss:$8 sps:$4 sm:$0xff]   ;;  %v3385_v2 = vld [vmem:[%s4299_s1 + $0x6f4] ss:$8 sps:$4 sm:$0xff]  }
  0xc9   : > { %2239 = vmatprep.subr.bf16.mxu1 %v3304_v3  ;;  %2228 = vmatprep.mubr.bf16.mxu0 %v1869_v4  ;;  %v3388_v3 = vld [vmem:[%s4299_s1 + $0x7f4] ss:$8 sps:$4 sm:$0xff]   ;;  %v2908_v4 = vcombine.low %v4065_v54, %v3886_v37 }
  0xca   : > { %2269 = vmatprep.mubr.bf16.mxu1 %v1871_v5  ;;  %v2910_v5 = vcombine.low %v4068_v55, %v3892_v39 }
  0xcb   : > { %2199 = vmatpush1.bf16.msra.mxu0 %v3299_v6  ;;  %v3383_v6 = vld [vmem:[%s4299_s1 + $0x6f0] ss:$8 sps:$4 sm:$0xff]  }
  0xcc   : > { %2240 = vmatpush1.bf16.msra.mxu1 %v3302_v7  ;;  %2200 = vmatprep.subr.bf16.mxu0 %v3307_v8  ;;  %v3386_v7 = vld [vmem:[%s4299_s1 + $0x7f0] ss:$8 sps:$4 sm:$0xff]   ;;  %v1868_v8 = vrot.slane %v2908_v4, 2 }
  0xcd   : > { %2241 = vmatprep.subr.bf16.mxu1 %v3310_v9  ;;  %v1870_v9 = vrot.slane %v2910_v5, 2 }
  0xcf   : > { %2201 = vmatpush1.bf16.msra.mxu0 %v3305_v10 }
  0xd0   : > { %2242 = vmatpush1.bf16.msra.mxu1 %v3308_v11  ;;  %2202 = vmatprep.subr.bf16.mxu0 %v3313_v12 }
  0xd1   : > { %2243 = vmatprep.subr.bf16.mxu1 %v3316_v13 }
  0xd3   : > { %2203 = vmatpush1.bf16.msra.mxu0 %v3311_v14 }
  0xd4   : > { %2244 = vmatpush1.bf16.msra.mxu1 %v3314_v15  ;;  %2204 = vmatprep.subr.bf16.mxu0 %v3319_v16 }
  0xd5   : > { %2245 = vmatprep.subr.bf16.mxu1 %v3322_v17 }
  0xd7   : > { %2205 = vmatpush1.bf16.msra.mxu0 %v3317_v18 }
  0xd8   : > { %2246 = vmatpush1.bf16.msra.mxu1 %v3320_v19  ;;  %2206 = vmatprep.subr.bf16.mxu0 %v3325_v20 }
  0xd9   : > { %2247 = vmatprep.subr.bf16.mxu1 %v3328_v21 }
  0xdb   : > { %2207 = vmatpush1.bf16.msra.mxu0 %v3323_v22 }
  0xdc   : > { %2248 = vmatpush1.bf16.msra.mxu1 %v3326_v23  ;;  %2208 = vmatprep.subr.bf16.mxu0 %v3331_v24 }
  0xdd   : > { %2249 = vmatprep.subr.bf16.mxu1 %v3334_v25 }
  0xdf   : > { %2209 = vmatpush1.bf16.msra.mxu0 %v3329_v26 }
  0xe0   : > { %2250 = vmatpush1.bf16.msra.mxu1 %v3332_v27  ;;  %2210 = vmatprep.subr.bf16.mxu0 %v3337_v28 }
  0xe1   : > { %2251 = vmatprep.subr.bf16.mxu1 %v3340_v29 }
  0xe3   : > { %2211 = vmatpush1.bf16.msra.mxu0 %v3335_v32 }
  0xe4   : > { %2252 = vmatpush1.bf16.msra.mxu1 %v3338_v33  ;;  %2212 = vmatprep.subr.bf16.mxu0 %v3343_v34 }
  0xe5   : > { %2253 = vmatprep.subr.bf16.mxu1 %v3346_v35 }
  0xe7   : > { %2213 = vmatpush1.bf16.msra.mxu0 %v3341_v40 }
  0xe8   : > { %2254 = vmatpush1.bf16.msra.mxu1 %v3344_v41  ;;  %2214 = vmatprep.subr.bf16.mxu0 %v3349_v42 }
  0xe9   : > { %2255 = vmatprep.subr.bf16.mxu1 %v3352_v36 }
  0xeb   : > { %2215 = vmatpush1.bf16.msra.mxu0 %v3347_v38  ;;  %v2282_v38 = vlaneseq }
  0xec   : > { %2256 = vmatpush1.bf16.msra.mxu1 %v3350_v43  ;;  %2216 = vmatprep.subr.bf16.mxu0 %v3355_v44 }
  0xed   : > { %2257 = vmatprep.subr.bf16.mxu1 %v3358_v45  ;;  %v2283_v43 = vshrl.u32 %v2282_v38, 7  ;;  %v2280_v45 = vld [vmem:[%s4300_s2] sm:$0x3]  ;;  %vm2346_vm1 = vcmp.lt.s32.totalorder %v2282_v38, 256 }
  0xef   : > { %2217 = vmatpush1.bf16.msra.mxu0 %v3353_v46  ;;  %v2284_v44 = vsub.s32 0, %v2283_v43  ;;  %v2288_v46 = vsub.s32 1, %v2283_v43 }
  0xf0   : > { %2258 = vmatpush1.bf16.msra.mxu1 %v3356_v47  ;;  %2218 = vmatprep.subr.bf16.mxu0 %v3361_v48 }
  0xf1   : > { %2259 = vmatprep.subr.bf16.mxu1 %v3364_v49 }
  0xf3   : > { %2219 = vmatpush1.bf16.msra.mxu0 %v3359_v50  ;;  %v2285_v50 = vrot.slane %v2280_v45, %v2284_v44 }
  0xf4   : > { %2260 = vmatpush1.bf16.msra.mxu1 %v3362_v51  ;;  %2220 = vmatprep.subr.bf16.mxu0 %v3367_v52 }
  0xf5   : > { %2261 = vmatprep.subr.bf16.mxu1 %v3370_v53 }
  0xf7   : > { %2221 = vmatpush1.bf16.msra.mxu0 %v3365_v56  ;;  %v2289_v56 = vrot.slane %v2280_v45, %v2288_v46 }
  0xf8   : > { %2262 = vmatpush1.bf16.msra.mxu1 %v3368_v57  ;;  %2222 = vmatprep.subr.bf16.mxu0 %v3373_v58 }
  0xf9   : > { %2263 = vmatprep.subr.bf16.mxu1 %v3376_v59 }
  0xfb   : > { %2223 = vmatpush1.bf16.msra.mxu0 %v3371_v60 }
  0xfc   : > { %2264 = vmatpush1.bf16.msra.mxu1 %v3374_v61  ;;  %2224 = vmatprep.subr.bf16.mxu0 %v3379_v62 }
  0xfd   : > { %2265 = vmatprep.subr.bf16.mxu1 %v3382_v63 }
  0xff   : > { %2225 = vmatpush1.bf16.msra.mxu0 %v3377_v0 }
 0x100   : > { %2266 = vmatpush1.bf16.msra.mxu1 %v3380_v1  ;;  %2226 = vmatprep.subr.bf16.mxu0 %v3385_v2 }
 0x101   : > { %2267 = vmatprep.subr.bf16.mxu1 %v3388_v3 }
 0x103   : > { %2227 = vmatpush1.bf16.msra.mxu0 %v3383_v6 }
 0x104   : > { %2268 = vmatpush1.bf16.msra.mxu1 %v3386_v7 }
 0x106   : > { %2229 = vmatmul.mubr.bf16.vlgmr.msra.gmra.mrb[12].mxu0 %v1868_v8 }
 0x107   : > { %2270 = vmatmul.mubr.bf16.vlgmr.msra.gmra.mrb[12].mxu1 %v1870_v9 }
 0x119   : > { %v802_v37 = vpop.f32.mrb[0].mxu0 }
 0x11a   : > { %v843_v39 = vpop.f32.mrb[0].mxu1  ;;  %v804_v55 = vpop.f32.mrb[1].mxu0 }
 0x11b   : > { %v844_v54 = vadd.f32 %v843_v39, %v802_v37  ;;  %v845_v10 = vpop.f32.mrb[1].mxu1  ;;  %v806_v12 = vpop.f32.mrb[2].mxu0 }
 0x11c   : > { %v846_v11 = vadd.f32 %v845_v10, %v804_v55  ;;  %v847_v13 = vpop.f32.mrb[2].mxu1  ;;  %v807_v14 = vpop.f32.mrb[3].mxu0 }
 0x11d   : > { %v848_v15 = vpop.f32.mrb[3].mxu1 }
 0x139   : > { %v2307_v63 = vpop.permute.xlu0 %2306 }
 0x159   : > { %v1218_v16 = vpop.f32.mrb[4].mxu0 }
 0x15a   : > { %v1259_v17 = vpop.f32.mrb[4].mxu1  ;;  %v1219_v18 = vadd.f32 %v1218_v16, %v844_v54  ;;  %v1220_v19 = vpop.f32.mrb[5].mxu0 }
 0x15b   : > { %v1261_v20 = vpop.f32.mrb[5].mxu1  ;;  %v1221_v21 = vadd.f32 %v1220_v19, %v846_v11  ;;  %v1222_v22 = vpop.f32.mrb[6].mxu0  ;;  %v3402_v11 = vmov 1966171168  }
 0x15c   : > { %v1263_v23 = vpop.f32.mrb[6].mxu1  ;;  %v1260_v24 = vadd.f32 %v1259_v17, %v1219_v18  ;;  %v1223_v25 = vpop.f32.mrb[7].mxu0  ;;  %v2330_v12 = vunpack.c.l.s4 %v3402_v11 }
 0x15d   : > { %v1264_v26 = vpop.f32.mrb[7].mxu1  ;;  %v1262_v27 = vadd.f32 %v1261_v20, %v1221_v21 }
 0x15e   : > { %v2331_v21 = vunpack.c.0.s8 %v2330_v12 }
 0x199   : > { %v1741_v28 = vpop.f32.mrb[8].mxu0 }
 0x19a   : > { %v1782_v29 = vpop.f32.mrb[8].mxu1  ;;  %v1743_v31 = vpop.f32.mrb[9].mxu0 }
 0x19b   : > { %v1783_v30 = vadd.f32 %v1782_v29, %v1741_v28  ;;  %v1784_v32 = vpop.f32.mrb[9].mxu1  ;;  %v1745_v34 = vpop.f32.mrb[10].mxu0 }
 0x19c   : > { %v1785_v33 = vadd.f32 %v1784_v32, %v1743_v31  ;;  %v1786_v35 = vpop.f32.mrb[10].mxu1  ;;  %v1746_v41 = vpop.f32.mrb[11].mxu0 }
 0x19d   : > { %v1789_v40 = vadd.f32 %v1783_v30, %v1260_v24  ;;  %v1787_v42 = vpop.f32.mrb[11].mxu1  ;;  %v2334_v30 = vsub.s32 %v2331_v21, %v2283_v43 }
 0x19e   : > { %v1790_v36 = vadd.f32 %v1785_v33, %v1262_v27 }
 0x1d9   : > { %v2230_v47 = vpop.f32.mrb[12].mxu0 }
 0x1da   : > { %v2271_v48 = vpop.f32.mrb[12].mxu1  ;;  %v2232_v51 = vpop.f32.mrb[13].mxu0 }
 0x1db   : > { %v2272_v49 = vadd.f32 %v2271_v48, %v2230_v47  ;;  %v2273_v52 = vpop.f32.mrb[13].mxu1  ;;  %v2234_v57 = vpop.f32.mrb[14].mxu0 }
 0x1dc   : > { %v2274_v53 = vadd.f32 %v2273_v52, %v2232_v51  ;;  %v2275_v58 = vpop.f32.mrb[14].mxu1  ;;  %v2235_v60 = vpop.f32.mrb[15].mxu0 }
 0x1dd   : > { %v2278_v59 = vadd.f32 %v2272_v49, %v1789_v40  ;;  %v2276_v61 = vpop.f32.mrb[15].mxu1 }
 0x1de   : > { %v2279_v62 = vadd.f32 %v2274_v53, %v1790_v36 }
 0x1df   : > { %v2292_v0 = vadd.f32 %v2285_v50, %v2278_v59 }
 0x1e0   : > { %v2293_v1 = vadd.f32 %v2289_v56, %v2279_v62 }
 0x1e1   : > { %v2309_v2 = vmul.f32 %v2307_v63, %v2292_v0 }
 0x1e2   : > { %v2981_v3 = vpack.c.bf16 %v2293_v1, %v2292_v0  ;;  %v2310_v4 = vmul.f32 %v2307_v63, %v2293_v1 }
 0x1e3   : > { %v2312_v5 = vsel %vm2311_vm0, %v2309_v2, 0.0  ;;  %v2349_v6 = vmul.f32 %v2309_v2, %v2292_v0 }
 0x1e4   : > { %2302 = vst [vmem:[%s264_s8] sm:$0x77] %v2981_v3  ;;  %v2313_v7 = vrot.slane %v2312_v5, 4  ;;  %v2319_v8 = vsel %vm2311_vm0, %v2310_v4, 0.0  ;;  %v2350_v9 = vmul.f32 %v2310_v4, %v2293_v1 }
 0x1e5   : > { %v2320_v37 = vrot.slane %v2319_v8, 4  ;;  %v2351_v39 = vsel %vm2311_vm0, %v2349_v6, 0.0 }
 0x1e6   : > { %v2314_v54 = vadd.f32 %v2313_v7, %v2312_v5  ;;  %v2352_v55 = vrot.slane %v2351_v39, 4  ;;  %v2358_v10 = vsel %vm2311_vm0, %v2350_v9, 0.0 }
 0x1e7   : > { %v2321_v13 = vadd.f32 %v2320_v37, %v2319_v8  ;;  %v2359_v14 = vrot.slane %v2358_v10, 4 }
 0x1e8   : > { %v2315_v15 = vrot.slane %v2314_v54, 2  ;;  %v2353_v16 = vadd.f32 %v2352_v55, %v2351_v39 }
 0x1e9   : > { %v2322_v17 = vrot.slane %v2321_v13, 2  ;;  %v2360_v18 = vadd.f32 %v2359_v14, %v2358_v10 }
 0x1ea   : > { %v2316_v19 = vadd.f32 %v2315_v15, %v2314_v54  ;;  %v2354_v20 = vrot.slane %v2353_v16, 2 }
 0x1eb   : > { %v2323_v22 = vadd.f32 %v2322_v17, %v2321_v13  ;;  %v2361_v23 = vrot.slane %v2360_v18, 2 }
 0x1ec   : > { %v2317_v24 = vrot.slane %v2316_v19, 1  ;;  %v2355_v25 = vadd.f32 %v2354_v20, %v2353_v16 }
 0x1ed   : > { %v2324_v26 = vrot.slane %v2323_v22, 1  ;;  %v2362_v27 = vadd.f32 %v2361_v23, %v2360_v18 }
 0x1ee   : > { %v2318_v28 = vadd.f32 %v2317_v24, %v2316_v19  ;;  %v2356_v29 = vrot.slane %v2355_v25, 1 }
 0x1ef   : > { %v2325_v31 = vadd.f32 %v2324_v26, %v2323_v22  ;;  %v2363_v32 = vrot.slane %v2362_v27, 1 }
 0x1f0   : > { %v2357_v33 = vadd.f32 %v2356_v29, %v2355_v25 }
 0x1f1   : > { %v2328_v34 = vcombine.low %v2318_v28, %v2325_v31  ;;  %v2364_v35 = vadd.f32 %v2363_v32, %v2362_v27 }
 0x1f3   : > { %v2335_v40 = vrot.slane %v2328_v34, %v2334_v30  ;;  %v2367_v41 = vcombine.low %v2357_v33, %v2364_v35 }
 0x1f5   : > { %v2342_v42 = vrot.slane %v2335_v40, %v2334_v30  ;;  %v2374_v36 = vrot.slane %v2367_v41, %v2334_v30 }
 0x1f7   : > { %2348 = vst.msk [vmem:[%s268_s11] sm:$0x3] %vm2346_vm1, %v2342_v42  ;;  %v2381_v43 = vrot.slane %v2374_v36, %v2334_v30 }
 0x1f9   : > { %2383 = vst.msk [vmem:[%s272_s14] sm:$0x3] %vm2346_vm1, %v2381_v43 }
 0x1fa PF: > { %s17_s21 = sadd.s32 1, %s3399_s21  }
 0x1fb   : > { %p14_p4 = scmp.ge.s32.totalorder %s17_s21, 4  }
 0x1fd   :  { %16 = sbr.rel (!%p14_p4) target bundleno = 1 (0x1), region = 93 }

// kernel: simple_discriminator_forward.7
= control target key start
LH: loop header
LB: loop body
LE: loop exit
PB: predicated region body
PF: predicated region fallthrough
CT: control target
= control target key end

     0   :  { %s4556_s12 = smov 0   ;;  %s5373_s0 = inlined_call_operand.vmem [shape: bf16[2,8,1024], index: 0, kind: input, shape index: {}]   ;;  %s5374_s1 = inlined_call_operand.vmem [shape: bf16[4,1024,128], index: 1, kind: input, shape index: {}]   ;;  %s5375_s2 = inlined_call_operand.vmem [shape: f32[1,128], index: 2, kind: input, shape index: {}]   ;;  %s5376_s3 = inlined_call_operand.vmem [shape: f32[2,2,128], index: 3, kind: output, shape index: {}]  }
   0x1 LB: > { %s3192_s13 = sadd.s32 4294967295, %s4534_s12   ;;  %p3196_p0 = scmp.ge.s32.totalorder %s4534_s12, 1  ;;  %s4534_s12 = sphi %s4556_s12, %s13_s12  }
   0x2   : > { %p137_p1 = scmp.lt.s32.totalorder %s4534_s12, 3 }
   0x4   : > { %p138_p2 = pnand %p3196_p0, %p137_p1 }
   0x5   : > { %v4236_v0 = vld [vmem:[%s5374_s1 + $0x240] sm:$0xff] (!%p138_p2)   ;;  %v4240_v4 = vld [vmem:[%s5374_s1 + $0x248] sm:$0xff] (!%p138_p2)   ;;  %v4244_v8 = vld [vmem:[%s5374_s1 + $0x250] sm:$0xff] (!%p138_p2)   ;;  %p160_p3 = scmp.lt.s32.totalorder (!%p138_p2), %s3192_s13, 1 }
   0x6   : > { %141 = sbr.rel (%p138_p2) target bundleno = 524 (0x20c), region = 32  ;;  %v4237_v1 = vld [vmem:[%s5374_s1 + $0x2c0] sm:$0xff] (!%p138_p2)   ;;  %3876 = vmatprep.subr.bf16.mxu0 (!%p138_p2), %v4236_v0  ;;  %v4241_v5 = vld [vmem:[%s5374_s1 + $0x2c8] sm:$0xff] (!%p138_p2)   ;;  %v4245_v9 = vld [vmem:[%s5374_s1 + $0x2d0] sm:$0xff] (!%p138_p2)  }
   0x7   : > { %v4238_v2 = vld [vmem:[%s5374_s1 + $0x200] sm:$0xff] (!%p138_p2)   ;;  %3898 = vmatprep.subr.bf16.mxu1 (!%p138_p2), %v4237_v1  ;;  %v4242_v6 = vld [vmem:[%s5374_s1 + $0x208] sm:$0xff] (!%p138_p2)   ;;  %v4246_v10 = vld [vmem:[%s5374_s1 + $0x210] sm:$0xff] (!%p138_p2)  }
   0x8   : > { %v4239_v3 = vld [vmem:[%s5374_s1 + $0x280] sm:$0xff] (!%p138_p2)   ;;  %3877 = vmatpush3.bf16.msra.mxu0 (!%p138_p2), %v4238_v2  ;;  %v4243_v7 = vld [vmem:[%s5374_s1 + $0x288] sm:$0xff] (!%p138_p2)   ;;  %v4247_v11 = vld [vmem:[%s5374_s1 + $0x290] sm:$0xff] (!%p138_p2)  }
   0x9   : > { %3899 = vmatpush3.bf16.msra.mxu1 (!%p138_p2), %v4239_v3  ;;  %3878 = vmatprep.subr.bf16.mxu0 (!%p138_p2), %v4240_v4  ;;  %v4248_v12 = vld [vmem:[%s5374_s1 + $0x258] sm:$0xff] (!%p138_p2)   ;;  %v4252_v16 = vld [vmem:[%s5374_s1 + $0x260] sm:$0xff] (!%p138_p2)   ;;  %v4256_v20 = vld [vmem:[%s5374_s1 + $0x268] sm:$0xff] (!%p138_p2)  }
   0xa   : > { %3900 = vmatprep.subr.bf16.mxu1 (!%p138_p2), %v4241_v5  ;;  %v4249_v13 = vld [vmem:[%s5374_s1 + $0x2d8] sm:$0xff] (!%p138_p2)   ;;  %v4253_v17 = vld [vmem:[%s5374_s1 + $0x2e0] sm:$0xff] (!%p138_p2)   ;;  %v4257_v21 = vld [vmem:[%s5374_s1 + $0x2e8] sm:$0xff] (!%p138_p2)  }
   0xb   : > { %v4250_v14 = vld [vmem:[%s5374_s1 + $0x218] sm:$0xff] (!%p138_p2)   ;;  %v4254_v18 = vld [vmem:[%s5374_s1 + $0x220] sm:$0xff] (!%p138_p2)   ;;  %v4258_v22 = vld [vmem:[%s5374_s1 + $0x228] sm:$0xff] (!%p138_p2)  }
   0xc   : > { %3879 = vmatpush3.bf16.msra.mxu0 (!%p138_p2), %v4242_v6  ;;  %v4251_v15 = vld [vmem:[%s5374_s1 + $0x298] sm:$0xff] (!%p138_p2)   ;;  %v4255_v19 = vld [vmem:[%s5374_s1 + $0x2a0] sm:$0xff] (!%p138_p2)   ;;  %v4259_v23 = vld [vmem:[%s5374_s1 + $0x2a8] sm:$0xff] (!%p138_p2)  }
   0xd   : > { %3901 = vmatpush3.bf16.msra.mxu1 %v4243_v7  ;;  %3880 = vmatprep.subr.bf16.mxu0 %v4244_v8  ;;  %s5378_s13 = smov (!%p160_p3, %s3192_s13), 1  ;;  %v4260_v24 = vld [vmem:[%s5374_s1 + $0x270] sm:$0xff]   ;;  %v4264_v28 = vld [vmem:[%s5374_s1 + $0x278] sm:$0xff]   ;;  %v4272_v38 = vld [vmem:[%s5374_s1 + $0x340] sm:$0xff]  }
   0xe   : > { %3902 = vmatprep.subr.bf16.mxu1 %v4245_v9  ;;  %v4261_v25 = vld [vmem:[%s5374_s1 + $0x2f0] sm:$0xff]   ;;  %s3875_s18 = sshll.u32 %s5378_s13, 5  ;;  %v4265_v29 = vld [vmem:[%s5374_s1 + $0x2f8] sm:$0xff]   ;;  %v4273_v39 = vld [vmem:[%s5374_s1 + $0x3c0] sm:$0xff]   ;;  %s3199_s24 = sshll.u32 %s5378_s13, 1 }
   0xf   : > { %v4262_v26 = vld [vmem:[%s5374_s1 + $0x230] sm:$0xff]   ;;  %s4664_s27 = scalar_lea.vmem %s5373_s0, %s3875_s18  ;;  %v4266_v30 = vld [vmem:[%s5374_s1 + $0x238] sm:$0xff]   ;;  %v4274_v50 = vld [vmem:[%s5374_s1 + $0x300] sm:$0xff]   ;;  %s168_s28 = scalar_lea.vmem %s5376_s3, %s3199_s24 }
  0x10   : > { %3881 = vmatpush3.bf16.msra.mxu0 %v4246_v10  ;;  %v4263_v27 = vld [vmem:[%s5374_s1 + $0x2b0] sm:$0xff]   ;;  %v4267_v31 = vld [vmem:[%s5374_s1 + $0x2b8] sm:$0xff]   ;;  %v302_v32 = vld [vmem:[%s4664_s27] sm:$0x33] }
  0x11   : > { %3903 = vmatpush3.bf16.msra.mxu1 %v4247_v11  ;;  %3882 = vmatprep.subr.bf16.mxu0 %v4248_v12  ;;  %v303_v33 = vld [vmem:[%s4664_s27 + $0x8] sm:$0x33]  ;;  %v3328_v34 = vcombine.low %v302_v32, %v302_v32  ;;  %v3329_v35 = vcombine.high %v302_v32, %v302_v32  ;;  %v4275_v51 = vld [vmem:[%s5374_s1 + $0x380] sm:$0xff]   ;;  %v4280_v62 = vld [vmem:[%s5374_s1 + $0x350] sm:$0xff]  }
  0x12   : > { %3904 = vmatprep.subr.bf16.mxu1 %v4249_v13  ;;  %v3330_v36 = vcombine.low %v303_v33, %v303_v33  ;;  %v3331_v37 = vcombine.high %v303_v33, %v303_v33  ;;  %v4276_v56 = vld [vmem:[%s5374_s1 + $0x348] sm:$0xff]   ;;  %v4281_v63 = vld [vmem:[%s5374_s1 + $0x3d0] sm:$0xff]   ;;  %v4284_v2 = vld [vmem:[%s5374_s1 + $0x358] sm:$0xff]  }
  0x13   : > { %v463_v40 = vshrl.u32 %v3329_v35, 16  ;;  %v465_v41 = vshll.u32 %v3329_v35, 16  ;;  %v456_v44 = vshrl.u32 %v3328_v34, 16  ;;  %v458_v45 = vshll.u32 %v3328_v34, 16  ;;  %v4277_v59 = vld [vmem:[%s5374_s1 + $0x3c8] sm:$0xff]   ;;  %v4282_v0 = vld [vmem:[%s5374_s1 + $0x310] sm:$0xff]  }
  0x14   : > { %3883 = vmatpush3.bf16.msra.mxu0 %v4250_v14  ;;  %v477_v42 = vshrl.u32 %v3331_v37, 16  ;;  %v479_v43 = vshll.u32 %v3331_v37, 16  ;;  %v470_v46 = vshrl.u32 %v3330_v36, 16  ;;  %v472_v47 = vshll.u32 %v3330_v36, 16  ;;  %v4278_v60 = vld [vmem:[%s5374_s1 + $0x308] sm:$0xff]   ;;  %v4283_v1 = vld [vmem:[%s5374_s1 + $0x390] sm:$0xff]  }
  0x15   : > { %3905 = vmatpush3.bf16.msra.mxu1 %v4251_v15  ;;  %3884 = vmatprep.subr.bf16.mxu0 %v4252_v16  ;;  %v467_v48 = vrot.slane %v465_v41, 1  ;;  %v460_v52 = vrot.slane %v458_v45, 1  ;;  %v4279_v61 = vld [vmem:[%s5374_s1 + $0x388] sm:$0xff]   ;;  %v4285_v3 = vld [vmem:[%s5374_s1 + $0x3d8] sm:$0xff]   ;;  %v4288_v6 = vld [vmem:[%s5374_s1 + $0x360] sm:$0xff]  }
  0x16   : > { %3906 = vmatprep.subr.bf16.mxu1 %v4253_v17  ;;  %v481_v49 = vrot.slane %v479_v43, 1  ;;  %v474_v53 = vrot.slane %v472_v47, 1  ;;  %v4286_v4 = vld [vmem:[%s5374_s1 + $0x318] sm:$0xff]   ;;  %v4289_v7 = vld [vmem:[%s5374_s1 + $0x3e0] sm:$0xff]   ;;  %v4292_v10 = vld [vmem:[%s5374_s1 + $0x368] sm:$0xff]  }
  0x17   : > { %v468_v54 = vor.u32 %v467_v48, %v463_v40  ;;  %v461_v57 = vor.u32 %v460_v52, %v456_v44  ;;  %v4287_v5 = vld [vmem:[%s5374_s1 + $0x398] sm:$0xff]   ;;  %v4290_v8 = vld [vmem:[%s5374_s1 + $0x320] sm:$0xff]   ;;  %v4293_v11 = vld [vmem:[%s5374_s1 + $0x3e8] sm:$0xff]  }
  0x18   : > { %3885 = vmatpush3.bf16.msra.mxu0 %v4254_v18  ;;  %v482_v55 = vor.u32 %v481_v49, %v477_v42  ;;  %v475_v58 = vor.u32 %v474_v53, %v470_v46  ;;  %v4291_v9 = vld [vmem:[%s5374_s1 + $0x3a0] sm:$0xff]   ;;  %v4294_v12 = vld [vmem:[%s5374_s1 + $0x328] sm:$0xff]   ;;  %v4296_v14 = vld [vmem:[%s5374_s1 + $0x370] sm:$0xff]  }
  0x19   : > { %3907 = vmatpush3.bf16.msra.mxu1 %v4255_v19  ;;  %3886 = vmatprep.subr.bf16.mxu0 %v4256_v20  ;;  %v4295_v13 = vld [vmem:[%s5374_s1 + $0x3a8] sm:$0xff]   ;;  %v4297_v15 = vld [vmem:[%s5374_s1 + $0x3f0] sm:$0xff]   ;;  %v4300_v18 = vld [vmem:[%s5374_s1 + $0x378] sm:$0xff]  }
  0x1a   : > { %3908 = vmatprep.subr.bf16.mxu1 %v4257_v21  ;;  %935 = vmatprep.mubr.bf16.mxu0 %v468_v54  ;;  %v4298_v16 = vld [vmem:[%s5374_s1 + $0x330] sm:$0xff]   ;;  %v4301_v19 = vld [vmem:[%s5374_s1 + $0x3f8] sm:$0xff]   ;;  %v4310_v40 = vld [vmem:[%s5374_s1] sm:$0xff]  }
  0x1b   : > { %975 = vmatprep.mubr.bf16.mxu1 %v482_v55  ;;  %v4299_v17 = vld [vmem:[%s5374_s1 + $0x3b0] sm:$0xff]   ;;  %v4302_v20 = vld [vmem:[%s5374_s1 + $0x338] sm:$0xff]   ;;  %v4311_v43 = vld [vmem:[%s5374_s1 + $0x80] sm:$0xff]  }
  0x1c   : > { %3887 = vmatpush3.bf16.msra.mxu0 %v4258_v22  ;;  %v4303_v21 = vld [vmem:[%s5374_s1 + $0x3b8] sm:$0xff]   ;;  %v304_v22 = vld [vmem:[%s4664_s27 + $0x10] sm:$0x33]  ;;  %v4312_v46 = vld [vmem:[%s5374_s1 + $0x48] sm:$0xff]  }
  0x1d   : > { %3909 = vmatpush3.bf16.msra.mxu1 %v4259_v23  ;;  %3888 = vmatprep.subr.bf16.mxu0 %v4260_v24  ;;  %v305_v23 = vld [vmem:[%s4664_s27 + $0x18] sm:$0x33]  ;;  %v3332_v24 = vcombine.low %v304_v22, %v304_v22  ;;  %v4313_v49 = vld [vmem:[%s5374_s1 + $0xc8] sm:$0xff]   ;;  %v4316_v52 = vld [vmem:[%s5374_s1 + $0x50] sm:$0xff]  }
  0x1e   : > { %3910 = vmatprep.subr.bf16.mxu1 %v4261_v25  ;;  %v3333_v25 = vcombine.high %v304_v22, %v304_v22  ;;  %v4317_v53 = vld [vmem:[%s5374_s1 + $0xd0] sm:$0xff]   ;;  %v4348_v22 = vld [vmem:[%s5374_s1 + $0x148] sm:$0xff]  }
  0x1f   : > { %v484_v32 = vshrl.u32 %v3332_v24, 16  ;;  %v486_v33 = vshll.u32 %v3332_v24, 16  ;;  %v4318_v54 = vld [vmem:[%s5374_s1 + $0x10] sm:$0xff]   ;;  %v4350_v24 = vld [vmem:[%s5374_s1 + $0x108] sm:$0xff]  }
  0x20   : > { %3889 = vmatpush3.bf16.msra.mxu0 %v4262_v26  ;;  %v3334_v26 = vcombine.low %v305_v23, %v305_v23  ;;  %v4319_v55 = vld [vmem:[%s5374_s1 + $0x90] sm:$0xff]  }
  0x21   : > { %3911 = vmatpush3.bf16.msra.mxu1 %v4263_v27  ;;  %3890 = vmatprep.subr.bf16.mxu0 %v4264_v28  ;;  %v4308_v27 = vld [vmem:[%s5374_s1 + $0x40] sm:$0xff]   ;;  %v3335_v28 = vcombine.high %v305_v23, %v305_v23  ;;  %v4349_v23 = vld [vmem:[%s5374_s1 + $0x1c8] sm:$0xff]  }
  0x22   : > { %3912 = vmatprep.subr.bf16.mxu1 %v4265_v29  ;;  %v4309_v29 = vld [vmem:[%s5374_s1 + $0xc0] sm:$0xff]   ;;  %v498_v36 = vshrl.u32 %v3334_v26, 16  ;;  %v500_v37 = vshll.u32 %v3334_v26, 16  ;;  %v4352_v26 = vld [vmem:[%s5374_s1 + $0x150] sm:$0xff]  }
  0x23   : > { %v505_v34 = vshrl.u32 %v3335_v28, 16  ;;  %v507_v35 = vshll.u32 %v3335_v28, 16  ;;  %v4354_v28 = vld [vmem:[%s5374_s1 + $0x110] sm:$0xff]  }
  0x24   : > { %3891 = vmatpush3.bf16.msra.mxu0 %v4266_v30  ;;  %v491_v30 = vshrl.u32 %v3333_v25, 16  ;;  %v502_v42 = vrot.slane %v500_v37, 1  ;;  %v4363_v37 = vld [vmem:[%s5374_s1 + $0x1a0] sm:$0xff]  }
  0x25   : > { %3913 = vmatpush3.bf16.msra.mxu1 %v4267_v31  ;;  %3920 = vmatprep.subr.bf16.mxu0 %v4272_v38  ;;  %v493_v31 = vshll.u32 %v3333_v25, 16  ;;  %v509_v41 = vrot.slane %v507_v35, 1  ;;  %v4351_v25 = vld [vmem:[%s5374_s1 + $0x188] sm:$0xff]   ;;  %v4361_v35 = vld [vmem:[%s5374_s1 + $0x1e0] sm:$0xff]  }
  0x26   : > { %3942 = vmatprep.subr.bf16.mxu1 %v4273_v39  ;;  %v488_v39 = vrot.slane %v486_v33, 1  ;;  %v503_v48 = vor.u32 %v502_v42, %v498_v36  ;;  %v4359_v33 = vld [vmem:[%s5374_s1 + $0x198] sm:$0xff]   ;;  %v4362_v36 = vld [vmem:[%s5374_s1 + $0x120] sm:$0xff]   ;;  %v4368_v42 = vld [vmem:[%s5374_s1 + $0x170] sm:$0xff]  }
  0x27   : > { %936 = vmatmul.mubr.bf16.vlgmr.msra.gmra.mrb[0].mxu0 %v461_v57  ;;  %v495_v38 = vrot.slane %v493_v31, 1  ;;  %v510_v47 = vor.u32 %v509_v41, %v505_v34  ;;  %v4321_v57 = vld [vmem:[%s5374_s1 + $0xd8] sm:$0xff]   ;;  %v4360_v34 = vld [vmem:[%s5374_s1 + $0x160] sm:$0xff]   ;;  %v4367_v41 = vld [vmem:[%s5374_s1 + $0x1a8] sm:$0xff]  }
  0x28   : > { %976 = vmatmul.mubr.bf16.vlgmr.msra.gmra.mrb[0].mxu1 %v475_v58  ;;  %3921 = vmatpush3.bf16.msra.mxu0 %v4274_v50  ;;  %v489_v45 = vor.u32 %v488_v39, %v484_v32  ;;  %v4314_v50 = vld [vmem:[%s5374_s1 + $0x8] sm:$0xff]   ;;  %v4322_v58 = vld [vmem:[%s5374_s1 + $0x18] sm:$0xff]  }
  0x29   : > { %3943 = vmatpush3.bf16.msra.mxu1 %v4275_v51  ;;  %3922 = vmatprep.subr.bf16.mxu0 %v4276_v56  ;;  %v496_v44 = vor.u32 %v495_v38, %v491_v30  ;;  %v4315_v51 = vld [vmem:[%s5374_s1 + $0x88] sm:$0xff]   ;;  %v4320_v56 = vld [vmem:[%s5374_s1 + $0x58] sm:$0xff]  }
  0x2a   : > { %3944 = vmatprep.subr.bf16.mxu1 %v4277_v59  ;;  %1055 = vmatprep.mubr.bf16.mxu1 %v510_v47  ;;  %v4323_v59 = vld [vmem:[%s5374_s1 + $0x98] sm:$0xff]   ;;  %v4364_v38 = vld [vmem:[%s5374_s1 + $0x168] sm:$0xff]  }
  0x2b   : > { %1015 = vmatprep.mubr.bf16.mxu0 %v496_v44  ;;  %v4356_v30 = vld [vmem:[%s5374_s1 + $0x158] sm:$0xff]   ;;  %v4365_v39 = vld [vmem:[%s5374_s1 + $0x1e8] sm:$0xff]   ;;  %v4370_v44 = vld [vmem:[%s5374_s1 + $0x130] sm:$0xff]  }
  0x2c   : > { %3923 = vmatpush3.bf16.msra.mxu0 %v4278_v60  ;;  %v4324_v60 = vld [vmem:[%s5374_s1 + $0x60] sm:$0xff]   ;;  %v4357_v31 = vld [vmem:[%s5374_s1 + $0x1d8] sm:$0xff]  }
  0x2d   : > { %3945 = vmatpush3.bf16.msra.mxu1 %v4279_v61  ;;  %3924 = vmatprep.subr.bf16.mxu0 %v4280_v62  ;;  %v4325_v61 = vld [vmem:[%s5374_s1 + $0xe0] sm:$0xff]   ;;  %v4358_v32 = vld [vmem:[%s5374_s1 + $0x118] sm:$0xff]  }
  0x2e   : > { %3946 = vmatprep.subr.bf16.mxu1 %v4281_v63  ;;  %v4326_v62 = vld [vmem:[%s5374_s1 + $0x20] sm:$0xff]   ;;  %v4373_v47 = vld [vmem:[%s5374_s1 + $0x1f8] sm:$0xff]  }
  0x2f   : > { %v4327_v63 = vld [vmem:[%s5374_s1 + $0xa0] sm:$0xff]  }
  0x30   : > { %3925 = vmatpush3.bf16.msra.mxu0 %v4282_v0  ;;  %v4328_v0 = vld [vmem:[%s5374_s1 + $0x68] sm:$0xff]  }
  0x31   : > { %3947 = vmatpush3.bf16.msra.mxu1 %v4283_v1  ;;  %3926 = vmatprep.subr.bf16.mxu0 %v4284_v2  ;;  %v4329_v1 = vld [vmem:[%s5374_s1 + $0xe8] sm:$0xff]  }
  0x32   : > { %3948 = vmatprep.subr.bf16.mxu1 %v4285_v3  ;;  %v4330_v2 = vld [vmem:[%s5374_s1 + $0x28] sm:$0xff]  }
  0x33   : > { %v4331_v3 = vld [vmem:[%s5374_s1 + $0xa8] sm:$0xff]  }
  0x34   : > { %3927 = vmatpush3.bf16.msra.mxu0 %v4286_v4  ;;  %v4332_v4 = vld [vmem:[%s5374_s1 + $0x70] sm:$0xff]  }
  0x35   : > { %3949 = vmatpush3.bf16.msra.mxu1 %v4287_v5  ;;  %3928 = vmatprep.subr.bf16.mxu0 %v4288_v6  ;;  %v4333_v5 = vld [vmem:[%s5374_s1 + $0xf0] sm:$0xff]  }
  0x36   : > { %3950 = vmatprep.subr.bf16.mxu1 %v4289_v7  ;;  %v4334_v6 = vld [vmem:[%s5374_s1 + $0x30] sm:$0xff]  }
  0x37   : > { %v4335_v7 = vld [vmem:[%s5374_s1 + $0xb0] sm:$0xff]  }
  0x38   : > { %3929 = vmatpush3.bf16.msra.mxu0 %v4290_v8  ;;  %v4336_v8 = vld [vmem:[%s5374_s1 + $0x78] sm:$0xff]  }
  0x39   : > { %3951 = vmatpush3.bf16.msra.mxu1 %v4291_v9  ;;  %3930 = vmatprep.subr.bf16.mxu0 %v4292_v10  ;;  %v4337_v9 = vld [vmem:[%s5374_s1 + $0xf8] sm:$0xff]  }
  0x3a   : > { %3952 = vmatprep.subr.bf16.mxu1 %v4293_v11  ;;  %v4338_v10 = vld [vmem:[%s5374_s1 + $0x38] sm:$0xff]  }
  0x3b   : > { %v4339_v11 = vld [vmem:[%s5374_s1 + $0xb8] sm:$0xff]  }
  0x3c   : > { %3931 = vmatpush3.bf16.msra.mxu0 %v4294_v12  ;;  %v170_v12 = vld [vmem:[%s4664_s27] sm:$0x11] }
  0x3d   : > { %3953 = vmatpush3.bf16.msra.mxu1 %v4295_v13  ;;  %3932 = vmatprep.subr.bf16.mxu0 %v4296_v14  ;;  %v3401_v13 = vcombine.high %v170_v12, %v170_v12  ;;  %v171_v14 = vld [vmem:[%s4664_s27 + $0x8] sm:$0x11] }
  0x3e   : > { %3954 = vmatprep.subr.bf16.mxu1 %v4297_v15  ;;  %v3403_v15 = vcombine.high %v171_v14, %v171_v14 }
  0x40   : > { %3933 = vmatpush3.bf16.msra.mxu0 %v4298_v16  ;;  %v4344_v16 = vld [vmem:[%s5374_s1 + $0x140] sm:$0xff]  }
  0x41   : > { %3955 = vmatpush3.bf16.msra.mxu1 %v4299_v17  ;;  %3934 = vmatprep.subr.bf16.mxu0 %v4300_v18  ;;  %v4345_v17 = vld [vmem:[%s5374_s1 + $0x1c0] sm:$0xff]   ;;  %v3400_v18 = vcombine.low %v170_v12, %v170_v12  ;;  %v4400_v12 = vld [vmem:[%s5374_s1 + $0x468] sm:$0xff]  }
  0x42   : > { %3956 = vmatprep.subr.bf16.mxu1 %v4301_v19  ;;  %v4346_v19 = vld [vmem:[%s5374_s1 + $0x100] sm:$0xff]  }
  0x44   : > { %3935 = vmatpush3.bf16.msra.mxu0 %v4302_v20  ;;  %v3402_v20 = vcombine.low %v171_v14, %v171_v14  ;;  %v4402_v14 = vld [vmem:[%s5374_s1 + $0x428] sm:$0xff]  }
  0x45   : > { %3957 = vmatpush3.bf16.msra.mxu1 %v4303_v21  ;;  %3964 = vmatprep.subr.bf16.mxu0 %v4308_v27  ;;  %v4347_v21 = vld [vmem:[%s5374_s1 + $0x180] sm:$0xff]   ;;  %v4353_v27 = vld [vmem:[%s5374_s1 + $0x1d0] sm:$0xff]  }
  0x46   : > { %3986 = vmatprep.subr.bf16.mxu1 %v4309_v29  ;;  %v4355_v29 = vld [vmem:[%s5374_s1 + $0x190] sm:$0xff]  }
  0x47   : > { %1016 = vmatmul.mubr.bf16.vlgmr.msra.gmra.mrb[4].mxu0 %v489_v45  ;;  %v4371_v45 = vld [vmem:[%s5374_s1 + $0x1b0] sm:$0xff]  }
  0x48   : > { %1056 = vmatmul.mubr.bf16.vlgmr.msra.gmra.mrb[4].mxu1 %v503_v48  ;;  %3965 = vmatpush3.bf16.msra.mxu0 %v4310_v40  ;;  %v4366_v40 = vld [vmem:[%s5374_s1 + $0x128] sm:$0xff]   ;;  %v4374_v48 = vld [vmem:[%s5374_s1 + $0x138] sm:$0xff]  }
  0x49   : > { %3987 = vmatpush3.bf16.msra.mxu1 %v4311_v43  ;;  %3966 = vmatprep.subr.bf16.mxu0 %v4312_v46  ;;  %v4369_v43 = vld [vmem:[%s5374_s1 + $0x1f0] sm:$0xff]   ;;  %v4372_v46 = vld [vmem:[%s5374_s1 + $0x178] sm:$0xff]  }
  0x4a   : > { %3988 = vmatprep.subr.bf16.mxu1 %v4313_v49  ;;  %1507 = vmatprep.mubr.bf16.mxu0 %v3401_v13  ;;  %v4375_v49 = vld [vmem:[%s5374_s1 + $0x1b8] sm:$0xff]   ;;  %v4401_v13 = vld [vmem:[%s5374_s1 + $0x4e8] sm:$0xff]  }
  0x4b   : > { %1547 = vmatprep.mubr.bf16.mxu1 %v3403_v15  ;;  %v4403_v15 = vld [vmem:[%s5374_s1 + $0x4a8] sm:$0xff]  }
  0x4c   : > { %3967 = vmatpush3.bf16.msra.mxu0 %v4314_v50  ;;  %v172_v50 = vld [vmem:[%s4664_s27 + $0x10] sm:$0x11] }
  0x4d   : > { %3989 = vmatpush3.bf16.msra.mxu1 %v4315_v51  ;;  %3968 = vmatprep.subr.bf16.mxu0 %v4316_v52  ;;  %v173_v51 = vld [vmem:[%s4664_s27 + $0x18] sm:$0x11]  ;;  %v3405_v52 = vcombine.high %v172_v50, %v172_v50 }
  0x4e   : > { %3990 = vmatprep.subr.bf16.mxu1 %v4317_v53  ;;  %v4380_v53 = vld [vmem:[%s5374_s1 + $0x440] sm:$0xff]  }
  0x50   : > { %3969 = vmatpush3.bf16.msra.mxu0 %v4318_v54  ;;  %v3407_v54 = vcombine.high %v173_v51, %v173_v51 }
  0x51   : > { %3991 = vmatpush3.bf16.msra.mxu1 %v4319_v55  ;;  %3970 = vmatprep.subr.bf16.mxu0 %v4320_v56  ;;  %v4381_v55 = vld [vmem:[%s5374_s1 + $0x4c0] sm:$0xff]   ;;  %v3404_v56 = vcombine.low %v172_v50, %v172_v50 }
  0x52   : > { %3992 = vmatprep.subr.bf16.mxu1 %v4321_v57  ;;  %v4382_v57 = vld [vmem:[%s5374_s1 + $0x400] sm:$0xff]  }
  0x53   : > { %v4432_v50 = vld [vmem:[%s5374_s1 + $0x560] sm:$0xff]  }
  0x54   : > { %3971 = vmatpush3.bf16.msra.mxu0 %v4322_v58  ;;  %v3406_v58 = vcombine.low %v173_v51, %v173_v51  ;;  %v4433_v51 = vld [vmem:[%s5374_s1 + $0x5e0] sm:$0xff]  }
  0x55   : > { %3993 = vmatpush3.bf16.msra.mxu1 %v4323_v59  ;;  %3972 = vmatprep.subr.bf16.mxu0 %v4324_v60  ;;  %v4383_v59 = vld [vmem:[%s5374_s1 + $0x480] sm:$0xff]   ;;  %v4384_v60 = vld [vmem:[%s5374_s1 + $0x448] sm:$0xff]  }
  0x56   : > { %3994 = vmatprep.subr.bf16.mxu1 %v4325_v61  ;;  %v4385_v61 = vld [vmem:[%s5374_s1 + $0x4c8] sm:$0xff]  }
  0x58   : > { %3973 = vmatpush3.bf16.msra.mxu0 %v4326_v62  ;;  %v4386_v62 = vld [vmem:[%s5374_s1 + $0x408] sm:$0xff]  }
  0x59   : > { %3995 = vmatpush3.bf16.msra.mxu1 %v4327_v63  ;;  %3974 = vmatprep.subr.bf16.mxu0 %v4328_v0  ;;  %v4387_v63 = vld [vmem:[%s5374_s1 + $0x488] sm:$0xff]   ;;  %v4388_v0 = vld [vmem:[%s5374_s1 + $0x450] sm:$0xff]  }
  0x5a   : > { %3996 = vmatprep.subr.bf16.mxu1 %v4329_v1  ;;  %v4389_v1 = vld [vmem:[%s5374_s1 + $0x4d0] sm:$0xff]  }
  0x5c   : > { %3975 = vmatpush3.bf16.msra.mxu0 %v4330_v2  ;;  %v4390_v2 = vld [vmem:[%s5374_s1 + $0x410] sm:$0xff]  }
  0x5d   : > { %3997 = vmatpush3.bf16.msra.mxu1 %v4331_v3  ;;  %3976 = vmatprep.subr.bf16.mxu0 %v4332_v4  ;;  %v4391_v3 = vld [vmem:[%s5374_s1 + $0x490] sm:$0xff]   ;;  %v4392_v4 = vld [vmem:[%s5374_s1 + $0x458] sm:$0xff]  }
  0x5e   : > { %3998 = vmatprep.subr.bf16.mxu1 %v4333_v5  ;;  %v4393_v5 = vld [vmem:[%s5374_s1 + $0x4d8] sm:$0xff]  }
  0x60   : > { %3977 = vmatpush3.bf16.msra.mxu0 %v4334_v6  ;;  %v4394_v6 = vld [vmem:[%s5374_s1 + $0x418] sm:$0xff]  }
  0x61   : > { %3999 = vmatpush3.bf16.msra.mxu1 %v4335_v7  ;;  %3978 = vmatprep.subr.bf16.mxu0 %v4336_v8  ;;  %v4395_v7 = vld [vmem:[%s5374_s1 + $0x498] sm:$0xff]   ;;  %v4396_v8 = vld [vmem:[%s5374_s1 + $0x460] sm:$0xff]  }
  0x62   : > { %4000 = vmatprep.subr.bf16.mxu1 %v4337_v9  ;;  %v4397_v9 = vld [vmem:[%s5374_s1 + $0x4e0] sm:$0xff]  }
  0x64   : > { %3979 = vmatpush3.bf16.msra.mxu0 %v4338_v10  ;;  %v4398_v10 = vld [vmem:[%s5374_s1 + $0x420] sm:$0xff]  }
  0x65   : > { %4001 = vmatpush3.bf16.msra.mxu1 %v4339_v11  ;;  %4008 = vmatprep.subr.bf16.mxu0 %v4344_v16  ;;  %v4399_v11 = vld [vmem:[%s5374_s1 + $0x4a0] sm:$0xff]   ;;  %v4404_v16 = vld [vmem:[%s5374_s1 + $0x470] sm:$0xff]  }
  0x66   : > { %4030 = vmatprep.subr.bf16.mxu1 %v4345_v17  ;;  %v4405_v17 = vld [vmem:[%s5374_s1 + $0x4f0] sm:$0xff]  }
  0x67   : > { %1508 = vmatmul.mubr.bf16.vlgmr.msra.gmra.mrb[8].mxu0 %v3400_v18  ;;  %v4406_v18 = vld [vmem:[%s5374_s1 + $0x430] sm:$0xff]  }
  0x68   : > { %1548 = vmatmul.mubr.bf16.vlgmr.msra.gmra.mrb[8].mxu1 %v3402_v20  ;;  %4009 = vmatpush3.bf16.msra.mxu0 %v4346_v19  ;;  %v4407_v19 = vld [vmem:[%s5374_s1 + $0x4b0] sm:$0xff]   ;;  %v4408_v20 = vld [vmem:[%s5374_s1 + $0x478] sm:$0xff]  }
  0x69   : > { %4031 = vmatpush3.bf16.msra.mxu1 %v4347_v21  ;;  %4010 = vmatprep.subr.bf16.mxu0 %v4348_v22  ;;  %v4409_v21 = vld [vmem:[%s5374_s1 + $0x4f8] sm:$0xff]  }
  0x6a   : > { %4032 = vmatprep.subr.bf16.mxu1 %v4349_v23  ;;  %1587 = vmatprep.mubr.bf16.mxu0 %v3405_v52  ;;  %v4410_v22 = vld [vmem:[%s5374_s1 + $0x438] sm:$0xff]   ;;  %v4434_v52 = vld [vmem:[%s5374_s1 + $0x520] sm:$0xff]  }
  0x6b   : > { %1627 = vmatprep.mubr.bf16.mxu1 %v3407_v54  ;;  %v4411_v23 = vld [vmem:[%s5374_s1 + $0x4b8] sm:$0xff]   ;;  %v4436_v54 = vld [vmem:[%s5374_s1 + $0x568] sm:$0xff]  }
  0x6c   : > { %4011 = vmatpush3.bf16.msra.mxu0 %v4350_v24  ;;  %v1635_v24 = vld [vmem:[%s4664_s27] sm:$0x22] }
  0x6d   : > { %4033 = vmatpush3.bf16.msra.mxu1 %v4351_v25  ;;  %4012 = vmatprep.subr.bf16.mxu0 %v4352_v26  ;;  %v1636_v25 = vld [vmem:[%s4664_s27 + $0x8] sm:$0x22]  ;;  %v3600_v26 = vcombine.low %v1635_v24, %v1635_v24 }
  0x6e   : > { %4034 = vmatprep.subr.bf16.mxu1 %v4353_v27  ;;  %v3601_v27 = vcombine.high %v1635_v24, %v1635_v24  ;;  %v4464_v24 = vld [vmem:[%s5374_s1 + $0x658] sm:$0xff]  }
  0x70   : > { %4013 = vmatpush3.bf16.msra.mxu0 %v4354_v28  ;;  %v3602_v28 = vcombine.low %v1636_v25, %v1636_v25 }
  0x71   : > { %4035 = vmatpush3.bf16.msra.mxu1 %v4355_v29  ;;  %4014 = vmatprep.subr.bf16.mxu0 %v4356_v30  ;;  %v3603_v29 = vcombine.high %v1636_v25, %v1636_v25  ;;  %v4416_v30 = vld [vmem:[%s5374_s1 + $0x540] sm:$0xff]   ;;  %v4465_v25 = vld [vmem:[%s5374_s1 + $0x6d8] sm:$0xff]  }
  0x72   : > { %4036 = vmatprep.subr.bf16.mxu1 %v4357_v31  ;;  %v4417_v31 = vld [vmem:[%s5374_s1 + $0x5c0] sm:$0xff]  }
  0x74   : > { %4015 = vmatpush3.bf16.msra.mxu0 %v4358_v32  ;;  %v1788_v32 = vrot.slane %v3600_v26, 1  ;;  %v4466_v26 = vld [vmem:[%s5374_s1 + $0x618] sm:$0xff]  }
  0x75   : > { %4037 = vmatpush3.bf16.msra.mxu1 %v4359_v33  ;;  %4016 = vmatprep.subr.bf16.mxu0 %v4360_v34  ;;  %v1789_v33 = vrot.slane %v3601_v27, 1  ;;  %v1790_v34 = vrot.slane %v3602_v28, 1  ;;  %v4467_v27 = vld [vmem:[%s5374_s1 + $0x698] sm:$0xff]   ;;  %v4468_v28 = vld [vmem:[%s5374_s1 + $0x660] sm:$0xff]  }
  0x76   : > { %4038 = vmatprep.subr.bf16.mxu1 %v4361_v35  ;;  %v1791_v35 = vrot.slane %v3603_v29, 1  ;;  %v4469_v29 = vld [vmem:[%s5374_s1 + $0x6e0] sm:$0xff]  }
  0x78   : > { %4017 = vmatpush3.bf16.msra.mxu0 %v4362_v36  ;;  %v4418_v36 = vld [vmem:[%s5374_s1 + $0x500] sm:$0xff]  }
  0x79   : > { %4039 = vmatpush3.bf16.msra.mxu1 %v4363_v37  ;;  %4018 = vmatprep.subr.bf16.mxu0 %v4364_v38  ;;  %v4419_v37 = vld [vmem:[%s5374_s1 + $0x580] sm:$0xff]   ;;  %v4420_v38 = vld [vmem:[%s5374_s1 + $0x548] sm:$0xff]  }
  0x7a   : > { %4040 = vmatprep.subr.bf16.mxu1 %v4365_v39  ;;  %v4421_v39 = vld [vmem:[%s5374_s1 + $0x5c8] sm:$0xff]  }
  0x7c   : > { %4019 = vmatpush3.bf16.msra.mxu0 %v4366_v40  ;;  %v4422_v40 = vld [vmem:[%s5374_s1 + $0x508] sm:$0xff]  }
  0x7d   : > { %4041 = vmatpush3.bf16.msra.mxu1 %v4367_v41  ;;  %4020 = vmatprep.subr.bf16.mxu0 %v4368_v42  ;;  %v4423_v41 = vld [vmem:[%s5374_s1 + $0x588] sm:$0xff]   ;;  %v4424_v42 = vld [vmem:[%s5374_s1 + $0x550] sm:$0xff]  }
  0x7e   : > { %4042 = vmatprep.subr.bf16.mxu1 %v4369_v43  ;;  %v4425_v43 = vld [vmem:[%s5374_s1 + $0x5d0] sm:$0xff]  }
  0x80   : > { %4021 = vmatpush3.bf16.msra.mxu0 %v4370_v44  ;;  %v4426_v44 = vld [vmem:[%s5374_s1 + $0x510] sm:$0xff]  }
  0x81   : > { %4043 = vmatpush3.bf16.msra.mxu1 %v4371_v45  ;;  %4022 = vmatprep.subr.bf16.mxu0 %v4372_v46  ;;  %v4427_v45 = vld [vmem:[%s5374_s1 + $0x590] sm:$0xff]   ;;  %v4428_v46 = vld [vmem:[%s5374_s1 + $0x558] sm:$0xff]  }
  0x82   : > { %4044 = vmatprep.subr.bf16.mxu1 %v4373_v47  ;;  %v4429_v47 = vld [vmem:[%s5374_s1 + $0x5d8] sm:$0xff]  }
  0x84   : > { %4023 = vmatpush3.bf16.msra.mxu0 %v4374_v48  ;;  %v4430_v48 = vld [vmem:[%s5374_s1 + $0x518] sm:$0xff]  }
  0x85   : > { %4045 = vmatpush3.bf16.msra.mxu1 %v4375_v49  ;;  %4052 = vmatprep.subr.bf16.mxu0 %v4380_v53  ;;  %v4431_v49 = vld [vmem:[%s5374_s1 + $0x598] sm:$0xff]   ;;  %v4435_v53 = vld [vmem:[%s5374_s1 + $0x5a0] sm:$0xff]  }
  0x86   : > { %4074 = vmatprep.subr.bf16.mxu1 %v4381_v55  ;;  %v4437_v55 = vld [vmem:[%s5374_s1 + $0x5e8] sm:$0xff]  }
  0x87   : > { %1588 = vmatmul.mubr.bf16.vlgmr.msra.gmra.mrb[12].mxu0 %v3404_v56  ;;  %v4438_v56 = vld [vmem:[%s5374_s1 + $0x528] sm:$0xff]  }
  0x88   : > { %1628 = vmatmul.mubr.bf16.vlgmr.msra.gmra.mrb[12].mxu1 %v3406_v58  ;;  %4053 = vmatpush3.bf16.msra.mxu0 %v4382_v57  ;;  %v4439_v57 = vld [vmem:[%s5374_s1 + $0x5a8] sm:$0xff]   ;;  %v4440_v58 = vld [vmem:[%s5374_s1 + $0x570] sm:$0xff]  }
  0x89   : > { %4075 = vmatpush3.bf16.msra.mxu1 %v4383_v59  ;;  %4054 = vmatprep.subr.bf16.mxu0 %v4384_v60  ;;  %v4441_v59 = vld [vmem:[%s5374_s1 + $0x5f0] sm:$0xff]  }
  0x8a   : > { %4076 = vmatprep.subr.bf16.mxu1 %v4385_v61  ;;  %2220 = vmatprep.mubr.bf16.mxu0 %v1789_v33  ;;  %v4442_v60 = vld [vmem:[%s5374_s1 + $0x530] sm:$0xff]   ;;  %v4473_v33 = vld [vmem:[%s5374_s1 + $0x6e8] sm:$0xff]  }
  0x8b   : > { %2260 = vmatprep.mubr.bf16.mxu1 %v1791_v35  ;;  %v4443_v61 = vld [vmem:[%s5374_s1 + $0x5b0] sm:$0xff]   ;;  %v4475_v35 = vld [vmem:[%s5374_s1 + $0x6a8] sm:$0xff]  }
  0x8c   : > { %4055 = vmatpush3.bf16.msra.mxu0 %v4386_v62  ;;  %v4444_v62 = vld [vmem:[%s5374_s1 + $0x578] sm:$0xff]  }
  0x8d   : > { %4077 = vmatpush3.bf16.msra.mxu1 %v4387_v63  ;;  %4056 = vmatprep.subr.bf16.mxu0 %v4388_v0  ;;  %v4445_v63 = vld [vmem:[%s5374_s1 + $0x5f8] sm:$0xff]  }
  0x8e   : > { %4078 = vmatprep.subr.bf16.mxu1 %v4389_v1  ;;  %v4446_v0 = vld [vmem:[%s5374_s1 + $0x538] sm:$0xff]  }
  0x8f   : > { %v4447_v1 = vld [vmem:[%s5374_s1 + $0x5b8] sm:$0xff]  }
  0x90   : > { %4057 = vmatpush3.bf16.msra.mxu0 %v4390_v2  ;;  %v1637_v2 = vld [vmem:[%s4664_s27 + $0x10] sm:$0x22] }
  0x91   : > { %4079 = vmatpush3.bf16.msra.mxu1 %v4391_v3  ;;  %4058 = vmatprep.subr.bf16.mxu0 %v4392_v4  ;;  %v1638_v3 = vld [vmem:[%s4664_s27 + $0x18] sm:$0x22]  ;;  %v3604_v4 = vcombine.low %v1637_v2, %v1637_v2 }
  0x92   : > { %4080 = vmatprep.subr.bf16.mxu1 %v4393_v5  ;;  %v3605_v5 = vcombine.high %v1637_v2, %v1637_v2 }
  0x94   : > { %4059 = vmatpush3.bf16.msra.mxu0 %v4394_v6  ;;  %v3606_v6 = vcombine.low %v1638_v3, %v1638_v3 }
  0x95   : > { %4081 = vmatpush3.bf16.msra.mxu1 %v4395_v7  ;;  %4060 = vmatprep.subr.bf16.mxu0 %v4396_v8  ;;  %v3607_v7 = vcombine.high %v1638_v3, %v1638_v3  ;;  %v4452_v8 = vld [vmem:[%s5374_s1 + $0x640] sm:$0xff]  }
  0x96   : > { %4082 = vmatprep.subr.bf16.mxu1 %v4397_v9  ;;  %v4453_v9 = vld [vmem:[%s5374_s1 + $0x6c0] sm:$0xff]  }
  0x98   : > { %4061 = vmatpush3.bf16.msra.mxu0 %v4398_v10  ;;  %v1792_v10 = vrot.slane %v3604_v4, 1 }
  0x99   : > { %4083 = vmatpush3.bf16.msra.mxu1 %v4399_v11  ;;  %4062 = vmatprep.subr.bf16.mxu0 %v4400_v12  ;;  %v1793_v11 = vrot.slane %v3605_v5, 1  ;;  %v1794_v12 = vrot.slane %v3606_v6, 1 }
  0x9a   : > { %4084 = vmatprep.subr.bf16.mxu1 %v4401_v13  ;;  %v1795_v13 = vrot.slane %v3607_v7, 1  ;;  %v4491_v7 = vld [vmem:[%s5374_s1 + $0x780] sm:$0xff]  }
  0x9c   : > { %4063 = vmatpush3.bf16.msra.mxu0 %v4402_v14  ;;  %v4454_v14 = vld [vmem:[%s5374_s1 + $0x600] sm:$0xff]  }
  0x9d   : > { %4085 = vmatpush3.bf16.msra.mxu1 %v4403_v15  ;;  %4064 = vmatprep.subr.bf16.mxu0 %v4404_v16  ;;  %v4455_v15 = vld [vmem:[%s5374_s1 + $0x680] sm:$0xff]   ;;  %v4456_v16 = vld [vmem:[%s5374_s1 + $0x648] sm:$0xff]  }
  0x9e   : > { %4086 = vmatprep.subr.bf16.mxu1 %v4405_v17  ;;  %v4457_v17 = vld [vmem:[%s5374_s1 + $0x6c8] sm:$0xff]  }
  0xa0   : > { %4065 = vmatpush3.bf16.msra.mxu0 %v4406_v18  ;;  %v4458_v18 = vld [vmem:[%s5374_s1 + $0x608] sm:$0xff]  }
  0xa1   : > { %4087 = vmatpush3.bf16.msra.mxu1 %v4407_v19  ;;  %4066 = vmatprep.subr.bf16.mxu0 %v4408_v20  ;;  %v4459_v19 = vld [vmem:[%s5374_s1 + $0x688] sm:$0xff]   ;;  %v4460_v20 = vld [vmem:[%s5374_s1 + $0x650] sm:$0xff]  }
  0xa2   : > { %4088 = vmatprep.subr.bf16.mxu1 %v4409_v21  ;;  %v4461_v21 = vld [vmem:[%s5374_s1 + $0x6d0] sm:$0xff]  }
  0xa4   : > { %4067 = vmatpush3.bf16.msra.mxu0 %v4410_v22  ;;  %v4462_v22 = vld [vmem:[%s5374_s1 + $0x610] sm:$0xff]  }
  0xa5   : > { %4089 = vmatpush3.bf16.msra.mxu1 %v4411_v23  ;;  %4096 = vmatprep.subr.bf16.mxu0 %v4416_v30  ;;  %v4463_v23 = vld [vmem:[%s5374_s1 + $0x690] sm:$0xff]   ;;  %v4470_v30 = vld [vmem:[%s5374_s1 + $0x620] sm:$0xff]  }
  0xa6   : > { %4118 = vmatprep.subr.bf16.mxu1 %v4417_v31  ;;  %v4471_v31 = vld [vmem:[%s5374_s1 + $0x6a0] sm:$0xff]  }
  0xa7   : > { %2221 = vmatmul.mubr.bf16.vlgmr.msra.gmra.mrb[16].mxu0 %v1788_v32  ;;  %v4472_v32 = vld [vmem:[%s5374_s1 + $0x668] sm:$0xff]  }
  0xa8   : > { %2261 = vmatmul.mubr.bf16.vlgmr.msra.gmra.mrb[16].mxu1 %v1790_v34  ;;  %4097 = vmatpush3.bf16.msra.mxu0 %v4418_v36  ;;  %v4474_v34 = vld [vmem:[%s5374_s1 + $0x628] sm:$0xff]   ;;  %v4476_v36 = vld [vmem:[%s5374_s1 + $0x670] sm:$0xff]  }
  0xa9   : > { %4119 = vmatpush3.bf16.msra.mxu1 %v4419_v37  ;;  %4098 = vmatprep.subr.bf16.mxu0 %v4420_v38  ;;  %v4477_v37 = vld [vmem:[%s5374_s1 + $0x6f0] sm:$0xff]  }
  0xaa   : > { %4120 = vmatprep.subr.bf16.mxu1 %v4421_v39  ;;  %2300 = vmatprep.mubr.bf16.mxu0 %v1793_v11  ;;  %v4478_v38 = vld [vmem:[%s5374_s1 + $0x630] sm:$0xff]   ;;  %v4493_v11 = vld [vmem:[%s5374_s1 + $0x7c8] sm:$0xff]  }
  0xab   : > { %2340 = vmatprep.mubr.bf16.mxu1 %v1795_v13  ;;  %v4479_v39 = vld [vmem:[%s5374_s1 + $0x6b0] sm:$0xff]   ;;  %v4495_v13 = vld [vmem:[%s5374_s1 + $0x788] sm:$0xff]  }
  0xac   : > { %4099 = vmatpush3.bf16.msra.mxu0 %v4422_v40  ;;  %v4480_v40 = vld [vmem:[%s5374_s1 + $0x678] sm:$0xff]  }
  0xad   : > { %4121 = vmatpush3.bf16.msra.mxu1 %v4423_v41  ;;  %4100 = vmatprep.subr.bf16.mxu0 %v4424_v42  ;;  %v4481_v41 = vld [vmem:[%s5374_s1 + $0x6f8] sm:$0xff]  }
  0xae   : > { %4122 = vmatprep.subr.bf16.mxu1 %v4425_v43  ;;  %v4482_v42 = vld [vmem:[%s5374_s1 + $0x638] sm:$0xff]  }
  0xaf   : > { %v4483_v43 = vld [vmem:[%s5374_s1 + $0x6b8] sm:$0xff]  }
  0xb0   : > { %4101 = vmatpush3.bf16.msra.mxu0 %v4426_v44  ;;  %v2349_v44 = vld [vmem:[%s4664_s27] sm:$0x66] }
  0xb1   : > { %4123 = vmatpush3.bf16.msra.mxu1 %v4427_v45  ;;  %4102 = vmatprep.subr.bf16.mxu0 %v4428_v46  ;;  %v3800_v45 = vcombine.low %v2349_v44, %v2349_v44  ;;  %v3801_v46 = vcombine.high %v2349_v44, %v2349_v44  ;;  %v4515_v44 = vld [vmem:[%s5374_s1 + $0x7b0] sm:$0xff]  }
  0xb2   : > { %4124 = vmatprep.subr.bf16.mxu1 %v4429_v47  ;;  %v2350_v47 = vld [vmem:[%s4664_s27 + $0x8] sm:$0x66] }
  0xb4   : > { %4103 = vmatpush3.bf16.msra.mxu0 %v4430_v48  ;;  %v3802_v48 = vcombine.low %v2350_v47, %v2350_v47 }
  0xb5   : > { %4125 = vmatpush3.bf16.msra.mxu1 %v4431_v49  ;;  %4104 = vmatprep.subr.bf16.mxu0 %v4432_v50  ;;  %v3803_v49 = vcombine.high %v2350_v47, %v2350_v47  ;;  %v4488_v50 = vld [vmem:[%s5374_s1 + $0x740] sm:$0xff]   ;;  %v4518_v47 = vld [vmem:[%s5374_s1 + $0x738] sm:$0xff]  }
  0xb6   : > { %4126 = vmatprep.subr.bf16.mxu1 %v4433_v51  ;;  %v2511_v51 = vshrl.u32 %v3801_v46, 16 }
  0xb8   : > { %4105 = vmatpush3.bf16.msra.mxu0 %v4434_v52  ;;  %v2514_v52 = vshll.u32 %v3801_v46, 16  ;;  %v4517_v46 = vld [vmem:[%s5374_s1 + $0x7f8] sm:$0xff]  }
  0xb9   : > { %4127 = vmatpush3.bf16.msra.mxu1 %v4435_v53  ;;  %4106 = vmatprep.subr.bf16.mxu0 %v4436_v54  ;;  %v2503_v53 = vshrl.u32 %v3800_v45, 16  ;;  %v2506_v54 = vshll.u32 %v3800_v45, 16  ;;  %v4516_v45 = vld [vmem:[%s5374_s1 + $0x778] sm:$0xff]  }
  0xba   : > { %4128 = vmatprep.subr.bf16.mxu1 %v4437_v55  ;;  %v4489_v55 = vld [vmem:[%s5374_s1 + $0x7c0] sm:$0xff]  }
  0xbc   : > { %4107 = vmatpush3.bf16.msra.mxu0 %v4438_v56  ;;  %v2527_v56 = vshrl.u32 %v3803_v49, 16 }
  0xbd   : > { %4129 = vmatpush3.bf16.msra.mxu1 %v4439_v57  ;;  %4108 = vmatprep.subr.bf16.mxu0 %v4440_v58  ;;  %v2530_v57 = vshll.u32 %v3803_v49, 16  ;;  %v2519_v58 = vshrl.u32 %v3802_v48, 16  ;;  %v4519_v49 = vld [vmem:[%s5374_s1 + $0x7b8] sm:$0xff]  }
  0xbe   : > { %4130 = vmatprep.subr.bf16.mxu1 %v4441_v59  ;;  %v2522_v59 = vshll.u32 %v3802_v48, 16  ;;  %v2351_v48 = vld [vmem:[%s4664_s27 + $0x10] sm:$0x66] }
  0xbf   : > { %v2532_v2 = vrot.slane %v2530_v57, 2  ;;  %v2521_v3 = vrot.slane %v2519_v58, 1 }
  0xc0   : > { %4109 = vmatpush3.bf16.msra.mxu0 %v4442_v60  ;;  %v2513_v60 = vrot.slane %v2511_v51, 1  ;;  %v2524_v4 = vrot.slane %v2522_v59, 2  ;;  %v3805_v51 = vcombine.high %v2351_v48, %v2351_v48 }
  0xc1   : > { %4131 = vmatpush3.bf16.msra.mxu1 %v4443_v61  ;;  %4110 = vmatprep.subr.bf16.mxu0 %v4444_v62  ;;  %v2516_v61 = vrot.slane %v2514_v52, 2  ;;  %v2505_v62 = vrot.slane %v2503_v53, 1  ;;  %v2352_v52 = vld [vmem:[%s4664_s27 + $0x18] sm:$0x66] }
  0xc2   : > { %4132 = vmatprep.subr.bf16.mxu1 %v4445_v63  ;;  %v2508_v63 = vrot.slane %v2506_v54, 2  ;;  %v3806_v53 = vcombine.low %v2352_v52, %v2352_v52  ;;  %v3807_v54 = vcombine.high %v2352_v52, %v2352_v52 }
  0xc3   : > { %v2517_v5 = vor.u32 %v2516_v61, %v2513_v60 }
  0xc4   : > { %4111 = vmatpush3.bf16.msra.mxu0 %v4446_v0  ;;  %v4490_v0 = vld [vmem:[%s5374_s1 + $0x700] sm:$0xff]   ;;  %v2509_v6 = vor.u32 %v2508_v63, %v2505_v62  ;;  %v2559_v59 = vshrl.u32 %v3807_v54, 16  ;;  %v2562_v60 = vshll.u32 %v3807_v54, 16  ;;  %v2551_v61 = vshrl.u32 %v3806_v53, 16 }
  0xc5   : > { %4133 = vmatpush3.bf16.msra.mxu1 %v4447_v1  ;;  %4140 = vmatprep.subr.bf16.mxu0 %v4452_v8  ;;  %v2529_v1 = vrot.slane %v2527_v56, 1  ;;  %v2546_v56 = vshll.u32 %v3805_v51, 16  ;;  %v2554_v62 = vshll.u32 %v3806_v53, 16 }
  0xc6   : > { %4162 = vmatprep.subr.bf16.mxu1 %v4453_v9  ;;  %v2525_v9 = vor.u32 %v2524_v4, %v2521_v3  ;;  %v2561_v3 = vrot.slane %v2559_v59, 1  ;;  %v2564_v4 = vrot.slane %v2562_v60, 2 }
  0xc7   : > { %2301 = vmatmul.mubr.bf16.vlgmr.msra.gmra.mrb[20].mxu0 %v1792_v10  ;;  %v2533_v8 = vor.u32 %v2532_v2, %v2529_v1  ;;  %v4492_v10 = vld [vmem:[%s5374_s1 + $0x748] sm:$0xff]  }
  0xc8   : > { %2341 = vmatmul.mubr.bf16.vlgmr.msra.gmra.mrb[20].mxu1 %v1794_v12  ;;  %4141 = vmatpush3.bf16.msra.mxu0 %v4454_v14  ;;  %v4494_v12 = vld [vmem:[%s5374_s1 + $0x708] sm:$0xff]   ;;  %v4496_v14 = vld [vmem:[%s5374_s1 + $0x750] sm:$0xff]  }
  0xc9   : > { %4163 = vmatpush3.bf16.msra.mxu1 %v4455_v15  ;;  %4142 = vmatprep.subr.bf16.mxu0 %v4456_v16  ;;  %v4497_v15 = vld [vmem:[%s5374_s1 + $0x7d0] sm:$0xff]  }
  0xca   : > { %4164 = vmatprep.subr.bf16.mxu1 %v4457_v17  ;;  %2990 = vmatprep.mubr.bf16.mxu0 %v2517_v5  ;;  %v4498_v16 = vld [vmem:[%s5374_s1 + $0x710] sm:$0xff]   ;;  %v2553_v5 = vrot.slane %v2551_v61, 1 }
  0xcb   : > { %3030 = vmatprep.mubr.bf16.mxu1 %v2533_v8  ;;  %v4499_v17 = vld [vmem:[%s5374_s1 + $0x790] sm:$0xff]  }
  0xcc   : > { %4143 = vmatpush3.bf16.msra.mxu0 %v4458_v18  ;;  %v4500_v18 = vld [vmem:[%s5374_s1 + $0x758] sm:$0xff]  }
  0xcd   : > { %4165 = vmatpush3.bf16.msra.mxu1 %v4459_v19  ;;  %4144 = vmatprep.subr.bf16.mxu0 %v4460_v20  ;;  %v4501_v19 = vld [vmem:[%s5374_s1 + $0x7d8] sm:$0xff]  }
  0xce   : > { %4166 = vmatprep.subr.bf16.mxu1 %v4461_v21  ;;  %v4502_v20 = vld [vmem:[%s5374_s1 + $0x718] sm:$0xff]  }
  0xcf   : > { %v4503_v21 = vld [vmem:[%s5374_s1 + $0x798] sm:$0xff]  }
  0xd0   : > { %4145 = vmatpush3.bf16.msra.mxu0 %v4462_v22  ;;  %v4504_v22 = vld [vmem:[%s5374_s1 + $0x760] sm:$0xff]  }
  0xd1   : > { %4167 = vmatpush3.bf16.msra.mxu1 %v4463_v23  ;;  %4146 = vmatprep.subr.bf16.mxu0 %v4464_v24  ;;  %v4505_v23 = vld [vmem:[%s5374_s1 + $0x7e0] sm:$0xff]  }
  0xd2   : > { %4168 = vmatprep.subr.bf16.mxu1 %v4465_v25  ;;  %v4506_v25 = vld [vmem:[%s5374_s1 + $0x720] sm:$0xff]  }
  0xd4   : > { %4147 = vmatpush3.bf16.msra.mxu0 %v4466_v26 }
  0xd5   : > { %4169 = vmatpush3.bf16.msra.mxu1 %v4467_v27  ;;  %4148 = vmatprep.subr.bf16.mxu0 %v4468_v28  ;;  %v4507_v27 = vld [vmem:[%s5374_s1 + $0x7a0] sm:$0xff]  }
  0xd6   : > { %4170 = vmatprep.subr.bf16.mxu1 %v4469_v29 }
  0xd8   : > { %4149 = vmatpush3.bf16.msra.mxu0 %v4470_v30  ;;  %v4508_v30 = vld [vmem:[%s5374_s1 + $0x768] sm:$0xff]  }
  0xd9   : > { %4171 = vmatpush3.bf16.msra.mxu1 %v4471_v31  ;;  %4150 = vmatprep.subr.bf16.mxu0 %v4472_v32 }
  0xda   : > { %4172 = vmatprep.subr.bf16.mxu1 %v4473_v33  ;;  %v4509_v33 = vld [vmem:[%s5374_s1 + $0x7e8] sm:$0xff]  }
  0xdc   : > { %4151 = vmatpush3.bf16.msra.mxu0 %v4474_v34 }
  0xdd   : > { %4173 = vmatpush3.bf16.msra.mxu1 %v4475_v35  ;;  %4152 = vmatprep.subr.bf16.mxu0 %v4476_v36  ;;  %v4510_v36 = vld [vmem:[%s5374_s1 + $0x728] sm:$0xff]  }
  0xde   : > { %4174 = vmatprep.subr.bf16.mxu1 %v4477_v37 }
  0xe0   : > { %4153 = vmatpush3.bf16.msra.mxu0 %v4478_v38  ;;  %v4511_v38 = vld [vmem:[%s5374_s1 + $0x7a8] sm:$0xff]  }
  0xe1   : > { %4175 = vmatpush3.bf16.msra.mxu1 %v4479_v39  ;;  %4154 = vmatprep.subr.bf16.mxu0 %v4480_v40 }
  0xe2   : > { %4176 = vmatprep.subr.bf16.mxu1 %v4481_v41  ;;  %v4512_v41 = vld [vmem:[%s5374_s1 + $0x770] sm:$0xff]  }
  0xe4   : > { %4155 = vmatpush3.bf16.msra.mxu0 %v4482_v42  ;;  %v4513_v42 = vld [vmem:[%s5374_s1 + $0x7f0] sm:$0xff]  }
  0xe5   : > { %4177 = vmatpush3.bf16.msra.mxu1 %v4483_v43  ;;  %4184 = vmatprep.subr.bf16.mxu0 %v4488_v50  ;;  %v4514_v43 = vld [vmem:[%s5374_s1 + $0x730] sm:$0xff]   ;;  %v3804_v50 = vcombine.low %v2351_v48, %v2351_v48 }
  0xe6   : > { %4206 = vmatprep.subr.bf16.mxu1 %v4489_v55  ;;  %v2543_v55 = vshrl.u32 %v3805_v51, 16 }
  0xe7   : > { %2991 = vmatmul.mubr.bf16.vlgmr.msra.gmra.mrb[24].mxu0 %v2509_v6  ;;  %v2535_v57 = vshrl.u32 %v3804_v50, 16  ;;  %v2538_v58 = vshll.u32 %v3804_v50, 16  ;;  %v2556_v6 = vrot.slane %v2554_v62, 2 }
  0xe8   : > { %3031 = vmatmul.mubr.bf16.vlgmr.msra.gmra.mrb[24].mxu1 %v2525_v9  ;;  %4185 = vmatpush3.bf16.msra.mxu0 %v4490_v0  ;;  %v2545_v63 = vrot.slane %v2543_v55, 1  ;;  %v2548_v0 = vrot.slane %v2546_v56, 2  ;;  %v2565_v9 = vor.u32 %v2564_v4, %v2561_v3 }
  0xe9   : > { %4207 = vmatpush3.bf16.msra.mxu1 %v4491_v7  ;;  %4186 = vmatprep.subr.bf16.mxu0 %v4492_v10  ;;  %v2537_v1 = vrot.slane %v2535_v57, 1  ;;  %v2540_v2 = vrot.slane %v2538_v58, 2  ;;  %v2557_v10 = vor.u32 %v2556_v6, %v2553_v5 }
  0xea   : > { %4208 = vmatprep.subr.bf16.mxu1 %v4493_v11  ;;  %v2549_v7 = vor.u32 %v2548_v0, %v2545_v63  ;;  %3110 = vmatprep.mubr.bf16.mxu1 %v2565_v9 }
  0xeb   : > { %v2541_v8 = vor.u32 %v2540_v2, %v2537_v1 }
  0xec   : > { %4187 = vmatpush3.bf16.msra.mxu0 %v4494_v12  ;;  %3070 = vmatprep.mubr.bf16.mxu0 %v2549_v7 }
  0xed   : > { %4209 = vmatpush3.bf16.msra.mxu1 %v4495_v13  ;;  %4188 = vmatprep.subr.bf16.mxu0 %v4496_v14 }
  0xee   : > { %4210 = vmatprep.subr.bf16.mxu1 %v4497_v15 }
  0xf0   : > { %4189 = vmatpush3.bf16.msra.mxu0 %v4498_v16 }
  0xf1   : > { %4211 = vmatpush3.bf16.msra.mxu1 %v4499_v17  ;;  %4190 = vmatprep.subr.bf16.mxu0 %v4500_v18 }
  0xf2   : > { %4212 = vmatprep.subr.bf16.mxu1 %v4501_v19 }
  0xf4   : > { %4191 = vmatpush3.bf16.msra.mxu0 %v4502_v20 }
  0xf5   : > { %4213 = vmatpush3.bf16.msra.mxu1 %v4503_v21  ;;  %4192 = vmatprep.subr.bf16.mxu0 %v4504_v22 }
  0xf6   : > { %4214 = vmatprep.subr.bf16.mxu1 %v4505_v23 }
  0xf8   : > { %4193 = vmatpush3.bf16.msra.mxu0 %v4506_v25 }
  0xf9   : > { %4215 = vmatpush3.bf16.msra.mxu1 %v4507_v27  ;;  %4194 = vmatprep.subr.bf16.mxu0 %v4508_v30 }
  0xfa   : > { %v3892_v24 = vpop.f32.mrb[0].mxu0  ;;  %4216 = vmatprep.subr.bf16.mxu1 %v4509_v33 }
  0xfb   : > { %v3914_v26 = vpop.f32.mrb[0].mxu1  ;;  %v3893_v28 = vpop.f32.mrb[1].mxu0 }
  0xfc   : > { %v3915_v29 = vpop.f32.mrb[1].mxu1  ;;  %v3894_v31 = vadd.f32 %v3893_v28, %v3892_v24  ;;  %v3895_v34 = vpop.f32.mrb[2].mxu0  ;;  %4195 = vmatpush3.bf16.msra.mxu0 %v4510_v36 }
  0xfd   : > { %v3916_v32 = vadd.f32 %v3915_v29, %v3914_v26  ;;  %v3917_v35 = vpop.f32.mrb[2].mxu1  ;;  %v3896_v39 = vpop.f32.mrb[3].mxu0  ;;  %4217 = vmatpush3.bf16.msra.mxu1 %v4511_v38  ;;  %4196 = vmatprep.subr.bf16.mxu0 %v4512_v41 }
  0xfe   : > { %v3918_v40 = vpop.f32.mrb[3].mxu1  ;;  %4218 = vmatprep.subr.bf16.mxu1 %v4513_v42 }
  0xff   : > { %v5331_v37 = vadd.f32 %v3916_v32, %v3894_v31 }
 0x100   : > { %4197 = vmatpush3.bf16.msra.mxu0 %v4514_v43 }
 0x101   : > { %4219 = vmatpush3.bf16.msra.mxu1 %v4515_v44  ;;  %4198 = vmatprep.subr.bf16.mxu0 %v4516_v45 }
 0x102   : > { %4220 = vmatprep.subr.bf16.mxu1 %v4517_v46 }
 0x104   : > { %4199 = vmatpush3.bf16.msra.mxu0 %v4518_v47 }
 0x105   : > { %4221 = vmatpush3.bf16.msra.mxu1 %v4519_v49 }
 0x107   : > { %3071 = vmatmul.mubr.bf16.vlgmr.msra.gmra.mrb[28].mxu0 %v2541_v8 }
 0x108   : > { %3111 = vmatmul.mubr.bf16.vlgmr.msra.gmra.mrb[28].mxu1 %v2557_v10 }
 0x11a   : > { %v3936_v11 = vpop.f32.mrb[4].mxu0 }
 0x11b   : > { %v3958_v12 = vpop.f32.mrb[4].mxu1  ;;  %v3937_v13 = vpop.f32.mrb[5].mxu0 }
 0x11c   : > { %v3938_v14 = vadd.f32 %v3937_v13, %v3936_v11  ;;  %v3959_v15 = vpop.f32.mrb[5].mxu1  ;;  %v3939_v16 = vpop.f32.mrb[6].mxu0 }
 0x11d   : > { %v3960_v17 = vadd.f32 %v3959_v15, %v3958_v12  ;;  %v3961_v18 = vpop.f32.mrb[6].mxu1  ;;  %v3940_v19 = vpop.f32.mrb[7].mxu0 }
 0x11e   : > { %v1018_v20 = vadd.f32 %v3938_v14, %v5331_v37  ;;  %v3962_v21 = vpop.f32.mrb[7].mxu1 }
 0x120   : > { %v1058_v22 = vadd.f32 %v3960_v17, %v1018_v20 }
 0x13a   : > { %v3980_v23 = vpop.f32.mrb[8].mxu0 }
 0x13b   : > { %v4002_v24 = vpop.f32.mrb[8].mxu1  ;;  %v3981_v25 = vpop.f32.mrb[9].mxu0 }
 0x13c   : > { %v3982_v26 = vadd.f32 %v3981_v25, %v3980_v23  ;;  %v4003_v27 = vpop.f32.mrb[9].mxu1  ;;  %v3983_v28 = vpop.f32.mrb[10].mxu0 }
 0x13d   : > { %v4004_v29 = vadd.f32 %v4003_v27, %v4002_v24  ;;  %v4005_v30 = vpop.f32.mrb[10].mxu1  ;;  %v3984_v31 = vpop.f32.mrb[11].mxu0 }
 0x13e   : > { %v1510_v32 = vadd.f32 %v3982_v26, %v1058_v22  ;;  %v4006_v33 = vpop.f32.mrb[11].mxu1  ;;  %v3872_v30 = vld [vmem:[%s5375_s2] ss:$0 sm:$0xff] }
 0x140   : > { %v1550_v34 = vadd.f32 %v4004_v29, %v1510_v32 }
 0x15a   : > { %v4024_v35 = vpop.f32.mrb[12].mxu0 }
 0x15b   : > { %v4046_v36 = vpop.f32.mrb[12].mxu1  ;;  %v4025_v38 = vpop.f32.mrb[13].mxu0 }
 0x15c   : > { %v4026_v39 = vadd.f32 %v4025_v38, %v4024_v35  ;;  %v4047_v40 = vpop.f32.mrb[13].mxu1  ;;  %v4027_v37 = vpop.f32.mrb[14].mxu0 }
 0x15d   : > { %v4048_v41 = vadd.f32 %v4047_v40, %v4046_v36  ;;  %v4049_v42 = vpop.f32.mrb[14].mxu1  ;;  %v4028_v43 = vpop.f32.mrb[15].mxu0 }
 0x15e   : > { %v1590_v44 = vadd.f32 %v4026_v39, %v1550_v34  ;;  %v4050_v45 = vpop.f32.mrb[15].mxu1 }
 0x160   : > { %v1630_v46 = vadd.f32 %v4048_v41, %v1590_v44 }
 0x17a   : > { %v4068_v47 = vpop.f32.mrb[16].mxu0 }
 0x17b   : > { %v4090_v48 = vpop.f32.mrb[16].mxu1  ;;  %v4069_v49 = vpop.f32.mrb[17].mxu0 }
 0x17c   : > { %v4070_v50 = vadd.f32 %v4069_v49, %v4068_v47  ;;  %v4091_v51 = vpop.f32.mrb[17].mxu1  ;;  %v4071_v52 = vpop.f32.mrb[18].mxu0 }
 0x17d   : > { %v4092_v53 = vadd.f32 %v4091_v51, %v4090_v48  ;;  %v4093_v54 = vpop.f32.mrb[18].mxu1  ;;  %v4072_v55 = vpop.f32.mrb[19].mxu0 }
 0x17e   : > { %v4094_v56 = vpop.f32.mrb[19].mxu1 }
 0x17f   : > { %v2263_v57 = vadd.f32 %v4092_v53, %v4070_v50 }
 0x19a   : > { %v4112_v58 = vpop.f32.mrb[20].mxu0 }
 0x19b   : > { %v4134_v59 = vpop.f32.mrb[20].mxu1  ;;  %v4113_v60 = vpop.f32.mrb[21].mxu0 }
 0x19c   : > { %v4135_v61 = vpop.f32.mrb[21].mxu1  ;;  %v4114_v62 = vadd.f32 %v4113_v60, %v4112_v58  ;;  %v4115_v0 = vpop.f32.mrb[22].mxu0 }
 0x19d   : > { %v4136_v63 = vadd.f32 %v4135_v61, %v4134_v59  ;;  %v4137_v1 = vpop.f32.mrb[22].mxu1  ;;  %v4116_v2 = vpop.f32.mrb[23].mxu0 }
 0x19e   : > { %v4138_v3 = vpop.f32.mrb[23].mxu1  ;;  %v2303_v4 = vadd.f32 %v4114_v62, %v2263_v57 }
 0x1a0   : > { %v2343_v5 = vadd.f32 %v4136_v63, %v2303_v4 }
 0x1a2   : > { %v2348_v6 = vadd.f32 %v2343_v5, %v1630_v46 }
 0x1ba   : > { %v4156_v7 = vpop.f32.mrb[24].mxu0 }
 0x1bb   : > { %v4178_v8 = vpop.f32.mrb[24].mxu1  ;;  %v4157_v9 = vpop.f32.mrb[25].mxu0 }
 0x1bc   : > { %v4158_v10 = vadd.f32 %v4157_v9, %v4156_v7  ;;  %v4179_v11 = vpop.f32.mrb[25].mxu1  ;;  %v4159_v12 = vpop.f32.mrb[26].mxu0 }
 0x1bd   : > { %v4180_v13 = vadd.f32 %v4179_v11, %v4178_v8  ;;  %v4181_v14 = vpop.f32.mrb[26].mxu1  ;;  %v4160_v15 = vpop.f32.mrb[27].mxu0 }
 0x1be   : > { %v4182_v16 = vpop.f32.mrb[27].mxu1 }
 0x1bf   : > { %v3033_v17 = vadd.f32 %v4180_v13, %v4158_v10 }
 0x1da   : > { %v4200_v18 = vpop.f32.mrb[28].mxu0 }
 0x1db   : > { %v4222_v19 = vpop.f32.mrb[28].mxu1  ;;  %v4201_v20 = vpop.f32.mrb[29].mxu0 }
 0x1dc   : > { %v4202_v21 = vadd.f32 %v4201_v20, %v4200_v18  ;;  %v4223_v22 = vpop.f32.mrb[29].mxu1  ;;  %v4203_v23 = vpop.f32.mrb[30].mxu0 }
 0x1dd   : > { %v4224_v24 = vadd.f32 %v4223_v22, %v4222_v19  ;;  %v4225_v25 = vpop.f32.mrb[30].mxu1  ;;  %v4204_v26 = vpop.f32.mrb[31].mxu0 }
 0x1de   : > { %v3073_v27 = vadd.f32 %v4202_v21, %v3033_v17  ;;  %v4226_v28 = vpop.f32.mrb[31].mxu1 }
 0x1e0   : > { %v3113_v29 = vadd.f32 %v4224_v24, %v3073_v27 }
 0x1e2   : > { %v3118_v31 = vadd.f32 %v3113_v29, %v2348_v6 }
 0x1e4   : > { %v3126_v32 = vadd.f32 %v3872_v30, %v3118_v31 }
 0x1e6   : > { %v3127_v33 = vand.u32 2147483647, %v3126_v32  ;;  %vm3133_vm0 = vcmp.ge.f32.partialorder %v3126_v32, 0.0 }
 0x1e8   : > { %v3128_v34 = vsub.f32 0.0, %v3127_v33 }
 0x1ea   : > { %v3129_v35 = vmul.f32 1.442695, %v3128_v34 }
 0x1ec   : > { %4524 = vpow2.f32 %v3129_v35 }
 0x1f6   : > { %v4525_v36 = vpop.eup %4524 }
 0x1f7   : > { %v3131_v38 = vadd.f32 1.0, %v4525_v36 }
 0x1f9   : > { %4526 = vrcp.f32 %v3131_v38 }
 0x203   : > { %v4527_v39 = vpop.eup %4526 }
 0x204   : > { %v3134_v40 = vsub.f32 1.0, %v4527_v39 }
 0x206   : > { %v3135_v37 = vsel %vm3133_vm0, %v4527_v39, %v3134_v40 }
 0x207   : > { %v3136_v41 = vmax.f32 %v3135_v37, 0.0 }
 0x209   : > { %v3137_v42 = vmin.f32 %v3136_v41, 1.0 }
 0x20b   : > { %3138 = vst [vmem:[%s168_s28] sm:$0x3] %v3137_v42 }
 0x20c PF: > { %s13_s12 = sadd.s32 1, %s4534_s12  }
 0x20d   : > { %p10_p4 = scmp.ge.s32.totalorder %s13_s12, 4  }
 0x20f   :  { %12 = sbr.rel (!%p10_p4) target bundleno = 1 (0x1), region = 65 }

</bundles_post_ra>
